<compile_context>
chip_gen: v7x
topology: tpu7x:2x2x1
jax: 0.10.0
libtpu: 0.0.40
codegen_flags: <defaults>
</compile_context>

<pallas_src>
import functools

import jax
import jax.numpy as jnp
from jax.experimental import pallas as pl
from jax.experimental.pallas import tpu as pltpu


# (Cout, stride) of the four conv layers; all use kernel=3, padding=1.
_LAYER_DEFS = [(32, 2), (64, 2), (128, 2), (256, 1)]

# bf16 operands + f32 accumulation is the fast MXU path on v5e/v6e/v7x.
# Set to jnp.float32 for bit-closer numerics (perf is launch/DMA bound here).
_COMPUTE_DTYPE = jnp.bfloat16


def _conv_out(n, stride):
    return (n + 2 - 3) // stride + 1


def _round_up(x, m):
    return (x + m - 1) // m * m


def _choose_block(batch):
    # Batch block BB: multiple of 8 (sublane aligned), capped at 64 so that
    # pipeline buffers + in-kernel temporaries stay well inside even v5e's
    # 16 MiB default scoped VMEM.  For B > BB the grid has >=2 "parallel"
    # steps, which keeps both v7x TensorCores busy.
    bb = min(64, _round_up(max(batch, 1), 8))
    return max(bb, 8)


# ---------------------------------------------------------------------------
# Fused kernel: conv1..conv4 (one GEMM each) + global max pool, per BB block.
# ---------------------------------------------------------------------------
def _make_kernel(layer_shapes, bb, cdt):
    # layer_shapes[i] = (hin, win, cin, hout, wout, cout, stride)
    n_layers = len(layer_shapes)

    def im2col(a, shp):
        """a: (hin, win, bb, cin) activation -> (hout*wout*bb, 9*cin) patches.

        Rows are ordered (oy, ox, b) -- spatial-major, batch-minor -- so every
        tap is a static outer-dim index a[iy, ix] (a (bb, cin) block) and the
        next layer can reshape its GEMM output straight back to this layout.
        """
        hin, win, cin, hout, wout, cout, stride = shp
        zeros = jnp.zeros((bb, cin), dtype=a.dtype)
        row_blocks = []
        for oy in range(hout):
            for ox in range(wout):
                taps = []
                for ky in range(3):
                    iy = oy * stride + ky - 1
                    for kx in range(3):
                        ix = ox * stride + kx - 1
                        if 0 <= iy < hin and 0 <= ix < win:
                            taps.append(a[iy, ix])          # (bb, cin)
                        else:
                            taps.append(zeros)              # zero padding tap
                row_blocks.append(jnp.concatenate(taps, axis=-1))   # (bb, 9*cin)
        return jnp.concatenate(row_blocks, axis=0)          # (hout*wout*bb, 9*cin)

    def kernel(p1_ref, *refs):
        o_ref = refs[-1]
        wb = refs[:-1]
        w_refs = wb[0::2]     # (9*Cin, Cout) per layer
        b_refs = wb[1::2]     # (1, Cout) per layer, f32

        # Layer-1 patches were built at the JAX level: (Ho*Wo, bb, 9*Cin).
        h0 = layer_shapes[0]
        p = p1_ref[...].reshape(h0[3] * h0[4] * bb, 9 * h0[2])

        for li in range(n_layers):
            hin, win, cin, hout, wout, cout, stride = layer_shapes[li]
            acc = jnp.dot(p, w_refs[li][...],
                          preferred_element_type=jnp.float32)
            acc = acc + b_refs[li][...]                     # bias in f32
            if li + 1 < n_layers:
                # one cast per layer, then rebuild patches for the next layer
                a = acc.astype(cdt).reshape(hout, wout, bb, cout)
                p = im2col(a, layer_shapes[li + 1])
            else:
                # AdaptiveMaxPool2d((1,1)) + flatten(1): max over the spatial
                # positions (leading axis after the (pos, bb, C) reshape).
                o_ref[...] = jnp.max(acc.reshape(hout * wout, bb, cout), axis=0)

    return kernel


# ---------------------------------------------------------------------------
# Wrapper
# ---------------------------------------------------------------------------
@jax.jit
def cnn_forward(obs, params):
    """obs: (B, H, W, C) uint8/float -> (B, 256) features (== torch flatten(1))."""
    B, H, W, C = obs.shape

    # Static per-layer shapes.
    shapes = []
    hin, win, cin = H, W, C
    for cout, stride in _LAYER_DEFS:
        hout, wout = _conv_out(hin, stride), _conv_out(win, stride)
        shapes.append((hin, win, cin, hout, wout, cout, stride))
        hin, win, cin = hout, wout, cout
    feat_dim = shapes[-1][5]

    bb = _choose_block(B)
    b_pad = _round_up(B, bb)

    x = obs.astype(jnp.float32)
    if b_pad != B:
        x = jnp.pad(x, ((0, b_pad - B), (0, 0), (0, 0), (0, 0)))

    # ---- Layer-1 im2col at the JAX/XLA level (tiny input) -----------------
    hin1, win1, cin1, ho1, wo1, _, s1 = shapes[0]
    xp = jnp.pad(x, ((0, 0), (1, 1), (1, 1), (0, 0)))
    taps = [xp[:, ky:ky + s1 * (ho1 - 1) + 1:s1,
               kx:kx + s1 * (wo1 - 1) + 1:s1, :]
            for ky in range(3) for kx in range(3)]
    p1 = jnp.concatenate(taps, axis=-1)                  # (Bp, ho1, wo1, 9*C)
    p1 = jnp.transpose(p1, (1, 2, 0, 3))                 # spatial-major, batch-minor
    p1 = p1.reshape(ho1 * wo1, b_pad, 9 * cin1).astype(_COMPUTE_DTYPE)

    # ---- Weights as (9*Cin, Cout) GEMM matrices ----------------------------
    ws, bs = [], []
    for li, (_, _, cin_l, _, _, cout_l, _) in enumerate(shapes, start=1):
        ws.append(params[f"w{li}"].reshape(9 * cin_l, cout_l).astype(_COMPUTE_DTYPE))
        bs.append(params[f"b{li}"].reshape(1, cout_l).astype(jnp.float32))

    # ---- pallas_call --------------------------------------------------------
    in_specs = [pl.BlockSpec((ho1 * wo1, bb, 9 * cin1), lambda i: (0, i, 0))]
    wb_inputs = []
    for w, b in zip(ws, bs):
        in_specs.append(pl.BlockSpec(w.shape, lambda i: (0, 0)))
        in_specs.append(pl.BlockSpec(b.shape, lambda i: (0, 0)))
        wb_inputs += [w, b]

    flops = 2 * b_pad * sum(ho * wo * 9 * ci * co
                            for (_, _, ci, ho, wo, co, _) in shapes)
    bytes_accessed = (p1.size * p1.dtype.itemsize
                      + sum(a.size * a.dtype.itemsize for a in ws)
                      + sum(a.size * a.dtype.itemsize for a in bs)
                      + b_pad * feat_dim * 4)

    kernel = _make_kernel(tuple(shapes), bb, _COMPUTE_DTYPE)
    out = pl.pallas_call(
        kernel,
        out_shape=jax.ShapeDtypeStruct((b_pad, feat_dim), jnp.float32),
        grid=(b_pad // bb,),
        in_specs=in_specs,
        out_specs=pl.BlockSpec((bb, feat_dim), lambda i: (i, 0)),
        compiler_params=pltpu.CompilerParams(
            dimension_semantics=("parallel",),   # batch blocks across TCs (v7x)
        ),
        cost_estimate=pl.CostEstimate(
            flops=flops, transcendentals=0, bytes_accessed=bytes_accessed),
    )(p1, *wb_inputs)
    return out[:B]


# ---------------------------------------------------------------------------
# Parameters (HWIO conv weights, matching PyTorch's default init scale)
# ---------------------------------------------------------------------------
def init_params(key, obs_channels):
    params = {}
    cin = obs_channels
    for li, (cout, _) in enumerate(_LAYER_DEFS, start=1):
        key, kw, kb = jax.random.split(key, 3)
        bound = 1.0 / jnp.sqrt(9 * cin)
        params[f"w{li}"] = jax.random.uniform(
            kw, (3, 3, cin, cout), jnp.float32, -bound, bound)
        params[f"b{li}"] = jax.random.uniform(
            kb, (cout,), jnp.float32, -bound, bound)
        cin = cout
    return params


# ---------------------------------------------------------------------------
# Pure-JAX reference (for correctness check)
# ---------------------------------------------------------------------------
def _conv_ref(x, w, b, stride):
    y = jax.lax.conv_general_dilated(
        x, w, (stride, stride), ((1, 1), (1, 1)),
        dimension_numbers=("NHWC", "HWIO", "NHWC"))
    return y + b


def ref_forward(obs, params):
    h = obs.astype(jnp.float32)
    h = _conv_ref(h, params["w1"], params["b1"], 2)
    h = _conv_ref(h, params["w2"], params["b2"], 2)
    h = _conv_ref(h, params["w3"], params["b3"], 2)
    h = _conv_ref(h, params["w4"], params["b4"], 1)
    return jnp.max(h, axis=(1, 2))   # AdaptiveMaxPool2d((1,1)) + flatten(1)


# ---------------------------------------------------------------------------
if __name__ == "__main__":
    key = jax.random.PRNGKey(0)
    k_obs, k_par = jax.random.split(key)

    B, H, W, C = 2, 16, 16, 4          # small MiniGrid-like obs: (B, H, W, C)
    obs = jax.random.uniform(k_obs, (B, H, W, C), jnp.float32, 0.0, 1.0)
    params = init_params(k_par, C)

    feats = jax.block_until_ready(cnn_forward(obs, params))

    assert feats.shape == (B, 256), feats.shape
    assert bool(jnp.all(jnp.isfinite(feats)))

    ref = ref_forward(obs, params)
    max_err = float(jnp.max(jnp.abs(feats - ref)))
    assert bool(jnp.allclose(feats, ref, rtol=2e-2, atol=2e-2)), max_err

    print("KERNEL_OK")
</pallas_src>

<mosaic_0001>
module attributes {stable_mosaic.version = 11 : i64} {
  func.func @kernel(%arg0: i32, %arg1: memref<64x8x36xbf16, #tpu.memory_space<vmem>>, %arg2: memref<36x32xbf16, #tpu.memory_space<vmem>>, %arg3: memref<1x32xf32, #tpu.memory_space<vmem>>, %arg4: memref<288x64xbf16, #tpu.memory_space<vmem>>, %arg5: memref<1x64xf32, #tpu.memory_space<vmem>>, %arg6: memref<576x128xbf16, #tpu.memory_space<vmem>>, %arg7: memref<1x128xf32, #tpu.memory_space<vmem>>, %arg8: memref<1152x256xbf16, #tpu.memory_space<vmem>>, %arg9: memref<1x256xf32, #tpu.memory_space<vmem>>, %arg10: memref<8x256xf32, #tpu.memory_space<vmem>>) attributes {dimension_semantics = [#tpu.dimension_semantics<parallel>], iteration_bounds = array<i64: 1>, scalar_prefetch = 0 : i64, scratch_operands = 0 : i64, tpu.core_type = #tpu.core_type<tc>, window_params = [{transform_indices = @transform_0, window_bounds = array<i64: 64, 8, 36>}, {pipeline_mode = #tpu.pipeline_mode<synchronous>, transform_indices = @transform_1, window_bounds = array<i64: 36, 32>}, {pipeline_mode = #tpu.pipeline_mode<synchronous>, transform_indices = @transform_2, window_bounds = array<i64: 1, 32>}, {pipeline_mode = #tpu.pipeline_mode<synchronous>, transform_indices = @transform_3, window_bounds = array<i64: 288, 64>}, {pipeline_mode = #tpu.pipeline_mode<synchronous>, transform_indices = @transform_4, window_bounds = array<i64: 1, 64>}, {pipeline_mode = #tpu.pipeline_mode<synchronous>, transform_indices = @transform_5, window_bounds = array<i64: 576, 128>}, {pipeline_mode = #tpu.pipeline_mode<synchronous>, transform_indices = @transform_6, window_bounds = array<i64: 1, 128>}, {pipeline_mode = #tpu.pipeline_mode<synchronous>, transform_indices = @transform_7, window_bounds = array<i64: 1152, 256>}, {pipeline_mode = #tpu.pipeline_mode<synchronous>, transform_indices = @transform_8, window_bounds = array<i64: 1, 256>}, {transform_indices = @transform_9, window_bounds = array<i64: 8, 256>}]} {
    %c0 = arith.constant 0 : index
    %c0_0 = arith.constant 0 : index
    %c0_1 = arith.constant 0 : index
    %0 = vector.load %arg1[%c0, %c0_0, %c0_1] : memref<64x8x36xbf16, #tpu.memory_space<vmem>>, vector<64x8x36xbf16>
    %1 = vector.shape_cast %0 : vector<64x8x36xbf16> to vector<512x36xbf16>
    %c0_2 = arith.constant 0 : index
    %c0_3 = arith.constant 0 : index
    %2 = vector.load %arg2[%c0_2, %c0_3] : memref<36x32xbf16, #tpu.memory_space<vmem>>, vector<36x32xbf16>
    %cst = arith.constant dense<0.000000e+00> : vector<512x32xf32>
    %3 = tpu.matmul %1, %2, %cst {dimension_numbers = #tpu.dot_dimension_numbers<[1], [0], [0], [1], [0, 0, 1, 1], [], []>} : vector<512x36xbf16>, vector<36x32xbf16>, vector<512x32xf32> -> vector<512x32xf32>
    %c0_4 = arith.constant 0 : index
    %c0_5 = arith.constant 0 : index
    %4 = vector.load %arg3[%c0_4, %c0_5] : memref<1x32xf32, #tpu.memory_space<vmem>>, vector<1x32xf32>
    %5 = vector.broadcast %4 : vector<1x32xf32> to vector<512x32xf32>
    %6 = arith.addf %3, %5 : vector<512x32xf32>
    %7 = arith.truncf %6 : vector<512x32xf32> to vector<512x32xbf16>
    %8 = vector.shape_cast %7 : vector<512x32xbf16> to vector<8x8x8x32xbf16>
    %cst_6 = arith.constant 0.000000e+00 : bf16
    %9 = vector.broadcast %cst_6 : bf16 to vector<8x32xbf16>
    %10 = vector.extract_strided_slice %8 {offsets = [0, 0, 0, 0], sizes = [1, 1, 8, 32], strides = [1, 1, 1, 1]} : vector<8x8x8x32xbf16> to vector<1x1x8x32xbf16>
    %11 = vector.shape_cast %10 : vector<1x1x8x32xbf16> to vector<8x32xbf16>
    %12 = vector.extract_strided_slice %8 {offsets = [0, 1, 0, 0], sizes = [1, 1, 8, 32], strides = [1, 1, 1, 1]} : vector<8x8x8x32xbf16> to vector<1x1x8x32xbf16>
    %13 = vector.shape_cast %12 : vector<1x1x8x32xbf16> to vector<8x32xbf16>
    %14 = vector.extract_strided_slice %8 {offsets = [1, 0, 0, 0], sizes = [1, 1, 8, 32], strides = [1, 1, 1, 1]} : vector<8x8x8x32xbf16> to vector<1x1x8x32xbf16>
    %15 = vector.shape_cast %14 : vector<1x1x8x32xbf16> to vector<8x32xbf16>
    %16 = vector.extract_strided_slice %8 {offsets = [1, 1, 0, 0], sizes = [1, 1, 8, 32], strides = [1, 1, 1, 1]} : vector<8x8x8x32xbf16> to vector<1x1x8x32xbf16>
    %17 = vector.shape_cast %16 : vector<1x1x8x32xbf16> to vector<8x32xbf16>
    %18 = tpu.concatenate %9, %9, %9, %9, %11, %13, %9, %15, %17 in 1 : vector<8x32xbf16>, vector<8x32xbf16>, vector<8x32xbf16>, vector<8x32xbf16>, vector<8x32xbf16>, vector<8x32xbf16>, vector<8x32xbf16>, vector<8x32xbf16>, vector<8x32xbf16> -> vector<8x288xbf16>
    %19 = vector.extract_strided_slice %8 {offsets = [0, 1, 0, 0], sizes = [1, 1, 8, 32], strides = [1, 1, 1, 1]} : vector<8x8x8x32xbf16> to vector<1x1x8x32xbf16>
    %20 = vector.shape_cast %19 : vector<1x1x8x32xbf16> to vector<8x32xbf16>
    %21 = vector.extract_strided_slice %8 {offsets = [0, 2, 0, 0], sizes = [1, 1, 8, 32], strides = [1, 1, 1, 1]} : vector<8x8x8x32xbf16> to vector<1x1x8x32xbf16>
    %22 = vector.shape_cast %21 : vector<1x1x8x32xbf16> to vector<8x32xbf16>
    %23 = vector.extract_strided_slice %8 {offsets = [0, 3, 0, 0], sizes = [1, 1, 8, 32], strides = [1, 1, 1, 1]} : vector<8x8x8x32xbf16> to vector<1x1x8x32xbf16>
    %24 = vector.shape_cast %23 : vector<1x1x8x32xbf16> to vector<8x32xbf16>
    %25 = vector.extract_strided_slice %8 {offsets = [1, 1, 0, 0], sizes = [1, 1, 8, 32], strides = [1, 1, 1, 1]} : vector<8x8x8x32xbf16> to vector<1x1x8x32xbf16>
    %26 = vector.shape_cast %25 : vector<1x1x8x32xbf16> to vector<8x32xbf16>
    %27 = vector.extract_strided_slice %8 {offsets = [1, 2, 0, 0], sizes = [1, 1, 8, 32], strides = [1, 1, 1, 1]} : vector<8x8x8x32xbf16> to vector<1x1x8x32xbf16>
    %28 = vector.shape_cast %27 : vector<1x1x8x32xbf16> to vector<8x32xbf16>
    %29 = vector.extract_strided_slice %8 {offsets = [1, 3, 0, 0], sizes = [1, 1, 8, 32], strides = [1, 1, 1, 1]} : vector<8x8x8x32xbf16> to vector<1x1x8x32xbf16>
    %30 = vector.shape_cast %29 : vector<1x1x8x32xbf16> to vector<8x32xbf16>
    %31 = tpu.concatenate %9, %9, %9, %20, %22, %24, %26, %28, %30 in 1 : vector<8x32xbf16>, vector<8x32xbf16>, vector<8x32xbf16>, vector<8x32xbf16>, vector<8x32xbf16>, vector<8x32xbf16>, vector<8x32xbf16>, vector<8x32xbf16>, vector<8x32xbf16> -> vector<8x288xbf16>
    %32 = vector.extract_strided_slice %8 {offsets = [0, 3, 0, 0], sizes = [1, 1, 8, 32], strides = [1, 1, 1, 1]} : vector<8x8x8x32xbf16> to vector<1x1x8x32xbf16>
    %33 = vector.shape_cast %32 : vector<1x1x8x32xbf16> to vector<8x32xbf16>
    %34 = vector.extract_strided_slice %8 {offsets = [0, 4, 0, 0], sizes = [1, 1, 8, 32], strides = [1, 1, 1, 1]} : vector<8x8x8x32xbf16> to vector<1x1x8x32xbf16>
    %35 = vector.shape_cast %34 : vector<1x1x8x32xbf16> to vector<8x32xbf16>
    %36 = vector.extract_strided_slice %8 {offsets = [0, 5, 0, 0], sizes = [1, 1, 8, 32], strides = [1, 1, 1, 1]} : vector<8x8x8x32xbf16> to vector<1x1x8x32xbf16>
    %37 = vector.shape_cast %36 : vector<1x1x8x32xbf16> to vector<8x32xbf16>
    %38 = vector.extract_strided_slice %8 {offsets = [1, 3, 0, 0], sizes = [1, 1, 8, 32], strides = [1, 1, 1, 1]} : vector<8x8x8x32xbf16> to vector<1x1x8x32xbf16>
    %39 = vector.shape_cast %38 : vector<1x1x8x32xbf16> to vector<8x32xbf16>
    %40 = vector.extract_strided_slice %8 {offsets = [1, 4, 0, 0], sizes = [1, 1, 8, 32], strides = [1, 1, 1, 1]} : vector<8x8x8x32xbf16> to vector<1x1x8x32xbf16>
    %41 = vector.shape_cast %40 : vector<1x1x8x32xbf16> to vector<8x32xbf16>
    %42 = vector.extract_strided_slice %8 {offsets = [1, 5, 0, 0], sizes = [1, 1, 8, 32], strides = [1, 1, 1, 1]} : vector<8x8x8x32xbf16> to vector<1x1x8x32xbf16>
    %43 = vector.shape_cast %42 : vector<1x1x8x32xbf16> to vector<8x32xbf16>
    %44 = tpu.concatenate %9, %9, %9, %33, %35, %37, %39, %41, %43 in 1 : vector<8x32xbf16>, vector<8x32xbf16>, vector<8x32xbf16>, vector<8x32xbf16>, vector<8x32xbf16>, vector<8x32xbf16>, vector<8x32xbf16>, vector<8x32xbf16>, vector<8x32xbf16> -> vector<8x288xbf16>
    %45 = vector.extract_strided_slice %8 {offsets = [0, 5, 0, 0], sizes = [1, 1, 8, 32], strides = [1, 1, 1, 1]} : vector<8x8x8x32xbf16> to vector<1x1x8x32xbf16>
    %46 = vector.shape_cast %45 : vector<1x1x8x32xbf16> to vector<8x32xbf16>
    %47 = vector.extract_strided_slice %8 {offsets = [0, 6, 0, 0], sizes = [1, 1, 8, 32], strides = [1, 1, 1, 1]} : vector<8x8x8x32xbf16> to vector<1x1x8x32xbf16>
    %48 = vector.shape_cast %47 : vector<1x1x8x32xbf16> to vector<8x32xbf16>
    %49 = vector.extract_strided_slice %8 {offsets = [0, 7, 0, 0], sizes = [1, 1, 8, 32], strides = [1, 1, 1, 1]} : vector<8x8x8x32xbf16> to vector<1x1x8x32xbf16>
    %50 = vector.shape_cast %49 : vector<1x1x8x32xbf16> to vector<8x32xbf16>
    %51 = vector.extract_strided_slice %8 {offsets = [1, 5, 0, 0], sizes = [1, 1, 8, 32], strides = [1, 1, 1, 1]} : vector<8x8x8x32xbf16> to vector<1x1x8x32xbf16>
    %52 = vector.shape_cast %51 : vector<1x1x8x32xbf16> to vector<8x32xbf16>
    %53 = vector.extract_strided_slice %8 {offsets = [1, 6, 0, 0], sizes = [1, 1, 8, 32], strides = [1, 1, 1, 1]} : vector<8x8x8x32xbf16> to vector<1x1x8x32xbf16>
    %54 = vector.shape_cast %53 : vector<1x1x8x32xbf16> to vector<8x32xbf16>
    %55 = vector.extract_strided_slice %8 {offsets = [1, 7, 0, 0], sizes = [1, 1, 8, 32], strides = [1, 1, 1, 1]} : vector<8x8x8x32xbf16> to vector<1x1x8x32xbf16>
    %56 = vector.shape_cast %55 : vector<1x1x8x32xbf16> to vector<8x32xbf16>
    %57 = tpu.concatenate %9, %9, %9, %46, %48, %50, %52, %54, %56 in 1 : vector<8x32xbf16>, vector<8x32xbf16>, vector<8x32xbf16>, vector<8x32xbf16>, vector<8x32xbf16>, vector<8x32xbf16>, vector<8x32xbf16>, vector<8x32xbf16>, vector<8x32xbf16> -> vector<8x288xbf16>
    %58 = vector.extract_strided_slice %8 {offsets = [1, 0, 0, 0], sizes = [1, 1, 8, 32], strides = [1, 1, 1, 1]} : vector<8x8x8x32xbf16> to vector<1x1x8x32xbf16>
    %59 = vector.shape_cast %58 : vector<1x1x8x32xbf16> to vector<8x32xbf16>
    %60 = vector.extract_strided_slice %8 {offsets = [1, 1, 0, 0], sizes = [1, 1, 8, 32], strides = [1, 1, 1, 1]} : vector<8x8x8x32xbf16> to vector<1x1x8x32xbf16>
    %61 = vector.shape_cast %60 : vector<1x1x8x32xbf16> to vector<8x32xbf16>
    %62 = vector.extract_strided_slice %8 {offsets = [2, 0, 0, 0], sizes = [1, 1, 8, 32], strides = [1, 1, 1, 1]} : vector<8x8x8x32xbf16> to vector<1x1x8x32xbf16>
    %63 = vector.shape_cast %62 : vector<1x1x8x32xbf16> to vector<8x32xbf16>
    %64 = vector.extract_strided_slice %8 {offsets = [2, 1, 0, 0], sizes = [1, 1, 8, 32], strides = [1, 1, 1, 1]} : vector<8x8x8x32xbf16> to vector<1x1x8x32xbf16>
    %65 = vector.shape_cast %64 : vector<1x1x8x32xbf16> to vector<8x32xbf16>
    %66 = vector.extract_strided_slice %8 {offsets = [3, 0, 0, 0], sizes = [1, 1, 8, 32], strides = [1, 1, 1, 1]} : vector<8x8x8x32xbf16> to vector<1x1x8x32xbf16>
    %67 = vector.shape_cast %66 : vector<1x1x8x32xbf16> to vector<8x32xbf16>
    %68 = vector.extract_strided_slice %8 {offsets = [3, 1, 0, 0], sizes = [1, 1, 8, 32], strides = [1, 1, 1, 1]} : vector<8x8x8x32xbf16> to vector<1x1x8x32xbf16>
    %69 = vector.shape_cast %68 : vector<1x1x8x32xbf16> to vector<8x32xbf16>
    %70 = tpu.concatenate %9, %59, %61, %9, %63, %65, %9, %67, %69 in 1 : vector<8x32xbf16>, vector<8x32xbf16>, vector<8x32xbf16>, vector<8x32xbf16>, vector<8x32xbf16>, vector<8x32xbf16>, vector<8x32xbf16>, vector<8x32xbf16>, vector<8x32xbf16> -> vector<8x288xbf16>
    %71 = vector.extract_strided_slice %8 {offsets = [1, 1, 0, 0], sizes = [1, 1, 8, 32], strides = [1, 1, 1, 1]} : vector<8x8x8x32xbf16> to vector<1x1x8x32xbf16>
    %72 = vector.shape_cast %71 : vector<1x1x8x32xbf16> to vector<8x32xbf16>
    %73 = vector.extract_strided_slice %8 {offsets = [1, 2, 0, 0], sizes = [1, 1, 8, 32], strides = [1, 1, 1, 1]} : vector<8x8x8x32xbf16> to vector<1x1x8x32xbf16>
    %74 = vector.shape_cast %73 : vector<1x1x8x32xbf16> to vector<8x32xbf16>
    %75 = vector.extract_strided_slice %8 {offsets = [1, 3, 0, 0], sizes = [1, 1, 8, 32], strides = [1, 1, 1, 1]} : vector<8x8x8x32xbf16> to vector<1x1x8x32xbf16>
    %76 = vector.shape_cast %75 : vector<1x1x8x32xbf16> to vector<8x32xbf16>
    %77 = vector.extract_strided_slice %8 {offsets = [2, 1, 0, 0], sizes = [1, 1, 8, 32], strides = [1, 1, 1, 1]} : vector<8x8x8x32xbf16> to vector<1x1x8x32xbf16>
    %78 = vector.shape_cast %77 : vector<1x1x8x32xbf16> to vector<8x32xbf16>
    %79 = vector.extract_strided_slice %8 {offsets = [2, 2, 0, 0], sizes = [1, 1, 8, 32], strides = [1, 1, 1, 1]} : vector<8x8x8x32xbf16> to vector<1x1x8x32xbf16>
    %80 = vector.shape_cast %79 : vector<1x1x8x32xbf16> to vector<8x32xbf16>
    %81 = vector.extract_strided_slice %8 {offsets = [2, 3, 0, 0], sizes = [1, 1, 8, 32], strides = [1, 1, 1, 1]} : vector<8x8x8x32xbf16> to vector<1x1x8x32xbf16>
    %82 = vector.shape_cast %81 : vector<1x1x8x32xbf16> to vector<8x32xbf16>
    %83 = vector.extract_strided_slice %8 {offsets = [3, 1, 0, 0], sizes = [1, 1, 8, 32], strides = [1, 1, 1, 1]} : vector<8x8x8x32xbf16> to vector<1x1x8x32xbf16>
    %84 = vector.shape_cast %83 : vector<1x1x8x32xbf16> to vector<8x32xbf16>
    %85 = vector.extract_strided_slice %8 {offsets = [3, 2, 0, 0], sizes = [1, 1, 8, 32], strides = [1, 1, 1, 1]} : vector<8x8x8x32xbf16> to vector<1x1x8x32xbf16>
    %86 = vector.shape_cast %85 : vector<1x1x8x32xbf16> to vector<8x32xbf16>
    %87 = vector.extract_strided_slice %8 {offsets = [3, 3, 0, 0], sizes = [1, 1, 8, 32], strides = [1, 1, 1, 1]} : vector<8x8x8x32xbf16> to vector<1x1x8x32xbf16>
    %88 = vector.shape_cast %87 : vector<1x1x8x32xbf16> to vector<8x32xbf16>
    %89 = tpu.concatenate %72, %74, %76, %78, %80, %82, %84, %86, %88 in 1 : vector<8x32xbf16>, vector<8x32xbf16>, vector<8x32xbf16>, vector<8x32xbf16>, vector<8x32xbf16>, vector<8x32xbf16>, vector<8x32xbf16>, vector<8x32xbf16>, vector<8x32xbf16> -> vector<8x288xbf16>
    %90 = vector.extract_strided_slice %8 {offsets = [1, 3, 0, 0], sizes = [1, 1, 8, 32], strides = [1, 1, 1, 1]} : vector<8x8x8x32xbf16> to vector<1x1x8x32xbf16>
    %91 = vector.shape_cast %90 : vector<1x1x8x32xbf16> to vector<8x32xbf16>
    %92 = vector.extract_strided_slice %8 {offsets = [1, 4, 0, 0], sizes = [1, 1, 8, 32], strides = [1, 1, 1, 1]} : vector<8x8x8x32xbf16> to vector<1x1x8x32xbf16>
    %93 = vector.shape_cast %92 : vector<1x1x8x32xbf16> to vector<8x32xbf16>
    %94 = vector.extract_strided_slice %8 {offsets = [1, 5, 0, 0], sizes = [1, 1, 8, 32], strides = [1, 1, 1, 1]} : vector<8x8x8x32xbf16> to vector<1x1x8x32xbf16>
    %95 = vector.shape_cast %94 : vector<1x1x8x32xbf16> to vector<8x32xbf16>
    %96 = vector.extract_strided_slice %8 {offsets = [2, 3, 0, 0], sizes = [1, 1, 8, 32], strides = [1, 1, 1, 1]} : vector<8x8x8x32xbf16> to vector<1x1x8x32xbf16>
    %97 = vector.shape_cast %96 : vector<1x1x8x32xbf16> to vector<8x32xbf16>
    %98 = vector.extract_strided_slice %8 {offsets = [2, 4, 0, 0], sizes = [1, 1, 8, 32], strides = [1, 1, 1, 1]} : vector<8x8x8x32xbf16> to vector<1x1x8x32xbf16>
    %99 = vector.shape_cast %98 : vector<1x1x8x32xbf16> to vector<8x32xbf16>
    %100 = vector.extract_strided_slice %8 {offsets = [2, 5, 0, 0], sizes = [1, 1, 8, 32], strides = [1, 1, 1, 1]} : vector<8x8x8x32xbf16> to vector<1x1x8x32xbf16>
    %101 = vector.shape_cast %100 : vector<1x1x8x32xbf16> to vector<8x32xbf16>
    %102 = vector.extract_strided_slice %8 {offsets = [3, 3, 0, 0], sizes = [1, 1, 8, 32], strides = [1, 1, 1, 1]} : vector<8x8x8x32xbf16> to vector<1x1x8x32xbf16>
    %103 = vector.shape_cast %102 : vector<1x1x8x32xbf16> to vector<8x32xbf16>
    %104 = vector.extract_strided_slice %8 {offsets = [3, 4, 0, 0], sizes = [1, 1, 8, 32], strides = [1, 1, 1, 1]} : vector<8x8x8x32xbf16> to vector<1x1x8x32xbf16>
    %105 = vector.shape_cast %104 : vector<1x1x8x32xbf16> to vector<8x32xbf16>
    %106 = vector.extract_strided_slice %8 {offsets = [3, 5, 0, 0], sizes = [1, 1, 8, 32], strides = [1, 1, 1, 1]} : vector<8x8x8x32xbf16> to vector<1x1x8x32xbf16>
    %107 = vector.shape_cast %106 : vector<1x1x8x32xbf16> to vector<8x32xbf16>
    %108 = tpu.concatenate %91, %93, %95, %97, %99, %101, %103, %105, %107 in 1 : vector<8x32xbf16>, vector<8x32xbf16>, vector<8x32xbf16>, vector<8x32xbf16>, vector<8x32xbf16>, vector<8x32xbf16>, vector<8x32xbf16>, vector<8x32xbf16>, vector<8x32xbf16> -> vector<8x288xbf16>
    %109 = vector.extract_strided_slice %8 {offsets = [1, 5, 0, 0], sizes = [1, 1, 8, 32], strides = [1, 1, 1, 1]} : vector<8x8x8x32xbf16> to vector<1x1x8x32xbf16>
    %110 = vector.shape_cast %109 : vector<1x1x8x32xbf16> to vector<8x32xbf16>
    %111 = vector.extract_strided_slice %8 {offsets = [1, 6, 0, 0], sizes = [1, 1, 8, 32], strides = [1, 1, 1, 1]} : vector<8x8x8x32xbf16> to vector<1x1x8x32xbf16>
    %112 = vector.shape_cast %111 : vector<1x1x8x32xbf16> to vector<8x32xbf16>
    %113 = vector.extract_strided_slice %8 {offsets = [1, 7, 0, 0], sizes = [1, 1, 8, 32], strides = [1, 1, 1, 1]} : vector<8x8x8x32xbf16> to vector<1x1x8x32xbf16>
    %114 = vector.shape_cast %113 : vector<1x1x8x32xbf16> to vector<8x32xbf16>
    %115 = vector.extract_strided_slice %8 {offsets = [2, 5, 0, 0], sizes = [1, 1, 8, 32], strides = [1, 1, 1, 1]} : vector<8x8x8x32xbf16> to vector<1x1x8x32xbf16>
    %116 = vector.shape_cast %115 : vector<1x1x8x32xbf16> to vector<8x32xbf16>
    %117 = vector.extract_strided_slice %8 {offsets = [2, 6, 0, 0], sizes = [1, 1, 8, 32], strides = [1, 1, 1, 1]} : vector<8x8x8x32xbf16> to vector<1x1x8x32xbf16>
    %118 = vector.shape_cast %117 : vector<1x1x8x32xbf16> to vector<8x32xbf16>
    %119 = vector.extract_strided_slice %8 {offsets = [2, 7, 0, 0], sizes = [1, 1, 8, 32], strides = [1, 1, 1, 1]} : vector<8x8x8x32xbf16> to vector<1x1x8x32xbf16>
    %120 = vector.shape_cast %119 : vector<1x1x8x32xbf16> to vector<8x32xbf16>
    %121 = vector.extract_strided_slice %8 {offsets = [3, 5, 0, 0], sizes = [1, 1, 8, 32], strides = [1, 1, 1, 1]} : vector<8x8x8x32xbf16> to vector<1x1x8x32xbf16>
    %122 = vector.shape_cast %121 : vector<1x1x8x32xbf16> to vector<8x32xbf16>
    %123 = vector.extract_strided_slice %8 {offsets = [3, 6, 0, 0], sizes = [1, 1, 8, 32], strides = [1, 1, 1, 1]} : vector<8x8x8x32xbf16> to vector<1x1x8x32xbf16>
    %124 = vector.shape_cast %123 : vector<1x1x8x32xbf16> to vector<8x32xbf16>
    %125 = vector.extract_strided_slice %8 {offsets = [3, 7, 0, 0], sizes = [1, 1, 8, 32], strides = [1, 1, 1, 1]} : vector<8x8x8x32xbf16> to vector<1x1x8x32xbf16>
    %126 = vector.shape_cast %125 : vector<1x1x8x32xbf16> to vector<8x32xbf16>
    %127 = tpu.concatenate %110, %112, %114, %116, %118, %120, %122, %124, %126 in 1 : vector<8x32xbf16>, vector<8x32xbf16>, vector<8x32xbf16>, vector<8x32xbf16>, vector<8x32xbf16>, vector<8x32xbf16>, vector<8x32xbf16>, vector<8x32xbf16>, vector<8x32xbf16> -> vector<8x288xbf16>
    %128 = vector.extract_strided_slice %8 {offsets = [3, 0, 0, 0], sizes = [1, 1, 8, 32], strides = [1, 1, 1, 1]} : vector<8x8x8x32xbf16> to vector<1x1x8x32xbf16>
    %129 = vector.shape_cast %128 : vector<1x1x8x32xbf16> to vector<8x32xbf16>
    %130 = vector.extract_strided_slice %8 {offsets = [3, 1, 0, 0], sizes = [1, 1, 8, 32], strides = [1, 1, 1, 1]} : vector<8x8x8x32xbf16> to vector<1x1x8x32xbf16>
    %131 = vector.shape_cast %130 : vector<1x1x8x32xbf16> to vector<8x32xbf16>
    %132 = vector.extract_strided_slice %8 {offsets = [4, 0, 0, 0], sizes = [1, 1, 8, 32], strides = [1, 1, 1, 1]} : vector<8x8x8x32xbf16> to vector<1x1x8x32xbf16>
    %133 = vector.shape_cast %132 : vector<1x1x8x32xbf16> to vector<8x32xbf16>
    %134 = vector.extract_strided_slice %8 {offsets = [4, 1, 0, 0], sizes = [1, 1, 8, 32], strides = [1, 1, 1, 1]} : vector<8x8x8x32xbf16> to vector<1x1x8x32xbf16>
    %135 = vector.shape_cast %134 : vector<1x1x8x32xbf16> to vector<8x32xbf16>
    %136 = vector.extract_strided_slice %8 {offsets = [5, 0, 0, 0], sizes = [1, 1, 8, 32], strides = [1, 1, 1, 1]} : vector<8x8x8x32xbf16> to vector<1x1x8x32xbf16>
    %137 = vector.shape_cast %136 : vector<1x1x8x32xbf16> to vector<8x32xbf16>
    %138 = vector.extract_strided_slice %8 {offsets = [5, 1, 0, 0], sizes = [1, 1, 8, 32], strides = [1, 1, 1, 1]} : vector<8x8x8x32xbf16> to vector<1x1x8x32xbf16>
    %139 = vector.shape_cast %138 : vector<1x1x8x32xbf16> to vector<8x32xbf16>
    %140 = tpu.concatenate %9, %129, %131, %9, %133, %135, %9, %137, %139 in 1 : vector<8x32xbf16>, vector<8x32xbf16>, vector<8x32xbf16>, vector<8x32xbf16>, vector<8x32xbf16>, vector<8x32xbf16>, vector<8x32xbf16>, vector<8x32xbf16>, vector<8x32xbf16> -> vector<8x288xbf16>
    %141 = vector.extract_strided_slice %8 {offsets = [3, 1, 0, 0], sizes = [1, 1, 8, 32], strides = [1, 1, 1, 1]} : vector<8x8x8x32xbf16> to vector<1x1x8x32xbf16>
    %142 = vector.shape_cast %141 : vector<1x1x8x32xbf16> to vector<8x32xbf16>
    %143 = vector.extract_strided_slice %8 {offsets = [3, 2, 0, 0], sizes = [1, 1, 8, 32], strides = [1, 1, 1, 1]} : vector<8x8x8x32xbf16> to vector<1x1x8x32xbf16>
    %144 = vector.shape_cast %143 : vector<1x1x8x32xbf16> to vector<8x32xbf16>
    %145 = vector.extract_strided_slice %8 {offsets = [3, 3, 0, 0], sizes = [1, 1, 8, 32], strides = [1, 1, 1, 1]} : vector<8x8x8x32xbf16> to vector<1x1x8x32xbf16>
    %146 = vector.shape_cast %145 : vector<1x1x8x32xbf16> to vector<8x32xbf16>
    %147 = vector.extract_strided_slice %8 {offsets = [4, 1, 0, 0], sizes = [1, 1, 8, 32], strides = [1, 1, 1, 1]} : vector<8x8x8x32xbf16> to vector<1x1x8x32xbf16>
    %148 = vector.shape_cast %147 : vector<1x1x8x32xbf16> to vector<8x32xbf16>
    %149 = vector.extract_strided_slice %8 {offsets = [4, 2, 0, 0], sizes = [1, 1, 8, 32], strides = [1, 1, 1, 1]} : vector<8x8x8x32xbf16> to vector<1x1x8x32xbf16>
    %150 = vector.shape_cast %149 : vector<1x1x8x32xbf16> to vector<8x32xbf16>
    %151 = vector.extract_strided_slice %8 {offsets = [4, 3, 0, 0], sizes = [1, 1, 8, 32], strides = [1, 1, 1, 1]} : vector<8x8x8x32xbf16> to vector<1x1x8x32xbf16>
    %152 = vector.shape_cast %151 : vector<1x1x8x32xbf16> to vector<8x32xbf16>
    %153 = vector.extract_strided_slice %8 {offsets = [5, 1, 0, 0], sizes = [1, 1, 8, 32], strides = [1, 1, 1, 1]} : vector<8x8x8x32xbf16> to vector<1x1x8x32xbf16>
    %154 = vector.shape_cast %153 : vector<1x1x8x32xbf16> to vector<8x32xbf16>
    %155 = vector.extract_strided_slice %8 {offsets = [5, 2, 0, 0], sizes = [1, 1, 8, 32], strides = [1, 1, 1, 1]} : vector<8x8x8x32xbf16> to vector<1x1x8x32xbf16>
    %156 = vector.shape_cast %155 : vector<1x1x8x32xbf16> to vector<8x32xbf16>
    %157 = vector.extract_strided_slice %8 {offsets = [5, 3, 0, 0], sizes = [1, 1, 8, 32], strides = [1, 1, 1, 1]} : vector<8x8x8x32xbf16> to vector<1x1x8x32xbf16>
    %158 = vector.shape_cast %157 : vector<1x1x8x32xbf16> to vector<8x32xbf16>
    %159 = tpu.concatenate %142, %144, %146, %148, %150, %152, %154, %156, %158 in 1 : vector<8x32xbf16>, vector<8x32xbf16>, vector<8x32xbf16>, vector<8x32xbf16>, vector<8x32xbf16>, vector<8x32xbf16>, vector<8x32xbf16>, vector<8x32xbf16>, vector<8x32xbf16> -> vector<8x288xbf16>
    %160 = vector.extract_strided_slice %8 {offsets = [3, 3, 0, 0], sizes = [1, 1, 8, 32], strides = [1, 1, 1, 1]} : vector<8x8x8x32xbf16> to vector<1x1x8x32xbf16>
    %161 = vector.shape_cast %160 : vector<1x1x8x32xbf16> to vector<8x32xbf16>
    %162 = vector.extract_strided_slice %8 {offsets = [3, 4, 0, 0], sizes = [1, 1, 8, 32], strides = [1, 1, 1, 1]} : vector<8x8x8x32xbf16> to vector<1x1x8x32xbf16>
    %163 = vector.shape_cast %162 : vector<1x1x8x32xbf16> to vector<8x32xbf16>
    %164 = vector.extract_strided_slice %8 {offsets = [3, 5, 0, 0], sizes = [1, 1, 8, 32], strides = [1, 1, 1, 1]} : vector<8x8x8x32xbf16> to vector<1x1x8x32xbf16>
    %165 = vector.shape_cast %164 : vector<1x1x8x32xbf16> to vector<8x32xbf16>
    %166 = vector.extract_strided_slice %8 {offsets = [4, 3, 0, 0], sizes = [1, 1, 8, 32], strides = [1, 1, 1, 1]} : vector<8x8x8x32xbf16> to vector<1x1x8x32xbf16>
    %167 = vector.shape_cast %166 : vector<1x1x8x32xbf16> to vector<8x32xbf16>
    %168 = vector.extract_strided_slice %8 {offsets = [4, 4, 0, 0], sizes = [1, 1, 8, 32], strides = [1, 1, 1, 1]} : vector<8x8x8x32xbf16> to vector<1x1x8x32xbf16>
    %169 = vector.shape_cast %168 : vector<1x1x8x32xbf16> to vector<8x32xbf16>
    %170 = vector.extract_strided_slice %8 {offsets = [4, 5, 0, 0], sizes = [1, 1, 8, 32], strides = [1, 1, 1, 1]} : vector<8x8x8x32xbf16> to vector<1x1x8x32xbf16>
    %171 = vector.shape_cast %170 : vector<1x1x8x32xbf16> to vector<8x32xbf16>
    %172 = vector.extract_strided_slice %8 {offsets = [5, 3, 0, 0], sizes = [1, 1, 8, 32], strides = [1, 1, 1, 1]} : vector<8x8x8x32xbf16> to vector<1x1x8x32xbf16>
    %173 = vector.shape_cast %172 : vector<1x1x8x32xbf16> to vector<8x32xbf16>
    %174 = vector.extract_strided_slice %8 {offsets = [5, 4, 0, 0], sizes = [1, 1, 8, 32], strides = [1, 1, 1, 1]} : vector<8x8x8x32xbf16> to vector<1x1x8x32xbf16>
    %175 = vector.shape_cast %174 : vector<1x1x8x32xbf16> to vector<8x32xbf16>
    %176 = vector.extract_strided_slice %8 {offsets = [5, 5, 0, 0], sizes = [1, 1, 8, 32], strides = [1, 1, 1, 1]} : vector<8x8x8x32xbf16> to vector<1x1x8x32xbf16>
    %177 = vector.shape_cast %176 : vector<1x1x8x32xbf16> to vector<8x32xbf16>
    %178 = tpu.concatenate %161, %163, %165, %167, %169, %171, %173, %175, %177 in 1 : vector<8x32xbf16>, vector<8x32xbf16>, vector<8x32xbf16>, vector<8x32xbf16>, vector<8x32xbf16>, vector<8x32xbf16>, vector<8x32xbf16>, vector<8x32xbf16>, vector<8x32xbf16> -> vector<8x288xbf16>
    %179 = vector.extract_strided_slice %8 {offsets = [3, 5, 0, 0], sizes = [1, 1, 8, 32], strides = [1, 1, 1, 1]} : vector<8x8x8x32xbf16> to vector<1x1x8x32xbf16>
    %180 = vector.shape_cast %179 : vector<1x1x8x32xbf16> to vector<8x32xbf16>
    %181 = vector.extract_strided_slice %8 {offsets = [3, 6, 0, 0], sizes = [1, 1, 8, 32], strides = [1, 1, 1, 1]} : vector<8x8x8x32xbf16> to vector<1x1x8x32xbf16>
    %182 = vector.shape_cast %181 : vector<1x1x8x32xbf16> to vector<8x32xbf16>
    %183 = vector.extract_strided_slice %8 {offsets = [3, 7, 0, 0], sizes = [1, 1, 8, 32], strides = [1, 1, 1, 1]} : vector<8x8x8x32xbf16> to vector<1x1x8x32xbf16>
    %184 = vector.shape_cast %183 : vector<1x1x8x32xbf16> to vector<8x32xbf16>
    %185 = vector.extract_strided_slice %8 {offsets = [4, 5, 0, 0], sizes = [1, 1, 8, 32], strides = [1, 1, 1, 1]} : vector<8x8x8x32xbf16> to vector<1x1x8x32xbf16>
    %186 = vector.shape_cast %185 : vector<1x1x8x32xbf16> to vector<8x32xbf16>
    %187 = vector.extract_strided_slice %8 {offsets = [4, 6, 0, 0], sizes = [1, 1, 8, 32], strides = [1, 1, 1, 1]} : vector<8x8x8x32xbf16> to vector<1x1x8x32xbf16>
    %188 = vector.shape_cast %187 : vector<1x1x8x32xbf16> to vector<8x32xbf16>
    %189 = vector.extract_strided_slice %8 {offsets = [4, 7, 0, 0], sizes = [1, 1, 8, 32], strides = [1, 1, 1, 1]} : vector<8x8x8x32xbf16> to vector<1x1x8x32xbf16>
    %190 = vector.shape_cast %189 : vector<1x1x8x32xbf16> to vector<8x32xbf16>
    %191 = vector.extract_strided_slice %8 {offsets = [5, 5, 0, 0], sizes = [1, 1, 8, 32], strides = [1, 1, 1, 1]} : vector<8x8x8x32xbf16> to vector<1x1x8x32xbf16>
    %192 = vector.shape_cast %191 : vector<1x1x8x32xbf16> to vector<8x32xbf16>
    %193 = vector.extract_strided_slice %8 {offsets = [5, 6, 0, 0], sizes = [1, 1, 8, 32], strides = [1, 1, 1, 1]} : vector<8x8x8x32xbf16> to vector<1x1x8x32xbf16>
    %194 = vector.shape_cast %193 : vector<1x1x8x32xbf16> to vector<8x32xbf16>
    %195 = vector.extract_strided_slice %8 {offsets = [5, 7, 0, 0], sizes = [1, 1, 8, 32], strides = [1, 1, 1, 1]} : vector<8x8x8x32xbf16> to vector<1x1x8x32xbf16>
    %196 = vector.shape_cast %195 : vector<1x1x8x32xbf16> to vector<8x32xbf16>
    %197 = tpu.concatenate %180, %182, %184, %186, %188, %190, %192, %194, %196 in 1 : vector<8x32xbf16>, vector<8x32xbf16>, vector<8x32xbf16>, vector<8x32xbf16>, vector<8x32xbf16>, vector<8x32xbf16>, vector<8x32xbf16>, vector<8x32xbf16>, vector<8x32xbf16> -> vector<8x288xbf16>
    %198 = vector.extract_strided_slice %8 {offsets = [5, 0, 0, 0], sizes = [1, 1, 8, 32], strides = [1, 1, 1, 1]} : vector<8x8x8x32xbf16> to vector<1x1x8x32xbf16>
    %199 = vector.shape_cast %198 : vector<1x1x8x32xbf16> to vector<8x32xbf16>
    %200 = vector.extract_strided_slice %8 {offsets = [5, 1, 0, 0], sizes = [1, 1, 8, 32], strides = [1, 1, 1, 1]} : vector<8x8x8x32xbf16> to vector<1x1x8x32xbf16>
    %201 = vector.shape_cast %200 : vector<1x1x8x32xbf16> to vector<8x32xbf16>
    %202 = vector.extract_strided_slice %8 {offsets = [6, 0, 0, 0], sizes = [1, 1, 8, 32], strides = [1, 1, 1, 1]} : vector<8x8x8x32xbf16> to vector<1x1x8x32xbf16>
    %203 = vector.shape_cast %202 : vector<1x1x8x32xbf16> to vector<8x32xbf16>
    %204 = vector.extract_strided_slice %8 {offsets = [6, 1, 0, 0], sizes = [1, 1, 8, 32], strides = [1, 1, 1, 1]} : vector<8x8x8x32xbf16> to vector<1x1x8x32xbf16>
    %205 = vector.shape_cast %204 : vector<1x1x8x32xbf16> to vector<8x32xbf16>
    %206 = vector.extract_strided_slice %8 {offsets = [7, 0, 0, 0], sizes = [1, 1, 8, 32], strides = [1, 1, 1, 1]} : vector<8x8x8x32xbf16> to vector<1x1x8x32xbf16>
    %207 = vector.shape_cast %206 : vector<1x1x8x32xbf16> to vector<8x32xbf16>
    %208 = vector.extract_strided_slice %8 {offsets = [7, 1, 0, 0], sizes = [1, 1, 8, 32], strides = [1, 1, 1, 1]} : vector<8x8x8x32xbf16> to vector<1x1x8x32xbf16>
    %209 = vector.shape_cast %208 : vector<1x1x8x32xbf16> to vector<8x32xbf16>
    %210 = tpu.concatenate %9, %199, %201, %9, %203, %205, %9, %207, %209 in 1 : vector<8x32xbf16>, vector<8x32xbf16>, vector<8x32xbf16>, vector<8x32xbf16>, vector<8x32xbf16>, vector<8x32xbf16>, vector<8x32xbf16>, vector<8x32xbf16>, vector<8x32xbf16> -> vector<8x288xbf16>
    %211 = vector.extract_strided_slice %8 {offsets = [5, 1, 0, 0], sizes = [1, 1, 8, 32], strides = [1, 1, 1, 1]} : vector<8x8x8x32xbf16> to vector<1x1x8x32xbf16>
    %212 = vector.shape_cast %211 : vector<1x1x8x32xbf16> to vector<8x32xbf16>
    %213 = vector.extract_strided_slice %8 {offsets = [5, 2, 0, 0], sizes = [1, 1, 8, 32], strides = [1, 1, 1, 1]} : vector<8x8x8x32xbf16> to vector<1x1x8x32xbf16>
    %214 = vector.shape_cast %213 : vector<1x1x8x32xbf16> to vector<8x32xbf16>
    %215 = vector.extract_strided_slice %8 {offsets = [5, 3, 0, 0], sizes = [1, 1, 8, 32], strides = [1, 1, 1, 1]} : vector<8x8x8x32xbf16> to vector<1x1x8x32xbf16>
    %216 = vector.shape_cast %215 : vector<1x1x8x32xbf16> to vector<8x32xbf16>
    %217 = vector.extract_strided_slice %8 {offsets = [6, 1, 0, 0], sizes = [1, 1, 8, 32], strides = [1, 1, 1, 1]} : vector<8x8x8x32xbf16> to vector<1x1x8x32xbf16>
    %218 = vector.shape_cast %217 : vector<1x1x8x32xbf16> to vector<8x32xbf16>
    %219 = vector.extract_strided_slice %8 {offsets = [6, 2, 0, 0], sizes = [1, 1, 8, 32], strides = [1, 1, 1, 1]} : vector<8x8x8x32xbf16> to vector<1x1x8x32xbf16>
    %220 = vector.shape_cast %219 : vector<1x1x8x32xbf16> to vector<8x32xbf16>
    %221 = vector.extract_strided_slice %8 {offsets = [6, 3, 0, 0], sizes = [1, 1, 8, 32], strides = [1, 1, 1, 1]} : vector<8x8x8x32xbf16> to vector<1x1x8x32xbf16>
    %222 = vector.shape_cast %221 : vector<1x1x8x32xbf16> to vector<8x32xbf16>
    %223 = vector.extract_strided_slice %8 {offsets = [7, 1, 0, 0], sizes = [1, 1, 8, 32], strides = [1, 1, 1, 1]} : vector<8x8x8x32xbf16> to vector<1x1x8x32xbf16>
    %224 = vector.shape_cast %223 : vector<1x1x8x32xbf16> to vector<8x32xbf16>
    %225 = vector.extract_strided_slice %8 {offsets = [7, 2, 0, 0], sizes = [1, 1, 8, 32], strides = [1, 1, 1, 1]} : vector<8x8x8x32xbf16> to vector<1x1x8x32xbf16>
    %226 = vector.shape_cast %225 : vector<1x1x8x32xbf16> to vector<8x32xbf16>
    %227 = vector.extract_strided_slice %8 {offsets = [7, 3, 0, 0], sizes = [1, 1, 8, 32], strides = [1, 1, 1, 1]} : vector<8x8x8x32xbf16> to vector<1x1x8x32xbf16>
    %228 = vector.shape_cast %227 : vector<1x1x8x32xbf16> to vector<8x32xbf16>
    %229 = tpu.concatenate %212, %214, %216, %218, %220, %222, %224, %226, %228 in 1 : vector<8x32xbf16>, vector<8x32xbf16>, vector<8x32xbf16>, vector<8x32xbf16>, vector<8x32xbf16>, vector<8x32xbf16>, vector<8x32xbf16>, vector<8x32xbf16>, vector<8x32xbf16> -> vector<8x288xbf16>
    %230 = vector.extract_strided_slice %8 {offsets = [5, 3, 0, 0], sizes = [1, 1, 8, 32], strides = [1, 1, 1, 1]} : vector<8x8x8x32xbf16> to vector<1x1x8x32xbf16>
    %231 = vector.shape_cast %230 : vector<1x1x8x32xbf16> to vector<8x32xbf16>
    %232 = vector.extract_strided_slice %8 {offsets = [5, 4, 0, 0], sizes = [1, 1, 8, 32], strides = [1, 1, 1, 1]} : vector<8x8x8x32xbf16> to vector<1x1x8x32xbf16>
    %233 = vector.shape_cast %232 : vector<1x1x8x32xbf16> to vector<8x32xbf16>
    %234 = vector.extract_strided_slice %8 {offsets = [5, 5, 0, 0], sizes = [1, 1, 8, 32], strides = [1, 1, 1, 1]} : vector<8x8x8x32xbf16> to vector<1x1x8x32xbf16>
    %235 = vector.shape_cast %234 : vector<1x1x8x32xbf16> to vector<8x32xbf16>
    %236 = vector.extract_strided_slice %8 {offsets = [6, 3, 0, 0], sizes = [1, 1, 8, 32], strides = [1, 1, 1, 1]} : vector<8x8x8x32xbf16> to vector<1x1x8x32xbf16>
    %237 = vector.shape_cast %236 : vector<1x1x8x32xbf16> to vector<8x32xbf16>
    %238 = vector.extract_strided_slice %8 {offsets = [6, 4, 0, 0], sizes = [1, 1, 8, 32], strides = [1, 1, 1, 1]} : vector<8x8x8x32xbf16> to vector<1x1x8x32xbf16>
    %239 = vector.shape_cast %238 : vector<1x1x8x32xbf16> to vector<8x32xbf16>
    %240 = vector.extract_strided_slice %8 {offsets = [6, 5, 0, 0], sizes = [1, 1, 8, 32], strides = [1, 1, 1, 1]} : vector<8x8x8x32xbf16> to vector<1x1x8x32xbf16>
    %241 = vector.shape_cast %240 : vector<1x1x8x32xbf16> to vector<8x32xbf16>
    %242 = vector.extract_strided_slice %8 {offsets = [7, 3, 0, 0], sizes = [1, 1, 8, 32], strides = [1, 1, 1, 1]} : vector<8x8x8x32xbf16> to vector<1x1x8x32xbf16>
    %243 = vector.shape_cast %242 : vector<1x1x8x32xbf16> to vector<8x32xbf16>
    %244 = vector.extract_strided_slice %8 {offsets = [7, 4, 0, 0], sizes = [1, 1, 8, 32], strides = [1, 1, 1, 1]} : vector<8x8x8x32xbf16> to vector<1x1x8x32xbf16>
    %245 = vector.shape_cast %244 : vector<1x1x8x32xbf16> to vector<8x32xbf16>
    %246 = vector.extract_strided_slice %8 {offsets = [7, 5, 0, 0], sizes = [1, 1, 8, 32], strides = [1, 1, 1, 1]} : vector<8x8x8x32xbf16> to vector<1x1x8x32xbf16>
    %247 = vector.shape_cast %246 : vector<1x1x8x32xbf16> to vector<8x32xbf16>
    %248 = tpu.concatenate %231, %233, %235, %237, %239, %241, %243, %245, %247 in 1 : vector<8x32xbf16>, vector<8x32xbf16>, vector<8x32xbf16>, vector<8x32xbf16>, vector<8x32xbf16>, vector<8x32xbf16>, vector<8x32xbf16>, vector<8x32xbf16>, vector<8x32xbf16> -> vector<8x288xbf16>
    %249 = vector.extract_strided_slice %8 {offsets = [5, 5, 0, 0], sizes = [1, 1, 8, 32], strides = [1, 1, 1, 1]} : vector<8x8x8x32xbf16> to vector<1x1x8x32xbf16>
    %250 = vector.shape_cast %249 : vector<1x1x8x32xbf16> to vector<8x32xbf16>
    %251 = vector.extract_strided_slice %8 {offsets = [5, 6, 0, 0], sizes = [1, 1, 8, 32], strides = [1, 1, 1, 1]} : vector<8x8x8x32xbf16> to vector<1x1x8x32xbf16>
    %252 = vector.shape_cast %251 : vector<1x1x8x32xbf16> to vector<8x32xbf16>
    %253 = vector.extract_strided_slice %8 {offsets = [5, 7, 0, 0], sizes = [1, 1, 8, 32], strides = [1, 1, 1, 1]} : vector<8x8x8x32xbf16> to vector<1x1x8x32xbf16>
    %254 = vector.shape_cast %253 : vector<1x1x8x32xbf16> to vector<8x32xbf16>
    %255 = vector.extract_strided_slice %8 {offsets = [6, 5, 0, 0], sizes = [1, 1, 8, 32], strides = [1, 1, 1, 1]} : vector<8x8x8x32xbf16> to vector<1x1x8x32xbf16>
    %256 = vector.shape_cast %255 : vector<1x1x8x32xbf16> to vector<8x32xbf16>
    %257 = vector.extract_strided_slice %8 {offsets = [6, 6, 0, 0], sizes = [1, 1, 8, 32], strides = [1, 1, 1, 1]} : vector<8x8x8x32xbf16> to vector<1x1x8x32xbf16>
    %258 = vector.shape_cast %257 : vector<1x1x8x32xbf16> to vector<8x32xbf16>
    %259 = vector.extract_strided_slice %8 {offsets = [6, 7, 0, 0], sizes = [1, 1, 8, 32], strides = [1, 1, 1, 1]} : vector<8x8x8x32xbf16> to vector<1x1x8x32xbf16>
    %260 = vector.shape_cast %259 : vector<1x1x8x32xbf16> to vector<8x32xbf16>
    %261 = vector.extract_strided_slice %8 {offsets = [7, 5, 0, 0], sizes = [1, 1, 8, 32], strides = [1, 1, 1, 1]} : vector<8x8x8x32xbf16> to vector<1x1x8x32xbf16>
    %262 = vector.shape_cast %261 : vector<1x1x8x32xbf16> to vector<8x32xbf16>
    %263 = vector.extract_strided_slice %8 {offsets = [7, 6, 0, 0], sizes = [1, 1, 8, 32], strides = [1, 1, 1, 1]} : vector<8x8x8x32xbf16> to vector<1x1x8x32xbf16>
    %264 = vector.shape_cast %263 : vector<1x1x8x32xbf16> to vector<8x32xbf16>
    %265 = vector.extract_strided_slice %8 {offsets = [7, 7, 0, 0], sizes = [1, 1, 8, 32], strides = [1, 1, 1, 1]} : vector<8x8x8x32xbf16> to vector<1x1x8x32xbf16>
    %266 = vector.shape_cast %265 : vector<1x1x8x32xbf16> to vector<8x32xbf16>
    %267 = tpu.concatenate %250, %252, %254, %256, %258, %260, %262, %264, %266 in 1 : vector<8x32xbf16>, vector<8x32xbf16>, vector<8x32xbf16>, vector<8x32xbf16>, vector<8x32xbf16>, vector<8x32xbf16>, vector<8x32xbf16>, vector<8x32xbf16>, vector<8x32xbf16> -> vector<8x288xbf16>
    %268 = tpu.concatenate %18, %31, %44, %57, %70, %89, %108, %127, %140, %159, %178, %197, %210, %229, %248, %267 in 0 : vector<8x288xbf16>, vector<8x288xbf16>, vector<8x288xbf16>, vector<8x288xbf16>, vector<8x288xbf16>, vector<8x288xbf16>, vector<8x288xbf16>, vector<8x288xbf16>, vector<8x288xbf16>, vector<8x288xbf16>, vector<8x288xbf16>, vector<8x288xbf16>, vector<8x288xbf16>, vector<8x288xbf16>, vector<8x288xbf16>, vector<8x288xbf16> -> vector<128x288xbf16>
    %c0_7 = arith.constant 0 : index
    %c0_8 = arith.constant 0 : index
    %269 = vector.load %arg4[%c0_7, %c0_8] : memref<288x64xbf16, #tpu.memory_space<vmem>>, vector<288x64xbf16>
    %cst_9 = arith.constant dense<0.000000e+00> : vector<128x64xf32>
    %270 = tpu.matmul %268, %269, %cst_9 {dimension_numbers = #tpu.dot_dimension_numbers<[1], [0], [0], [1], [0, 0, 1, 1], [], []>} : vector<128x288xbf16>, vector<288x64xbf16>, vector<128x64xf32> -> vector<128x64xf32>
    %c0_10 = arith.constant 0 : index
    %c0_11 = arith.constant 0 : index
    %271 = vector.load %arg5[%c0_10, %c0_11] : memref<1x64xf32, #tpu.memory_space<vmem>>, vector<1x64xf32>
    %272 = vector.broadcast %271 : vector<1x64xf32> to vector<128x64xf32>
    %273 = arith.addf %270, %272 : vector<128x64xf32>
    %274 = arith.truncf %273 : vector<128x64xf32> to vector<128x64xbf16>
    %275 = vector.shape_cast %274 : vector<128x64xbf16> to vector<4x4x8x64xbf16>
    %cst_12 = arith.constant 0.000000e+00 : bf16
    %276 = vector.broadcast %cst_12 : bf16 to vector<8x64xbf16>
    %277 = vector.extract_strided_slice %275 {offsets = [0, 0, 0, 0], sizes = [1, 1, 8, 64], strides = [1, 1, 1, 1]} : vector<4x4x8x64xbf16> to vector<1x1x8x64xbf16>
    %278 = vector.shape_cast %277 : vector<1x1x8x64xbf16> to vector<8x64xbf16>
    %279 = vector.extract_strided_slice %275 {offsets = [0, 1, 0, 0], sizes = [1, 1, 8, 64], strides = [1, 1, 1, 1]} : vector<4x4x8x64xbf16> to vector<1x1x8x64xbf16>
    %280 = vector.shape_cast %279 : vector<1x1x8x64xbf16> to vector<8x64xbf16>
    %281 = vector.extract_strided_slice %275 {offsets = [1, 0, 0, 0], sizes = [1, 1, 8, 64], strides = [1, 1, 1, 1]} : vector<4x4x8x64xbf16> to vector<1x1x8x64xbf16>
    %282 = vector.shape_cast %281 : vector<1x1x8x64xbf16> to vector<8x64xbf16>
    %283 = vector.extract_strided_slice %275 {offsets = [1, 1, 0, 0], sizes = [1, 1, 8, 64], strides = [1, 1, 1, 1]} : vector<4x4x8x64xbf16> to vector<1x1x8x64xbf16>
    %284 = vector.shape_cast %283 : vector<1x1x8x64xbf16> to vector<8x64xbf16>
    %285 = tpu.concatenate %276, %276, %276, %276, %278, %280, %276, %282, %284 in 1 : vector<8x64xbf16>, vector<8x64xbf16>, vector<8x64xbf16>, vector<8x64xbf16>, vector<8x64xbf16>, vector<8x64xbf16>, vector<8x64xbf16>, vector<8x64xbf16>, vector<8x64xbf16> -> vector<8x576xbf16>
    %286 = vector.extract_strided_slice %275 {offsets = [0, 1, 0, 0], sizes = [1, 1, 8, 64], strides = [1, 1, 1, 1]} : vector<4x4x8x64xbf16> to vector<1x1x8x64xbf16>
    %287 = vector.shape_cast %286 : vector<1x1x8x64xbf16> to vector<8x64xbf16>
    %288 = vector.extract_strided_slice %275 {offsets = [0, 2, 0, 0], sizes = [1, 1, 8, 64], strides = [1, 1, 1, 1]} : vector<4x4x8x64xbf16> to vector<1x1x8x64xbf16>
    %289 = vector.shape_cast %288 : vector<1x1x8x64xbf16> to vector<8x64xbf16>
    %290 = vector.extract_strided_slice %275 {offsets = [0, 3, 0, 0], sizes = [1, 1, 8, 64], strides = [1, 1, 1, 1]} : vector<4x4x8x64xbf16> to vector<1x1x8x64xbf16>
    %291 = vector.shape_cast %290 : vector<1x1x8x64xbf16> to vector<8x64xbf16>
    %292 = vector.extract_strided_slice %275 {offsets = [1, 1, 0, 0], sizes = [1, 1, 8, 64], strides = [1, 1, 1, 1]} : vector<4x4x8x64xbf16> to vector<1x1x8x64xbf16>
    %293 = vector.shape_cast %292 : vector<1x1x8x64xbf16> to vector<8x64xbf16>
    %294 = vector.extract_strided_slice %275 {offsets = [1, 2, 0, 0], sizes = [1, 1, 8, 64], strides = [1, 1, 1, 1]} : vector<4x4x8x64xbf16> to vector<1x1x8x64xbf16>
    %295 = vector.shape_cast %294 : vector<1x1x8x64xbf16> to vector<8x64xbf16>
    %296 = vector.extract_strided_slice %275 {offsets = [1, 3, 0, 0], sizes = [1, 1, 8, 64], strides = [1, 1, 1, 1]} : vector<4x4x8x64xbf16> to vector<1x1x8x64xbf16>
    %297 = vector.shape_cast %296 : vector<1x1x8x64xbf16> to vector<8x64xbf16>
    %298 = tpu.concatenate %276, %276, %276, %287, %289, %291, %293, %295, %297 in 1 : vector<8x64xbf16>, vector<8x64xbf16>, vector<8x64xbf16>, vector<8x64xbf16>, vector<8x64xbf16>, vector<8x64xbf16>, vector<8x64xbf16>, vector<8x64xbf16>, vector<8x64xbf16> -> vector<8x576xbf16>
    %299 = vector.extract_strided_slice %275 {offsets = [1, 0, 0, 0], sizes = [1, 1, 8, 64], strides = [1, 1, 1, 1]} : vector<4x4x8x64xbf16> to vector<1x1x8x64xbf16>
    %300 = vector.shape_cast %299 : vector<1x1x8x64xbf16> to vector<8x64xbf16>
    %301 = vector.extract_strided_slice %275 {offsets = [1, 1, 0, 0], sizes = [1, 1, 8, 64], strides = [1, 1, 1, 1]} : vector<4x4x8x64xbf16> to vector<1x1x8x64xbf16>
    %302 = vector.shape_cast %301 : vector<1x1x8x64xbf16> to vector<8x64xbf16>
    %303 = vector.extract_strided_slice %275 {offsets = [2, 0, 0, 0], sizes = [1, 1, 8, 64], strides = [1, 1, 1, 1]} : vector<4x4x8x64xbf16> to vector<1x1x8x64xbf16>
    %304 = vector.shape_cast %303 : vector<1x1x8x64xbf16> to vector<8x64xbf16>
    %305 = vector.extract_strided_slice %275 {offsets = [2, 1, 0, 0], sizes = [1, 1, 8, 64], strides = [1, 1, 1, 1]} : vector<4x4x8x64xbf16> to vector<1x1x8x64xbf16>
    %306 = vector.shape_cast %305 : vector<1x1x8x64xbf16> to vector<8x64xbf16>
    %307 = vector.extract_strided_slice %275 {offsets = [3, 0, 0, 0], sizes = [1, 1, 8, 64], strides = [1, 1, 1, 1]} : vector<4x4x8x64xbf16> to vector<1x1x8x64xbf16>
    %308 = vector.shape_cast %307 : vector<1x1x8x64xbf16> to vector<8x64xbf16>
    %309 = vector.extract_strided_slice %275 {offsets = [3, 1, 0, 0], sizes = [1, 1, 8, 64], strides = [1, 1, 1, 1]} : vector<4x4x8x64xbf16> to vector<1x1x8x64xbf16>
    %310 = vector.shape_cast %309 : vector<1x1x8x64xbf16> to vector<8x64xbf16>
    %311 = tpu.concatenate %276, %300, %302, %276, %304, %306, %276, %308, %310 in 1 : vector<8x64xbf16>, vector<8x64xbf16>, vector<8x64xbf16>, vector<8x64xbf16>, vector<8x64xbf16>, vector<8x64xbf16>, vector<8x64xbf16>, vector<8x64xbf16>, vector<8x64xbf16> -> vector<8x576xbf16>
    %312 = vector.extract_strided_slice %275 {offsets = [1, 1, 0, 0], sizes = [1, 1, 8, 64], strides = [1, 1, 1, 1]} : vector<4x4x8x64xbf16> to vector<1x1x8x64xbf16>
    %313 = vector.shape_cast %312 : vector<1x1x8x64xbf16> to vector<8x64xbf16>
    %314 = vector.extract_strided_slice %275 {offsets = [1, 2, 0, 0], sizes = [1, 1, 8, 64], strides = [1, 1, 1, 1]} : vector<4x4x8x64xbf16> to vector<1x1x8x64xbf16>
    %315 = vector.shape_cast %314 : vector<1x1x8x64xbf16> to vector<8x64xbf16>
    %316 = vector.extract_strided_slice %275 {offsets = [1, 3, 0, 0], sizes = [1, 1, 8, 64], strides = [1, 1, 1, 1]} : vector<4x4x8x64xbf16> to vector<1x1x8x64xbf16>
    %317 = vector.shape_cast %316 : vector<1x1x8x64xbf16> to vector<8x64xbf16>
    %318 = vector.extract_strided_slice %275 {offsets = [2, 1, 0, 0], sizes = [1, 1, 8, 64], strides = [1, 1, 1, 1]} : vector<4x4x8x64xbf16> to vector<1x1x8x64xbf16>
    %319 = vector.shape_cast %318 : vector<1x1x8x64xbf16> to vector<8x64xbf16>
    %320 = vector.extract_strided_slice %275 {offsets = [2, 2, 0, 0], sizes = [1, 1, 8, 64], strides = [1, 1, 1, 1]} : vector<4x4x8x64xbf16> to vector<1x1x8x64xbf16>
    %321 = vector.shape_cast %320 : vector<1x1x8x64xbf16> to vector<8x64xbf16>
    %322 = vector.extract_strided_slice %275 {offsets = [2, 3, 0, 0], sizes = [1, 1, 8, 64], strides = [1, 1, 1, 1]} : vector<4x4x8x64xbf16> to vector<1x1x8x64xbf16>
    %323 = vector.shape_cast %322 : vector<1x1x8x64xbf16> to vector<8x64xbf16>
    %324 = vector.extract_strided_slice %275 {offsets = [3, 1, 0, 0], sizes = [1, 1, 8, 64], strides = [1, 1, 1, 1]} : vector<4x4x8x64xbf16> to vector<1x1x8x64xbf16>
    %325 = vector.shape_cast %324 : vector<1x1x8x64xbf16> to vector<8x64xbf16>
    %326 = vector.extract_strided_slice %275 {offsets = [3, 2, 0, 0], sizes = [1, 1, 8, 64], strides = [1, 1, 1, 1]} : vector<4x4x8x64xbf16> to vector<1x1x8x64xbf16>
    %327 = vector.shape_cast %326 : vector<1x1x8x64xbf16> to vector<8x64xbf16>
    %328 = vector.extract_strided_slice %275 {offsets = [3, 3, 0, 0], sizes = [1, 1, 8, 64], strides = [1, 1, 1, 1]} : vector<4x4x8x64xbf16> to vector<1x1x8x64xbf16>
    %329 = vector.shape_cast %328 : vector<1x1x8x64xbf16> to vector<8x64xbf16>
    %330 = tpu.concatenate %313, %315, %317, %319, %321, %323, %325, %327, %329 in 1 : vector<8x64xbf16>, vector<8x64xbf16>, vector<8x64xbf16>, vector<8x64xbf16>, vector<8x64xbf16>, vector<8x64xbf16>, vector<8x64xbf16>, vector<8x64xbf16>, vector<8x64xbf16> -> vector<8x576xbf16>
    %331 = tpu.concatenate %285, %298, %311, %330 in 0 : vector<8x576xbf16>, vector<8x576xbf16>, vector<8x576xbf16>, vector<8x576xbf16> -> vector<32x576xbf16>
    %c0_13 = arith.constant 0 : index
    %c0_14 = arith.constant 0 : index
    %332 = vector.load %arg6[%c0_13, %c0_14] : memref<576x128xbf16, #tpu.memory_space<vmem>>, vector<576x128xbf16>
    %cst_15 = arith.constant dense<0.000000e+00> : vector<32x128xf32>
    %333 = tpu.matmul %331, %332, %cst_15 {dimension_numbers = #tpu.dot_dimension_numbers<[1], [0], [0], [1], [0, 0, 1, 1], [], []>} : vector<32x576xbf16>, vector<576x128xbf16>, vector<32x128xf32> -> vector<32x128xf32>
    %c0_16 = arith.constant 0 : index
    %c0_17 = arith.constant 0 : index
    %334 = vector.load %arg7[%c0_16, %c0_17] : memref<1x128xf32, #tpu.memory_space<vmem>>, vector<1x128xf32>
    %335 = vector.broadcast %334 : vector<1x128xf32> to vector<32x128xf32>
    %336 = arith.addf %333, %335 : vector<32x128xf32>
    %337 = arith.truncf %336 : vector<32x128xf32> to vector<32x128xbf16>
    %338 = vector.shape_cast %337 : vector<32x128xbf16> to vector<2x2x8x128xbf16>
    %cst_18 = arith.constant 0.000000e+00 : bf16
    %339 = vector.broadcast %cst_18 : bf16 to vector<8x128xbf16>
    %340 = vector.extract_strided_slice %338 {offsets = [0, 0, 0, 0], sizes = [1, 1, 8, 128], strides = [1, 1, 1, 1]} : vector<2x2x8x128xbf16> to vector<1x1x8x128xbf16>
    %341 = vector.shape_cast %340 : vector<1x1x8x128xbf16> to vector<8x128xbf16>
    %342 = vector.extract_strided_slice %338 {offsets = [0, 1, 0, 0], sizes = [1, 1, 8, 128], strides = [1, 1, 1, 1]} : vector<2x2x8x128xbf16> to vector<1x1x8x128xbf16>
    %343 = vector.shape_cast %342 : vector<1x1x8x128xbf16> to vector<8x128xbf16>
    %344 = vector.extract_strided_slice %338 {offsets = [1, 0, 0, 0], sizes = [1, 1, 8, 128], strides = [1, 1, 1, 1]} : vector<2x2x8x128xbf16> to vector<1x1x8x128xbf16>
    %345 = vector.shape_cast %344 : vector<1x1x8x128xbf16> to vector<8x128xbf16>
    %346 = vector.extract_strided_slice %338 {offsets = [1, 1, 0, 0], sizes = [1, 1, 8, 128], strides = [1, 1, 1, 1]} : vector<2x2x8x128xbf16> to vector<1x1x8x128xbf16>
    %347 = vector.shape_cast %346 : vector<1x1x8x128xbf16> to vector<8x128xbf16>
    %348 = tpu.concatenate %339, %339, %339, %339, %341, %343, %339, %345, %347 in 1 : vector<8x128xbf16>, vector<8x128xbf16>, vector<8x128xbf16>, vector<8x128xbf16>, vector<8x128xbf16>, vector<8x128xbf16>, vector<8x128xbf16>, vector<8x128xbf16>, vector<8x128xbf16> -> vector<8x1152xbf16>
    %349 = vector.extract_strided_slice %338 {offsets = [0, 0, 0, 0], sizes = [1, 1, 8, 128], strides = [1, 1, 1, 1]} : vector<2x2x8x128xbf16> to vector<1x1x8x128xbf16>
    %350 = vector.shape_cast %349 : vector<1x1x8x128xbf16> to vector<8x128xbf16>
    %351 = vector.extract_strided_slice %338 {offsets = [0, 1, 0, 0], sizes = [1, 1, 8, 128], strides = [1, 1, 1, 1]} : vector<2x2x8x128xbf16> to vector<1x1x8x128xbf16>
    %352 = vector.shape_cast %351 : vector<1x1x8x128xbf16> to vector<8x128xbf16>
    %353 = vector.extract_strided_slice %338 {offsets = [1, 0, 0, 0], sizes = [1, 1, 8, 128], strides = [1, 1, 1, 1]} : vector<2x2x8x128xbf16> to vector<1x1x8x128xbf16>
    %354 = vector.shape_cast %353 : vector<1x1x8x128xbf16> to vector<8x128xbf16>
    %355 = vector.extract_strided_slice %338 {offsets = [1, 1, 0, 0], sizes = [1, 1, 8, 128], strides = [1, 1, 1, 1]} : vector<2x2x8x128xbf16> to vector<1x1x8x128xbf16>
    %356 = vector.shape_cast %355 : vector<1x1x8x128xbf16> to vector<8x128xbf16>
    %357 = tpu.concatenate %339, %339, %339, %350, %352, %339, %354, %356, %339 in 1 : vector<8x128xbf16>, vector<8x128xbf16>, vector<8x128xbf16>, vector<8x128xbf16>, vector<8x128xbf16>, vector<8x128xbf16>, vector<8x128xbf16>, vector<8x128xbf16>, vector<8x128xbf16> -> vector<8x1152xbf16>
    %358 = vector.extract_strided_slice %338 {offsets = [0, 0, 0, 0], sizes = [1, 1, 8, 128], strides = [1, 1, 1, 1]} : vector<2x2x8x128xbf16> to vector<1x1x8x128xbf16>
    %359 = vector.shape_cast %358 : vector<1x1x8x128xbf16> to vector<8x128xbf16>
    %360 = vector.extract_strided_slice %338 {offsets = [0, 1, 0, 0], sizes = [1, 1, 8, 128], strides = [1, 1, 1, 1]} : vector<2x2x8x128xbf16> to vector<1x1x8x128xbf16>
    %361 = vector.shape_cast %360 : vector<1x1x8x128xbf16> to vector<8x128xbf16>
    %362 = vector.extract_strided_slice %338 {offsets = [1, 0, 0, 0], sizes = [1, 1, 8, 128], strides = [1, 1, 1, 1]} : vector<2x2x8x128xbf16> to vector<1x1x8x128xbf16>
    %363 = vector.shape_cast %362 : vector<1x1x8x128xbf16> to vector<8x128xbf16>
    %364 = vector.extract_strided_slice %338 {offsets = [1, 1, 0, 0], sizes = [1, 1, 8, 128], strides = [1, 1, 1, 1]} : vector<2x2x8x128xbf16> to vector<1x1x8x128xbf16>
    %365 = vector.shape_cast %364 : vector<1x1x8x128xbf16> to vector<8x128xbf16>
    %366 = tpu.concatenate %339, %359, %361, %339, %363, %365, %339, %339, %339 in 1 : vector<8x128xbf16>, vector<8x128xbf16>, vector<8x128xbf16>, vector<8x128xbf16>, vector<8x128xbf16>, vector<8x128xbf16>, vector<8x128xbf16>, vector<8x128xbf16>, vector<8x128xbf16> -> vector<8x1152xbf16>
    %367 = vector.extract_strided_slice %338 {offsets = [0, 0, 0, 0], sizes = [1, 1, 8, 128], strides = [1, 1, 1, 1]} : vector<2x2x8x128xbf16> to vector<1x1x8x128xbf16>
    %368 = vector.shape_cast %367 : vector<1x1x8x128xbf16> to vector<8x128xbf16>
    %369 = vector.extract_strided_slice %338 {offsets = [0, 1, 0, 0], sizes = [1, 1, 8, 128], strides = [1, 1, 1, 1]} : vector<2x2x8x128xbf16> to vector<1x1x8x128xbf16>
    %370 = vector.shape_cast %369 : vector<1x1x8x128xbf16> to vector<8x128xbf16>
    %371 = vector.extract_strided_slice %338 {offsets = [1, 0, 0, 0], sizes = [1, 1, 8, 128], strides = [1, 1, 1, 1]} : vector<2x2x8x128xbf16> to vector<1x1x8x128xbf16>
    %372 = vector.shape_cast %371 : vector<1x1x8x128xbf16> to vector<8x128xbf16>
    %373 = vector.extract_strided_slice %338 {offsets = [1, 1, 0, 0], sizes = [1, 1, 8, 128], strides = [1, 1, 1, 1]} : vector<2x2x8x128xbf16> to vector<1x1x8x128xbf16>
    %374 = vector.shape_cast %373 : vector<1x1x8x128xbf16> to vector<8x128xbf16>
    %375 = tpu.concatenate %368, %370, %339, %372, %374, %339, %339, %339, %339 in 1 : vector<8x128xbf16>, vector<8x128xbf16>, vector<8x128xbf16>, vector<8x128xbf16>, vector<8x128xbf16>, vector<8x128xbf16>, vector<8x128xbf16>, vector<8x128xbf16>, vector<8x128xbf16> -> vector<8x1152xbf16>
    %376 = tpu.concatenate %348, %357, %366, %375 in 0 : vector<8x1152xbf16>, vector<8x1152xbf16>, vector<8x1152xbf16>, vector<8x1152xbf16> -> vector<32x1152xbf16>
    %c0_19 = arith.constant 0 : index
    %c0_20 = arith.constant 0 : index
    %377 = vector.load %arg8[%c0_19, %c0_20] : memref<1152x256xbf16, #tpu.memory_space<vmem>>, vector<1152x256xbf16>
    %cst_21 = arith.constant dense<0.000000e+00> : vector<32x256xf32>
    %378 = tpu.matmul %376, %377, %cst_21 {dimension_numbers = #tpu.dot_dimension_numbers<[1], [0], [0], [1], [0, 0, 1, 1], [], []>} : vector<32x1152xbf16>, vector<1152x256xbf16>, vector<32x256xf32> -> vector<32x256xf32>
    %c0_22 = arith.constant 0 : index
    %c0_23 = arith.constant 0 : index
    %379 = vector.load %arg9[%c0_22, %c0_23] : memref<1x256xf32, #tpu.memory_space<vmem>>, vector<1x256xf32>
    %380 = vector.broadcast %379 : vector<1x256xf32> to vector<32x256xf32>
    %381 = arith.addf %378, %380 : vector<32x256xf32>
    %382 = vector.shape_cast %381 : vector<32x256xf32> to vector<4x8x256xf32>
    %cst_24 = arith.constant dense<0xFF800000> : vector<8x256xf32>
    %383 = vector.multi_reduction <maximumf>, %382, %cst_24 [0] : vector<4x8x256xf32> to vector<8x256xf32>
    %c0_25 = arith.constant 0 : index
    %c0_26 = arith.constant 0 : index
    %384 = vector.load %arg10[%c0_25, %c0_26] : memref<8x256xf32, #tpu.memory_space<vmem>>, vector<8x256xf32>
    tpu.vector_store %arg10[%c0_25, %c0_26], %383 {strides = array<i32>} : memref<8x256xf32, #tpu.memory_space<vmem>>, vector<8x256xf32>,
    return
  }
  func.func @transform_0(%arg0: i32) -> (i32, i32, i32) {
    %c0_i32 = arith.constant 0 : i32
    %c0_i32_0 = arith.constant 0 : i32
    %c0_i32_1 = arith.constant 0 : i32
    return %c0_i32, %arg0, %c0_i32_0 : i32, i32, i32
  }
  func.func @transform_1(%arg0: i32) -> (i32, i32) {
    %c0_i32 = arith.constant 0 : i32
    %c0_i32_0 = arith.constant 0 : i32
    %c0_i32_1 = arith.constant 0 : i32
    return %c0_i32, %c0_i32_0 : i32, i32
  }
  func.func @transform_2(%arg0: i32) -> (i32, i32) {
    %c0_i32 = arith.constant 0 : i32
    %c0_i32_0 = arith.constant 0 : i32
    %c0_i32_1 = arith.constant 0 : i32
    return %c0_i32, %c0_i32_0 : i32, i32
  }
  func.func @transform_3(%arg0: i32) -> (i32, i32) {
    %c0_i32 = arith.constant 0 : i32
    %c0_i32_0 = arith.constant 0 : i32
    %c0_i32_1 = arith.constant 0 : i32
    return %c0_i32, %c0_i32_0 : i32, i32
  }
  func.func @transform_4(%arg0: i32) -> (i32, i32) {
    %c0_i32 = arith.constant 0 : i32
    %c0_i32_0 = arith.constant 0 : i32
    %c0_i32_1 = arith.constant 0 : i32
    return %c0_i32, %c0_i32_0 : i32, i32
  }
  func.func @transform_5(%arg0: i32) -> (i32, i32) {
    %c0_i32 = arith.constant 0 : i32
    %c0_i32_0 = arith.constant 0 : i32
    %c0_i32_1 = arith.constant 0 : i32
    return %c0_i32, %c0_i32_0 : i32, i32
  }
  func.func @transform_6(%arg0: i32) -> (i32, i32) {
    %c0_i32 = arith.constant 0 : i32
    %c0_i32_0 = arith.constant 0 : i32
    %c0_i32_1 = arith.constant 0 : i32
    return %c0_i32, %c0_i32_0 : i32, i32
  }
  func.func @transform_7(%arg0: i32) -> (i32, i32) {
    %c0_i32 = arith.constant 0 : i32
    %c0_i32_0 = arith.constant 0 : i32
    %c0_i32_1 = arith.constant 0 : i32
    return %c0_i32, %c0_i32_0 : i32, i32
  }
  func.func @transform_8(%arg0: i32) -> (i32, i32) {
    %c0_i32 = arith.constant 0 : i32
    %c0_i32_0 = arith.constant 0 : i32
    %c0_i32_1 = arith.constant 0 : i32
    return %c0_i32, %c0_i32_0 : i32, i32
  }
  func.func @transform_9(%arg0: i32) -> (i32, i32) {
    %c0_i32 = arith.constant 0 : i32
    %c0_i32_0 = arith.constant 0 : i32
    return %arg0, %c0_i32 : i32, i32
  }
}

</mosaic_0001>

<bundles_post_ra>
// kernel: cnn_forward.1
= control target key start
LH: loop header
LB: loop body
LE: loop exit
PB: predicated region body
PF: predicated region fallthrough
CT: control target
= control target key end

     0   :  { %vm284_vm0 = vcmask 293888   ;;  %vm381_vm1 = vcmask 1041408   ;;  %s4531_s30 = smov 96   ;;  %s4532_s10 = smov 32   ;;  %vm1237_vm2 = vcmask 1043456   ;;  %vm840_vm3 = vcmask 261120   ;;  %s5956_s1 = inlined_call_operand.vmem [shape: bf16[36,32], index: 1, kind: input, shape index: {}]   ;;  %s5957_s0 = inlined_call_operand.vmem [shape: bf16[64,8,36], index: 0, kind: input, shape index: {}]   ;;  %s5958_s3 = inlined_call_operand.vmem [shape: bf16[288,64], index: 3, kind: input, shape index: {}]   ;;  %s5959_s2 = inlined_call_operand.vmem [shape: f32[1,32], index: 2, kind: input, shape index: {}]   ;;  %s5960_s5 = inlined_call_operand.vmem [shape: bf16[576,128], index: 5, kind: input, shape index: {}]   ;;  %s5961_s4 = inlined_call_operand.vmem [shape: f32[1,64], index: 4, kind: input, shape index: {}]   ;;  %s5962_s7 = inlined_call_operand.vmem [shape: bf16[1152,256], index: 7, kind: input, shape index: {}]   ;;  %s5963_s6 = inlined_call_operand.vmem [shape: f32[1,128], index: 6, kind: input, shape index: {}]   ;;  %s5964_s8 = inlined_call_operand.vmem [shape: f32[1,256], index: 8, kind: input, shape index: {}]   ;;  %s5965_s9 = inlined_call_operand.vmem [shape: f32[8,256], index: 9, kind: output, shape index: {}]  }
   0x1   :  { %v4226_v0 = vld [vmem:[%s5956_s1] sm:$0xff]   ;;  %v4227_v1 = vld [vmem:[%s5956_s1 + $0x8] sm:$0xff]   ;;  %v4228_v2 = vld [vmem:[%s5956_s1 + $0x10] ss:$0 sps:$4 sm:$0x33]   ;;  %s4533_s23 = smov 64  }
   0x2   :  { %4079 = vmatprep.subr.bf16.mxu1 %v4226_v0  ;;  %v4229_v3 = vld [vmem:[%s5957_s0] sm:$0xff]   ;;  %v383_v4 = vsel %vm381_vm1, %v4228_v2, 0  ;;  %v4230_v5 = vld [vmem:[%s5957_s0 + $0x8] sm:$0xff]   ;;  %v4231_v6 = vld [vmem:[%s5957_s0 + $0x10] sm:$0xff]   ;;  %vm842_vm4 = vcmask 523264   ;;  %vm844_vm5 = vcmask 785408  }
   0x3   :  { %4080 = vmatpush3.bf16.msra.mxu1 %v4226_v0  ;;  %4085 = vmatprep.mubr.msk.bf16.mxu1 %vm284_vm0, %v4229_v3  ;;  %v4232_v7 = vld [vmem:[%s5957_s0 + $0x18] sm:$0xff]   ;;  %v4233_v8 = vld [vmem:[%s5957_s0 + $0x20] sm:$0xff]   ;;  %v4234_v9 = vld [vmem:[%s5957_s0 + $0x28] sm:$0xff]  }
   0x4   :  { %4081 = vmatprep.subr.bf16.mxu1 %v4227_v1  ;;  %v4235_v10 = vld [vmem:[%s5957_s0 + $0x30] sm:$0xff]   ;;  %v4236_v11 = vld [vmem:[%s5957_s0 + $0x38] sm:$0xff]   ;;  %v4237_v12 = vld [vmem:[%s5957_s0 + $0x40] sm:$0xff]  }
   0x5   :  { %v4238_v13 = vld [vmem:[%s5957_s0 + $0x48] sm:$0xff]   ;;  %v4239_v14 = vld [vmem:[%s5957_s0 + $0x50] sm:$0xff]   ;;  %v4240_v15 = vld [vmem:[%s5957_s0 + $0x58] sm:$0xff]  }
   0x6   :  { %v4241_v16 = vld [vmem:[%s5957_s0 + $0x60] sm:$0xff]   ;;  %v4242_v17 = vld [vmem:[%s5957_s0 + $0x68] sm:$0xff]   ;;  %v4243_v18 = vld [vmem:[%s5957_s0 + $0x70] sm:$0xff]  }
   0x7   :  { %4082 = vmatpush3.bf16.msra.mxu1 %v4227_v1  ;;  %v4244_v19 = vld [vmem:[%s5957_s0 + $0x78] sm:$0xff]   ;;  %v4245_v20 = vld [vmem:[%s5957_s0 + $0x80] sm:$0xff]   ;;  %v4246_v21 = vld [vmem:[%s5957_s0 + $0x88] sm:$0xff]  }
   0x8   :  { %4221 = vmatprep.subr.msk.bf16.mxu1 %vm381_vm1, %v4228_v2  ;;  %v4247_v22 = vld [vmem:[%s5957_s0 + $0x90] sm:$0xff]   ;;  %v4248_v23 = vld [vmem:[%s5957_s0 + $0x98] sm:$0xff]   ;;  %v4249_v24 = vld [vmem:[%s5957_s0 + $0xa0] sm:$0xff]  }
   0x9   :  { %v4250_v25 = vld [vmem:[%s5957_s0 + $0xa8] sm:$0xff]   ;;  %v4251_v26 = vld [vmem:[%s5957_s0 + $0xb0] sm:$0xff]   ;;  %v4252_v27 = vld [vmem:[%s5957_s0 + $0xb8] sm:$0xff]  }
   0xa   :  { %v4253_v28 = vld [vmem:[%s5957_s0 + $0xc0] sm:$0xff]   ;;  %v4254_v29 = vld [vmem:[%s5957_s0 + $0xc8] sm:$0xff]   ;;  %v4255_v30 = vld [vmem:[%s5957_s0 + $0xd0] sm:$0xff]  }
   0xb   :  { %4084 = vmatpush3.bf16.msra.mxu1 %v383_v4  ;;  %v4256_v31 = vld [vmem:[%s5957_s0 + $0xd8] sm:$0xff]   ;;  %v4257_v32 = vld [vmem:[%s5957_s0 + $0xe0] sm:$0xff]   ;;  %v4258_v33 = vld [vmem:[%s5957_s0 + $0xe8] sm:$0xff]  }
   0xc   :  { %v4259_v34 = vld [vmem:[%s5957_s0 + $0xf0] sm:$0xff]   ;;  %v4260_v35 = vld [vmem:[%s5957_s0 + $0xf8] sm:$0xff]   ;;  %v4261_v36 = vld [vmem:[%s5958_s3 + $0x40] sm:$0xff]  }
   0xd   :  { %v4262_v37 = vld [vmem:[%s5958_s3] sm:$0xff]   ;;  %3943 = vmatprep.subr.bf16.mxu1 %v4261_v36  ;;  %v4263_v38 = vld [vmem:[%s5958_s3 + $0x48] sm:$0xff]   ;;  %v4265_v40 = vld [vmem:[%s5958_s3 + $0x50] sm:$0xff]  }
   0xe   :  { %4086 = vmatmul.mubr.msk.bf16.vlgmr.msra.gmra.mrb[0].mxu1 %vm284_vm0, %v4230_v5  ;;  %v4264_v39 = vld [vmem:[%s5958_s3 + $0x8] sm:$0xff]   ;;  %v4266_v41 = vld [vmem:[%s5958_s3 + $0x10] sm:$0xff]   ;;  %v4747_v44 = vld [vmem:[%s5959_s2] ss:$0 sm:$0xff] }
   0xf   :  { %4089 = vmatprep.mubr.msk.bf16.mxu1 %vm284_vm0, %v4231_v6  ;;  %3944 = vmatpush3.bf16.msra.mxu1 %v4262_v37  ;;  %v4267_v46 = vld [vmem:[%s5958_s3 + $0x58] sm:$0xff]   ;;  %v4269_v52 = vld [vmem:[%s5958_s3 + $0x60] sm:$0xff]   ;;  %v4271_v58 = vld [vmem:[%s5958_s3 + $0x68] sm:$0xff]  }
  0x10   :  { %3945 = vmatprep.subr.bf16.mxu1 %v4263_v38  ;;  %v4268_v49 = vld [vmem:[%s5958_s3 + $0x18] sm:$0xff]   ;;  %v4270_v53 = vld [vmem:[%s5958_s3 + $0x20] sm:$0xff]   ;;  %v4272_v61 = vld [vmem:[%s5958_s3 + $0x28] sm:$0xff]  }
  0x11   :  { %v4273_v0 = vld [vmem:[%s5958_s3 + $0x70] sm:$0xff]   ;;  %vm4999_vm6 = vmneg %vm1237_vm2 }
  0x12   :  { %v4274_v1 = vld [vmem:[%s5958_s3 + $0x30] sm:$0xff]  }
  0x13   :  { %3946 = vmatpush3.bf16.msra.mxu1 %v4264_v39 }
  0x14   :  { %3947 = vmatprep.subr.bf16.mxu1 %v4265_v40 }
  0x16   :  { %4090 = vmatmul.mubr.msk.bf16.gmra.mrb[4].mxu1 %vm284_vm0, %v4232_v7 }
  0x17   :  { %4093 = vmatprep.mubr.msk.bf16.mxu1 %vm284_vm0, %v4233_v8  ;;  %3948 = vmatpush3.bf16.msra.mxu1 %v4266_v41  ;;  %v4275_v8 = vld [vmem:[%s5958_s3 + $0x78] sm:$0xff]  }
  0x18   :  { %3949 = vmatprep.subr.bf16.mxu1 %v4267_v46 }
  0x1b   :  { %3950 = vmatpush3.bf16.msra.mxu1 %v4268_v49 }
  0x1c   :  { %3951 = vmatprep.subr.bf16.mxu1 %v4269_v52 }
  0x1e   :  { %4094 = vmatmul.mubr.msk.bf16.gmra.mrb[8].mxu1 %vm284_vm0, %v4234_v9 }
  0x1f   :  { %4097 = vmatprep.mubr.msk.bf16.mxu1 %vm284_vm0, %v4235_v10  ;;  %3952 = vmatpush3.bf16.msra.mxu1 %v4270_v53 }
  0x20   :  { %3953 = vmatprep.subr.bf16.mxu1 %v4271_v58 }
  0x23   :  { %3954 = vmatpush3.bf16.msra.mxu1 %v4272_v61 }
  0x24   :  { %3955 = vmatprep.subr.bf16.mxu1 %v4273_v0 }
  0x26   :  { %4098 = vmatmul.mubr.msk.bf16.gmra.mrb[12].mxu1 %vm284_vm0, %v4236_v11  ;;  %v4276_v11 = vld [vmem:[%s5958_s3 + $0x38] sm:$0xff]  }
  0x27   :  { %4101 = vmatprep.mubr.msk.bf16.mxu1 %vm284_vm0, %v4237_v12  ;;  %3956 = vmatpush3.bf16.msra.mxu1 %v4274_v1 }
  0x28   :  { %3957 = vmatprep.subr.bf16.mxu1 %v4275_v8 }
  0x2b   :  { %3958 = vmatpush3.bf16.msra.mxu1 %v4276_v11 }
  0x2e   :  { %4102 = vmatmul.mubr.msk.bf16.gmra.mrb[16].mxu1 %vm284_vm0, %v4238_v13 }
  0x2f   :  { %4105 = vmatprep.mubr.msk.bf16.mxu1 %vm284_vm0, %v4239_v14 }
  0x36   :  { %4106 = vmatmul.mubr.msk.bf16.gmra.mrb[20].mxu1 %vm284_vm0, %v4240_v15 }
  0x37   :  { %4109 = vmatprep.mubr.msk.bf16.mxu1 %vm284_vm0, %v4241_v16 }
  0x3e   :  { %4110 = vmatmul.mubr.msk.bf16.gmra.mrb[24].mxu1 %vm284_vm0, %v4242_v17 }
  0x3f   :  { %4113 = vmatprep.mubr.msk.bf16.mxu1 %vm284_vm0, %v4243_v18 }
  0x46   :  { %4114 = vmatmul.mubr.msk.bf16.gmra.mrb[28].mxu1 %vm284_vm0, %v4244_v19 }
  0x47   :  { %4117 = vmatprep.mubr.msk.bf16.mxu1 %vm284_vm0, %v4245_v20 }
  0x4e   :  { %4118 = vmatmul.mubr.msk.bf16.gmra.mrb[32].mxu1 %vm284_vm0, %v4246_v21 }
  0x4f   :  { %4121 = vmatprep.mubr.msk.bf16.mxu1 %vm284_vm0, %v4247_v22 }
  0x56   :  { %4122 = vmatmul.mubr.msk.bf16.gmra.mrb[36].mxu1 %vm284_vm0, %v4248_v23 }
  0x57   :  { %4125 = vmatprep.mubr.msk.bf16.mxu1 %vm284_vm0, %v4249_v24 }
  0x5e   :  { %4126 = vmatmul.mubr.msk.bf16.gmra.mrb[40].mxu1 %vm284_vm0, %v4250_v25 }
  0x5f   :  { %4129 = vmatprep.mubr.msk.bf16.mxu1 %vm284_vm0, %v4251_v26 }
  0x66   :  { %4130 = vmatmul.mubr.msk.bf16.gmra.mrb[44].mxu1 %vm284_vm0, %v4252_v27 }
  0x67   :  { %4133 = vmatprep.mubr.msk.bf16.mxu1 %vm284_vm0, %v4253_v28 }
  0x6e   :  { %4134 = vmatmul.mubr.msk.bf16.gmra.mrb[48].mxu1 %vm284_vm0, %v4254_v29 }
  0x6f   :  { %4137 = vmatprep.mubr.msk.bf16.mxu1 %vm284_vm0, %v4255_v30 }
  0x76   :  { %4138 = vmatmul.mubr.msk.bf16.gmra.mrb[52].mxu1 %vm284_vm0, %v4256_v31 }
  0x77   :  { %4141 = vmatprep.mubr.msk.bf16.mxu1 %vm284_vm0, %v4257_v32 }
  0x7e   :  { %4142 = vmatmul.mubr.msk.bf16.gmra.mrb[56].mxu1 %vm284_vm0, %v4258_v33 }
  0x7f   :  { %4145 = vmatprep.mubr.msk.bf16.mxu1 %vm284_vm0, %v4259_v34 }
  0x86   :  { %4146 = vmatmul.mubr.msk.bf16.gmra.mrb[60].mxu1 %vm284_vm0, %v4260_v35 }
  0xe1   :  { %v4740_v42 = vpop.f32.mrb[0].mxu1 }
  0xe2   :  { %v4742_v43 = vpop.f32.mrb[1].mxu1 }
  0xe3   :  { %v4088_v45 = vpop.f32.mrb[2].mxu1 }
  0xe4   :  { %v431_v47 = vadd.f32 %v4088_v45, %v4747_v44  ;;  %v422_v48 = vpop.f32.mrb[3].mxu1 }
  0xe5   :  { %v423_v51 = vadd.f32 %v4747_v44, %v422_v48 }
  0xe6   :  { %v3858_v50 = vpack.c.bf16 %v431_v47, %v431_v47 }
  0xe7   :  { %v3856_v55 = vpack.c.bf16 %v423_v51, %v423_v51 }
  0xe8   :  { %871 = vrot.lane.b32.xlu1 %v3858_v50, %s4531_s30  ;;  %855 = vrot.lane.b32.xlu0 %v3858_v50, %s4532_s10 }
  0xe9   :  { %v4765_v54 = vpop.f32.mrb[4].mxu1 }
  0xea   :  { %v4767_v56 = vpop.f32.mrb[5].mxu1 }
  0xeb   :  { %v4092_v57 = vpop.f32.mrb[6].mxu1 }
  0xec   :  { %v447_v59 = vadd.f32 %v4092_v57, %v4747_v44  ;;  %v438_v60 = vpop.f32.mrb[7].mxu1  ;;  %835 = vrot.lane.b32.xlu1 %v3856_v55, %s4532_s10 }
  0xed   :  { %v439_v63 = vadd.f32 %v4747_v44, %v438_v60 }
  0xee   :  { %v3862_v62 = vpack.c.bf16 %v447_v59, %v447_v59 }
  0xef   :  { %v3860_v3 = vpack.c.bf16 %v439_v63, %v439_v63 }
  0xf0   :  { %893 = vrot.lane.b32.xlu0 %v3862_v62, %s4532_s10  ;;  %852 = vrot.lane.b32.xlu1 %v3856_v55, %s4531_s30 }
  0xf1   :  { %v4095_v2 = vpop.f32.mrb[8].mxu1 }
  0xf2   :  { %v460_v4 = vadd.f32 %v4095_v2, %v4747_v44  ;;  %v451_v5 = vpop.f32.mrb[9].mxu1 }
  0xf3   :  { %v452_v6 = vadd.f32 %v4747_v44, %v451_v5  ;;  %v4096_v7 = vpop.f32.mrb[10].mxu1 }
  0xf4   :  { %v3859_v9 = vpack.c.bf16 %v460_v4, %v460_v4  ;;  %v454_v10 = vpop.f32.mrb[11].mxu1  ;;  %874 = vrot.lane.b32.xlu0 %v3860_v3, %s4532_s10  ;;  %890 = vrot.lane.b32.xlu1 %v3860_v3, %s4531_s30  ;;  %v463_v13 = vadd.f32 %v4096_v7, %v4747_v44 }
  0xf5   :  { %v3857_v12 = vpack.c.bf16 %v452_v6, %v452_v6  ;;  %v455_v16 = vadd.f32 %v4747_v44, %v454_v10 }
  0xf6   :  { %v4799_v15 = vpack.c.bf16 %v463_v13, %v463_v13 }
  0xf7   :  { %v4807_v22 = vpack.c.bf16 %v455_v16, %v455_v16 }
  0xf8   :  { %838 = vrot.lane.b32.xlu0 %v3857_v12, %s4531_s30  ;;  %860 = vrot.lane.b32.xlu1 %v3859_v9, %s4531_s30 }
  0xf9   :  { %v4099_v14 = vpop.f32.mrb[12].mxu1 }
  0xfa   :  { %v467_v17 = vpop.f32.mrb[13].mxu1  ;;  %v476_v19 = vadd.f32 %v4099_v14, %v4747_v44 }
  0xfb   :  { %v4100_v18 = vpop.f32.mrb[14].mxu1  ;;  %v468_v20 = vadd.f32 %v4747_v44, %v467_v17 }
  0xfc   :  { %876 = vrot.lane.b32.xlu0 %v4799_v15, %s4533_s23  ;;  %927 = vrot.lane.b32.xlu1 %v3859_v9, %s4532_s10  ;;  %v470_v21 = vpop.f32.mrb[15].mxu1  ;;  %v3863_v23 = vpack.c.bf16 %v476_v19, %v476_v19  ;;  %v479_v29 = vadd.f32 %v4100_v18, %v4747_v44 }
  0xfd   :  { %v3861_v24 = vpack.c.bf16 %v468_v20, %v468_v20  ;;  %v471_v30 = vadd.f32 %v4747_v44, %v470_v21 }
  0xfe   :  { %v4824_v32 = vpack.c.bf16 %v479_v29, %v479_v29  ;;  %v4889_v29 = vld [vmem:[%s5958_s3 + $0x80] sm:$0xff]  }
  0xff   :  { %v4826_v33 = vpack.c.bf16 %v471_v30, %v471_v30  ;;  %4149 = vmatprep.subr.bf16.mxu1 %v4889_v29 }
 0x100   :  { %857 = vrot.lane.b32.xlu0 %v4807_v22, %s4533_s23  ;;  %909 = vrot.lane.b32.xlu1 %v3857_v12, %s4532_s10 }
 0x101   :  { %v4812_v25 = vpop.f32.mrb[16].mxu1 }
 0x102   :  { %v4814_v26 = vpop.f32.mrb[17].mxu1 }
 0x103   :  { %v4104_v27 = vpop.f32.mrb[18].mxu1 }
 0x104   :  { %879 = vrot.lane.b32.xlu0 %v3861_v24, %s4531_s30  ;;  %898 = vrot.lane.b32.xlu1 %v3863_v23, %s4531_s30  ;;  %v486_v28 = vpop.f32.mrb[19].mxu1  ;;  %v495_v34 = vadd.f32 %v4104_v27, %v4747_v44 }
 0x105   :  { %v487_v35 = vadd.f32 %v4747_v44, %v486_v28 }
 0x106   :  { %v3866_v40 = vpack.c.bf16 %v495_v34, %v495_v34 }
 0x107   :  { %v3864_v41 = vpack.c.bf16 %v487_v35, %v487_v35 }
 0x108   :  { %952 = vrot.lane.b32.xlu0 %v3861_v24, %s4532_s10  ;;  %977 = vrot.lane.b32.xlu1 %v3863_v23, %s4532_s10 }
 0x109   :  { %v4822_v31 = vpop.f32.mrb[20].mxu1 }
 0x10a   :  { %v4830_v36 = vpop.f32.mrb[21].mxu1 }
 0x10b   :  { %v4108_v37 = vpop.f32.mrb[22].mxu1 }
 0x10c   :  { %979 = vrot.lane.b32.xlu0 %v4824_v32, %s4533_s23  ;;  %895 = vrot.lane.b32.xlu1 %v4826_v33, %s4533_s23  ;;  %v502_v38 = vpop.f32.mrb[23].mxu1  ;;  %v511_v53 = vadd.f32 %v4108_v37, %v4747_v44 }
 0x10d   :  { %v503_v39 = vadd.f32 %v4747_v44, %v502_v38 }
 0x10e   :  { %v3870_v58 = vpack.c.bf16 %v511_v53, %v511_v53 }
 0x10f   :  { %v3868_v45 = vpack.c.bf16 %v503_v39, %v503_v39 }
 0x110   :  { %932 = vrot.lane.b32.xlu0 %v3866_v40, %s4532_s10  ;;  %912 = vrot.lane.b32.xlu1 %v3864_v41, %s4532_s10 }
 0x111   :  { %v4111_v46 = vpop.f32.mrb[24].mxu1 }
 0x112   :  { %v515_v47 = vpop.f32.mrb[25].mxu1  ;;  %v524_v1 = vadd.f32 %v4111_v46, %v4747_v44 }
 0x113   :  { %v516_v48 = vadd.f32 %v4747_v44, %v515_v47  ;;  %v4112_v49 = vpop.f32.mrb[26].mxu1 }
 0x114   :  { %954 = vrot.lane.b32.xlu0 %v3866_v40, %s4531_s30  ;;  %957 = vrot.lane.b32.xlu1 %v3868_v45, %s4532_s10  ;;  %v527_v50 = vadd.f32 %v4112_v49, %v4747_v44  ;;  %v518_v51 = vpop.f32.mrb[27].mxu1  ;;  %v3867_v4 = vpack.c.bf16 %v524_v1, %v524_v1 }
 0x115   :  { %v3865_v52 = vpack.c.bf16 %v516_v48, %v516_v48  ;;  %v519_v11 = vadd.f32 %v4747_v44, %v518_v51 }
 0x116   :  { %v4844_v55 = vpack.c.bf16 %v527_v50, %v527_v50 }
 0x117   :  { %v4876_v18 = vpack.c.bf16 %v519_v11, %v519_v11 }
 0x118   :  { %929 = vrot.lane.b32.xlu0 %v3864_v41, %s4531_s30  ;;  %915 = vrot.lane.b32.xlu1 %v3865_v52, %s4531_s30 }
 0x119   :  { %v4115_v57 = vpop.f32.mrb[28].mxu1 }
 0x11a   :  { %v540_v59 = vadd.f32 %v4115_v57, %v4747_v44  ;;  %v531_v60 = vpop.f32.mrb[29].mxu1 }
 0x11b   :  { %v4116_v61 = vpop.f32.mrb[30].mxu1  ;;  %v532_v63 = vadd.f32 %v4747_v44, %v531_v60 }
 0x11c   :  { %v3871_v62 = vpack.c.bf16 %v540_v59, %v540_v59  ;;  %984 = vrot.lane.b32.xlu0 %v3870_v58, %s4532_s10  ;;  %959 = vrot.lane.b32.xlu1 %v4844_v55, %s4533_s23  ;;  %v534_v0 = vpop.f32.mrb[31].mxu1  ;;  %v543_v8 = vadd.f32 %v4116_v61, %v4747_v44 }
 0x11d   :  { %v3869_v2 = vpack.c.bf16 %v532_v63, %v532_v63  ;;  %v535_v20 = vadd.f32 %v4747_v44, %v534_v0 }
 0x11e   :  { %v4869_v12 = vpack.c.bf16 %v543_v8, %v543_v8 }
 0x11f   :  { %v4891_v30 = vpack.c.bf16 %v535_v20, %v535_v20 }
 0x120   :  { %981 = vrot.lane.b32.xlu0 %v3868_v45, %s4531_s30  ;;  %989 = vrot.lane.b32.xlu1 %v3871_v62, %s4531_s30 }
 0x121   :  { %v4856_v3 = vpop.f32.mrb[32].mxu1 }
 0x122   :  { %v4858_v5 = vpop.f32.mrb[33].mxu1 }
 0x123   :  { %v4120_v6 = vpop.f32.mrb[34].mxu1 }
 0x124   :  { %937 = vrot.lane.b32.xlu0 %v3867_v4, %s4531_s30  ;;  %962 = vrot.lane.b32.xlu1 %v3869_v2, %s4531_s30  ;;  %v550_v7 = vpop.f32.mrb[35].mxu1  ;;  %v559_v9 = vadd.f32 %v4120_v6, %v4747_v44 }
 0x125   :  { %v551_v21 = vadd.f32 %v4747_v44, %v550_v7 }
 0x126   :  { %v3874_v16 = vpack.c.bf16 %v559_v9, %v559_v9 }
 0x127   :  { %v3872_v34 = vpack.c.bf16 %v551_v21, %v551_v21 }
 0x128   :  { %1023 = vrot.lane.b32.xlu0 %v3867_v4, %s4532_s10  ;;  %1048 = vrot.lane.b32.xlu1 %v3869_v2, %s4532_s10 }
 0x129   :  { %v4866_v10 = vpop.f32.mrb[36].mxu1 }
 0x12a   :  { %v4871_v13 = vpop.f32.mrb[37].mxu1 }
 0x12b   :  { %v4124_v14 = vpop.f32.mrb[38].mxu1 }
 0x12c   :  { %1005 = vrot.lane.b32.xlu0 %v3865_v52, %s4532_s10  ;;  %1075 = vrot.lane.b32.xlu1 %v4869_v12, %s4533_s23  ;;  %v566_v17 = vpop.f32.mrb[39].mxu1  ;;  %v575_v27 = vadd.f32 %v4124_v14, %v4747_v44 }
 0x12d   :  { %v567_v38 = vadd.f32 %v4747_v44, %v566_v17 }
 0x12e   :  { %v3878_v35 = vpack.c.bf16 %v575_v27, %v575_v27 }
 0x12f   :  { %v3876_v47 = vpack.c.bf16 %v567_v38, %v567_v38 }
 0x130   :  { %934 = vrot.lane.b32.xlu0 %v4876_v18, %s4533_s23  ;;  %1028 = vrot.lane.b32.xlu1 %v3874_v16, %s4532_s10 }
 0x131   :  { %v4127_v19 = vpop.f32.mrb[40].mxu1 }
 0x132   :  { %v579_v23 = vpop.f32.mrb[41].mxu1  ;;  %v588_v41 = vadd.f32 %v4127_v19, %v4747_v44 }
 0x133   :  { %v4128_v24 = vpop.f32.mrb[42].mxu1  ;;  %v580_v45 = vadd.f32 %v4747_v44, %v579_v23 }
 0x134   :  { %1073 = vrot.lane.b32.xlu0 %v3871_v62, %s4532_s10  ;;  %1050 = vrot.lane.b32.xlu1 %v3874_v16, %s4531_s30  ;;  %v582_v28 = vpop.f32.mrb[43].mxu1  ;;  %v3875_v48 = vpack.c.bf16 %v588_v41, %v588_v41  ;;  %v591_v51 = vadd.f32 %v4128_v24, %v4747_v44 }
 0x135   :  { %v3873_v49 = vpack.c.bf16 %v580_v45, %v580_v45  ;;  %v583_v62 = vadd.f32 %v4747_v44, %v582_v28 }
 0x136   :  { %v4912_v59 = vpack.c.bf16 %v591_v51, %v591_v51 }
 0x137   :  { %v4925_v4 = vpack.c.bf16 %v583_v62, %v583_v62 }
 0x138   :  { %986 = vrot.lane.b32.xlu0 %v4891_v30, %s4533_s23  ;;  %1025 = vrot.lane.b32.xlu1 %v3872_v34, %s4531_s30 }
 0x139   :  { %v4131_v37 = vpop.f32.mrb[44].mxu1 }
 0x13a   :  { %v595_v39 = vpop.f32.mrb[45].mxu1  ;;  %v604_v57 = vadd.f32 %v4131_v37, %v4747_v44 }
 0x13b   :  { %v4132_v40 = vpop.f32.mrb[46].mxu1  ;;  %v596_v63 = vadd.f32 %v4747_v44, %v595_v39 }
 0x13c   :  { %1008 = vrot.lane.b32.xlu0 %v3872_v34, %s4532_s10  ;;  %1080 = vrot.lane.b32.xlu1 %v3878_v35, %s4532_s10  ;;  %v598_v46 = vpop.f32.mrb[47].mxu1  ;;  %v3879_v60 = vpack.c.bf16 %v604_v57, %v604_v57  ;;  %v607_v7 = vadd.f32 %v4132_v40, %v4747_v44 }
 0x13d   :  { %v3877_v6 = vpack.c.bf16 %v596_v63, %v596_v63  ;;  %v599_v9 = vadd.f32 %v4747_v44, %v598_v46 }
 0x13e   :  { %v4935_v19 = vpack.c.bf16 %v607_v7, %v607_v7 }
 0x13f   :  { %v4938_v21 = vpack.c.bf16 %v599_v9, %v599_v9 }
 0x140   :  { %1053 = vrot.lane.b32.xlu0 %v3876_v47, %s4532_s10  ;;  %1077 = vrot.lane.b32.xlu1 %v3876_v47, %s4531_s30 }
 0x141   :  { %v4904_v50 = vpop.f32.mrb[48].mxu1 }
 0x142   :  { %v4907_v52 = vpop.f32.mrb[49].mxu1 }
 0x143   :  { %v4136_v53 = vpop.f32.mrb[50].mxu1 }
 0x144   :  { %1011 = vrot.lane.b32.xlu0 %v3873_v49, %s4531_s30  ;;  %1033 = vrot.lane.b32.xlu1 %v3875_v48, %s4531_s30  ;;  %v614_v58 = vpop.f32.mrb[51].mxu1  ;;  %v623_v23 = vadd.f32 %v4136_v53, %v4747_v44 }
 0x145   :  { %v615_v24 = vadd.f32 %v4747_v44, %v614_v58 }
 0x146   :  { %v4950_v38 = vpack.c.bf16 %v623_v23, %v623_v23 }
 0x147   :  { %v3880_v39 = vpack.c.bf16 %v615_v24, %v615_v24 }
 0x148   :  { %1055 = vrot.lane.b32.xlu0 %v4912_v59, %s4533_s23  ;;  %1119 = vrot.lane.b32.xlu1 %v3875_v48, %s4532_s10 }
 0x149   :  { %v4917_v61 = vpop.f32.mrb[52].mxu1 }
 0x14a   :  { %v4921_v0 = vpop.f32.mrb[53].mxu1 }
 0x14b   :  { %v4140_v1 = vpop.f32.mrb[54].mxu1 }
 0x14c   :  { %1085 = vrot.lane.b32.xlu0 %v3879_v60, %s4531_s30  ;;  %1101 = vrot.lane.b32.xlu1 %v3873_v49, %s4532_s10  ;;  %v630_v2 = vpop.f32.mrb[55].mxu1  ;;  %v639_v53 = vadd.f32 %v4140_v1, %v4747_v44 }
 0x14d   :  { %v631_v34 = vadd.f32 %v4747_v44, %v630_v2 }
 0x14f   :  { %v3884_v45 = vpack.c.bf16 %v631_v34, %v631_v34  ;;  %v428_v34 = vadd.f32 %v4740_v42, %v4747_v44 }
 0x150   :  { %1058 = vrot.lane.b32.xlu0 %v3877_v6, %s4531_s30  ;;  %1030 = vrot.lane.b32.xlu1 %v4925_v4, %s4533_s23 }
 0x151   :  { %v4143_v8 = vpop.f32.mrb[56].mxu1 }
 0x152   :  { %v643_v11 = vpop.f32.mrb[57].mxu1  ;;  %v652_v62 = vadd.f32 %v4143_v8, %v4747_v44 }
 0x153   :  { %v4144_v14 = vpop.f32.mrb[58].mxu1  ;;  %v644_v46 = vadd.f32 %v4747_v44, %v643_v11 }
 0x154   :  { %1144 = vrot.lane.b32.xlu0 %v3877_v6, %s4532_s10  ;;  %1169 = vrot.lane.b32.xlu1 %v3879_v60, %s4532_s10  ;;  %v655_v16 = vadd.f32 %v4144_v14, %v4747_v44  ;;  %v646_v17 = vpop.f32.mrb[59].mxu1  ;;  %v3886_v6 = vpack.c.bf16 %v639_v53, %v639_v53  ;;  %v3883_v14 = vpack.c.bf16 %v652_v62, %v652_v62 }
 0x155   :  { %v647_v20 = vadd.f32 %v4747_v44, %v646_v17  ;;  %v3881_v63 = vpack.c.bf16 %v644_v46, %v644_v46 }
 0x156   :  { %v3853_v27 = vpack.c.bf16 %v655_v16, %v655_v16 }
 0x157   :  { %v3852_v28 = vpack.c.bf16 %v647_v20, %v647_v20 }
 0x158   :  { %1171 = vrot.lane.b32.xlu0 %v4935_v19, %s4533_s23  ;;  %1082 = vrot.lane.b32.xlu1 %v4938_v21, %s4533_s23 }
 0x159   :  { %v4147_v35 = vpop.f32.mrb[60].mxu1  ;;  %v4948_v37 = vsel %vm1237_vm2, %v3852_v28, %v3853_v27 }
 0x15a   :  { %v4952_v40 = vpop.permute.xlu1 %871  ;;  %v659_v41 = vpop.f32.mrb[61].mxu1  ;;  %v668_v1 = vadd.f32 %v4147_v35, %v4747_v44 }
 0x15b   :  { %v4148_v47 = vpop.f32.mrb[62].mxu1  ;;  %v856_v51 = vpop.permute.xlu0 %855  ;;  %v660_v20 = vadd.f32 %v4747_v44, %v659_v41 }
 0x15c   :  { %1124 = vrot.lane.b32.xlu0 %v4950_v38, %s4532_s10  ;;  %1104 = vrot.lane.b32.xlu1 %v3880_v39, %s4532_s10  ;;  %v671_v48 = vadd.f32 %v4148_v47, %v4747_v44  ;;  %v662_v49 = vpop.f32.mrb[63].mxu1  ;;  %v3887_v17 = vpack.c.bf16 %v668_v1, %v668_v1  ;;  %v436_v1 = vadd.f32 %v4747_v44, %v4767_v56 }
 0x15d   :  { %v663_v58 = vadd.f32 %v4747_v44, %v662_v49  ;;  %v3885_v46 = vpack.c.bf16 %v660_v20, %v660_v20 }
 0x15e   :  { %v836_v57 = vpop.permute.xlu1 %835  ;;  %v3855_v60 = vpack.c.bf16 %v671_v48, %v671_v48 }
 0x15f   :  { %v3854_v2 = vpack.c.bf16 %v663_v58, %v663_v58 }
 0x160   :  { %1121 = vrot.lane.b32.xlu0 %v3880_v39, %s4531_s30  ;;  %1149 = vrot.lane.b32.xlu1 %v3884_v45, %s4532_s10  ;;  %v420_v39 = vadd.f32 %v4747_v44, %v4742_v43 }
 0x161   :  { %v4965_v11 = vsel %vm1237_vm2, %v3854_v2, %v3855_v60 }
 0x162   :  { %v894_v7 = vpop.permute.xlu0 %893  ;;  %v853_v9 = vpop.permute.xlu1 %852  ;;  %v3824_v41 = vpack.c.bf16 %v420_v39, %v420_v39 }
 0x163   :  { %v863_v53 = vsel %vm844_vm5, 0, %v853_v9  ;;  %v4278_v9 = vld [vmem:[%s5958_s3 + $0x88] sm:$0xff]  }
 0x164   :  { %1176 = vrot.lane.b32.xlu0 %v3886_v6, %s4532_s10  ;;  %1107 = vrot.lane.b32.xlu1 %v3881_v63, %s4531_s30  ;;  %v848_v43 = vsel %vm840_vm3, %v3824_v41, %v836_v57  ;;  %v1199_v6 = vrot.slane %v863_v53, 4 }
 0x166   :  { %v875_v8 = vpop.permute.xlu0 %874  ;;  %v891_v16 = vpop.permute.xlu1 %890 }
 0x168   :  { %1129 = vrot.lane.b32.xlu0 %v3883_v14, %s4531_s30  ;;  %1151 = vrot.lane.b32.xlu1 %v3853_v27, %s4533_s23  ;;  %v3825_v27 = vpack.c.bf16 %v428_v34, %v428_v34 }
 0x16a   :  { %v839_v23 = vpop.permute.xlu0 %838  ;;  %v861_v24 = vpop.permute.xlu1 %860  ;;  %v866_v42 = vsel %vm840_vm3, %v3825_v27, %v856_v51 }
 0x16c   :  { %1126 = vrot.lane.b32.xlu0 %v3852_v28, %s4533_s23  ;;  %1181 = vrot.lane.b32.xlu1 %v3887_v17, %s4531_s30 }
 0x16e   :  { %v4979_v35 = vpop.permute.xlu0 %876  ;;  %v4981_v47 = vpop.permute.xlu1 %927 }
 0x170   :  { %1173 = vrot.lane.b32.xlu0 %v3884_v45, %s4531_s30  ;;  %1154 = vrot.lane.b32.xlu1 %v3885_v46, %s4531_s30  ;;  %v849_v45 = vsel %vm842_vm4, %v848_v43, 0 }
 0x171   :  { %v851_v60 = vsel %vm844_vm5, %v849_v45, %v839_v23 }
 0x172   :  { %v4987_v48 = vpop.permute.xlu0 %857  ;;  %v4989_v28 = vpop.permute.xlu1 %909 }
 0x173   :  { %v868_v49 = vsel %vm842_vm4, %v866_v42, %v4987_v48 }
 0x174   :  { %v870_v58 = vsel %vm844_vm5, %v868_v49, %v861_v24  ;;  %1178 = vrot.lane.b32.xlu0 %v3854_v2, %s4533_s23  ;;  %v444_v2 = vadd.f32 %v4765_v54, %v4747_v44  ;;  %v901_v54 = vsel %vm844_vm5, 0, %v891_v16  ;;  %v3826_v24 = vpack.c.bf16 %v436_v1, %v436_v1 }
 0x175   :  { %v1200_v51 = vrot.slane %v870_v58, 4  ;;  %v1204_v27 = vrot.slane %v901_v54, 4  ;;  %v882_v49 = vsel %vm844_vm5, 0, %v4952_v40  ;;  %v484_v54 = vadd.f32 %v4747_v44, %v4814_v26 }
 0x176   :  { %v880_v57 = vpop.permute.xlu0 %879  ;;  %v899_v62 = vpop.permute.xlu1 %898  ;;  %v3827_v23 = vpack.c.bf16 %v444_v2, %v444_v2  ;;  %v885_v46 = vsel %vm840_vm3, %v3826_v24, %v875_v8  ;;  %v941_v24 = vsel %vm840_vm3, %v4807_v22, %v4981_v47 }
 0x177   :  { %v1242_v14 = vsel %vm1237_vm2, %v851_v60, %v1200_v51  ;;  %v1247_v58 = vsel %vm1237_vm2, %v882_v49, %v1204_v27  ;;  %v3832_v27 = vpack.c.bf16 %v484_v54, %v484_v54 }
 0x178   :  { %1146 = vrot.lane.b32.xlu0 %v4950_v38, %s4531_s30  ;;  %1503 = vmatprep.mubr.bf16.mxu1 %v1242_v14  ;;  %v904_v38 = vsel %vm840_vm3, %v3827_v23, %v894_v7  ;;  %v492_v23 = vadd.f32 %v4812_v25, %v4747_v44 }
 0x179   :  { %3588 = vmatmul.mubr.msk.bf16.vlgmr.msra.gmra.mrb[64].mxu1 %vm4999_vm6, %v1199_v6 }
 0x17a   :  { %v5015_v17 = vpop.permute.xlu0 %952  ;;  %v5017_v20 = vpop.permute.xlu1 %977  ;;  %4150 = vmatpush3.bf16.msra.mxu1 %v4889_v29  ;;  %v887_v29 = vsel %vm842_vm4, %v885_v46, %v4979_v35  ;;  %v3833_v46 = vpack.c.bf16 %v492_v23, %v492_v23 }
 0x17b   :  { %4151 = vmatprep.subr.bf16.mxu1 %v4278_v9  ;;  %v889_v16 = vsel %vm844_vm5, %v887_v29, %v880_v57  ;;  %v918_v29 = vsel %vm840_vm3, 0, %v4989_v28 }
 0x17e   :  { %v980_v34 = vpop.permute.xlu0 %979  ;;  %v5022_v39 = vpop.permute.xlu1 %895  ;;  %4152 = vmatpush3.bf16.msra.mxu1 %v4278_v9 }
 0x17f   :  { %v906_v56 = vsel %vm842_vm4, %v904_v38, %v5022_v39 }
 0x180   :  { %v908_v41 = vsel %vm844_vm5, %v906_v56, %v899_v62 }
 0x181   :  { %v1205_v42 = vrot.slane %v908_v41, 4  ;;  %v942_v41 = vsel %vm842_vm4, %v941_v24, %v4979_v35  ;;  %v919_v35 = vsel %vm842_vm4, %v918_v29, %v4987_v48 }
 0x182   :  { %v933_v43 = vpop.permute.xlu0 %932  ;;  %v913_v7 = vpop.permute.xlu1 %912 }
 0x183   :  { %v1250_v53 = vsel %vm1237_vm2, %v889_v16, %v1205_v42  ;;  %v947_v26 = vsel %vm840_vm3, %v3833_v46, %v933_v43  ;;  %v923_v42 = vsel %vm840_vm3, %v3832_v27, %v913_v7  ;;  %v500_v7 = vadd.f32 %v4747_v44, %v4830_v36 }
 0x184   :  { %1511 = vmatprep.mubr.bf16.mxu1 %v1250_v53  ;;  %v508_v53 = vadd.f32 %v4822_v31, %v4747_v44  ;;  %v920_v46 = vsel %vm844_vm5, %v919_v35, 0  ;;  %v993_v31 = vsel %vm840_vm3, %v4826_v33, %v5017_v20 }
 0x185   :  { %1512 = vmatmul.mubr.bf16.gmra.mrb[68].mxu1 %v1247_v58  ;;  %v995_v27 = vsel %vm842_vm4, %v993_v31, %v980_v34 }
 0x186   :  { %v955_v8 = vpop.permute.xlu0 %954  ;;  %v958_v45 = vpop.permute.xlu1 %957 }
 0x18a   :  { %v930_v51 = vpop.permute.xlu0 %929  ;;  %v916_v60 = vpop.permute.xlu1 %915 }
 0x18b   :  { %v944_v25 = vsel %vm844_vm5, %v942_v41, %v930_v51  ;;  %v924_v51 = vsel %vm842_vm4, %v923_v42, 0 }
 0x18c   :  { %v1209_v58 = vrot.slane %v944_v25, 4  ;;  %v926_v23 = vsel %vm844_vm5, %v924_v51, %v916_v60  ;;  %v3834_v60 = vpack.c.bf16 %v500_v7, %v500_v7 }
 0x18e   :  { %v985_v62 = vpop.permute.xlu0 %984  ;;  %v5035_v6 = vpop.permute.xlu1 %959  ;;  %v1255_v41 = vsel %vm1237_vm2, %v920_v46, %v1209_v58  ;;  %v972_v42 = vsel %vm840_vm3, %v3834_v60, %v958_v45 }
 0x192   :  { %v982_v14 = vpop.permute.xlu0 %981  ;;  %v990_v57 = vpop.permute.xlu1 %989 }
 0x193   :  { %v997_v36 = vsel %vm844_vm5, %v995_v27, %v982_v14  ;;  %v974_v14 = vsel %vm842_vm4, %v972_v42, %v5035_v6 }
 0x196   :  { %v938_v9 = vpop.permute.xlu0 %937  ;;  %v963_v2 = vpop.permute.xlu1 %962 }
 0x197   :  { %v976_v58 = vsel %vm844_vm5, %v974_v14, %v963_v2  ;;  %v548_v2 = vadd.f32 %v4747_v44, %v4858_v5 }
 0x19a   :  { %v5037_v1 = vpop.permute.xlu0 %1023  ;;  %v5039_v40 = vpop.permute.xlu1 %1048 }
 0x19e   :  { %v5048_v38 = vpop.permute.xlu0 %1005  ;;  %v5050_v56 = vpop.permute.xlu1 %1075 }
 0x1a2   :  { %v5059_v16 = vpop.permute.xlu0 %934  ;;  %v1029_v47 = vpop.permute.xlu1 %1028 }
 0x1a3   :  { %v949_v49 = vsel %vm842_vm4, %v947_v26, %v5059_v16 }
 0x1a4   :  { %v951_v28 = vsel %vm844_vm5, %v949_v49, %v938_v9  ;;  %v3835_v9 = vpack.c.bf16 %v508_v53, %v508_v53  ;;  %v1214_v49 = vrot.slane %v997_v36, 4  ;;  %v966_v53 = vsel %vm840_vm3, %v4799_v15, %v5015_v17 }
 0x1a5   :  { %v1210_v43 = vrot.slane %v951_v28, 4  ;;  %v3840_v36 = vpack.c.bf16 %v548_v2, %v548_v2  ;;  %v1062_v2 = vsel %vm840_vm3, %v4844_v55, %v5039_v40 }
 0x1a6   :  { %v1074_v54 = vpop.permute.xlu0 %1073  ;;  %v5072_v24 = vpop.permute.xlu1 %1050  ;;  %v1000_v29 = vsel %vm840_vm3, %v3835_v9, %v985_v62  ;;  %v967_v62 = vsel %vm842_vm4, %v966_v53, %v5022_v39  ;;  %v556_v39 = vadd.f32 %v4856_v3, %v4747_v44 }
 0x1a7   :  { %v1258_v48 = vsel %vm1237_vm2, %v926_v23, %v1210_v43  ;;  %v969_v45 = vsel %vm844_vm5, %v967_v62, %v955_v8  ;;  %v1037_v8 = vsel %vm840_vm3, %v4876_v18, %v5037_v1 }
 0x1a8   :  { %1519 = vmatprep.mubr.bf16.mxu1 %v1258_v48  ;;  %v1038_v60 = vsel %vm842_vm4, %v1037_v8, %v5035_v6 }
 0x1a9   :  { %1520 = vmatmul.mubr.bf16.gmra.mrb[72].mxu1 %v1255_v41  ;;  %v3841_v41 = vpack.c.bf16 %v556_v39, %v556_v39 }
 0x1aa   :  { %v5083_v25 = vpop.permute.xlu0 %986  ;;  %v1026_v26 = vpop.permute.xlu1 %1025 }
 0x1ab   :  { %v1002_v20 = vsel %vm842_vm4, %v1000_v29, %v5083_v25  ;;  %v1040_v29 = vsel %vm844_vm5, %v1038_v60, %v1026_v26 }
 0x1ac   :  { %v1004_v34 = vsel %vm844_vm5, %v1002_v20, %v990_v57  ;;  %v1263_v57 = vsel %vm1237_vm2, %v969_v45, %v1214_v49  ;;  %v1043_v20 = vsel %vm840_vm3, %v3841_v41, %v1029_v47  ;;  %v1014_v49 = vsel %vm840_vm3, 0, %v5048_v38 }
 0x1ad   :  { %v1215_v35 = vrot.slane %v1004_v34, 4  ;;  %v572_v34 = vadd.f32 %v4866_v10, %v4747_v44  ;;  %v1015_v53 = vsel %vm842_vm4, %v1014_v49, %v5059_v16  ;;  %v1219_v6 = vrot.slane %v1040_v29, 4 }
 0x1ae   :  { %v1009_v28 = vpop.permute.xlu0 %1008  ;;  %v1081_v51 = vpop.permute.xlu1 %1080  ;;  %v1089_v47 = vsel %vm840_vm3, %v4891_v30, %v1074_v54  ;;  %v564_v38 = vadd.f32 %v4747_v44, %v4871_v13  ;;  %v1016_v16 = vsel %vm844_vm5, %v1015_v53, 0  ;;  %v620_v53 = vadd.f32 %v4904_v50, %v4747_v44 }
 0x1af   :  { %v1266_v43 = vsel %vm1237_vm2, %v976_v58, %v1215_v35  ;;  %v1019_v3 = vsel %vm840_vm3, %v3840_v36, %v1009_v28  ;;  %v3843_v45 = vpack.c.bf16 %v572_v34, %v572_v34  ;;  %v1091_v54 = vsel %vm842_vm4, %v1089_v47, %v5050_v56 }
 0x1b0   :  { %1527 = vmatprep.mubr.bf16.mxu1 %v1266_v43  ;;  %v1020_v14 = vsel %vm842_vm4, %v1019_v3, 0  ;;  %v1271_v43 = vsel %vm1237_vm2, %v1016_v16, %v1219_v6  ;;  %v3842_v13 = vpack.c.bf16 %v564_v38, %v564_v38  ;;  %v1063_v56 = vsel %vm842_vm4, %v1062_v2, %v5083_v25 }
 0x1b1   :  { %1528 = vmatmul.mubr.bf16.gmra.mrb[76].mxu1 %v1263_v57  ;;  %v1065_v49 = vsel %vm844_vm5, %v1063_v56, %v5072_v24  ;;  %v3849_v24 = vpack.c.bf16 %v620_v53, %v620_v53 }
 0x1b2   :  { %v1054_v17 = vpop.permute.xlu0 %1053  ;;  %v1078_v7 = vpop.permute.xlu1 %1077 }
 0x1b3   :  { %v1093_v57 = vsel %vm844_vm5, %v1091_v54, %v1078_v7  ;;  %v1068_v41 = vsel %vm840_vm3, %v3842_v13, %v1054_v17 }
 0x1b4   :  { %v1224_v7 = vrot.slane %v1093_v57, 4 }
 0x1b6   :  { %v1012_v23 = vpop.permute.xlu0 %1011  ;;  %v1034_v46 = vpop.permute.xlu1 %1033  ;;  %v1279_v25 = vsel %vm1237_vm2, %v1065_v49, %v1224_v7 }
 0x1b7   :  { %v1022_v62 = vsel %vm844_vm5, %v1020_v14, %v1012_v23  ;;  %v1096_v23 = vsel %vm840_vm3, %v3843_v45, %v1081_v51 }
 0x1ba   :  { %v5100_v31 = vpop.permute.xlu0 %1055  ;;  %v1120_v48 = vpop.permute.xlu1 %1119 }
 0x1bb   :  { %v1070_v51 = vsel %vm842_vm4, %v1068_v41, %v5100_v31  ;;  %v1133_v6 = vsel %vm840_vm3, %v4925_v4, %v1120_v48  ;;  %v636_v48 = vadd.f32 %v4917_v61, %v4747_v44 }
 0x1bd   :  { %v3851_v61 = vpack.c.bf16 %v636_v48, %v636_v48 }
 0x1be   :  { %v1086_v9 = vpop.permute.xlu0 %1085  ;;  %v5109_v27 = vpop.permute.xlu1 %1101 }
 0x1c2   :  { %v1059_v42 = vpop.permute.xlu0 %1058  ;;  %v1031_v5 = vpop.permute.xlu1 %1030 }
 0x1c3   :  { %v1045_v1 = vsel %vm842_vm4, %v1043_v20, %v1031_v5  ;;  %v1072_v29 = vsel %vm844_vm5, %v1070_v51, %v1059_v42  ;;  %v612_v42 = vadd.f32 %v4747_v44, %v4907_v52  ;;  %v1110_v52 = vsel %vm840_vm3, 0, %v5109_v27 }
 0x1c4   :  { %v1047_v26 = vsel %vm844_vm5, %v1045_v1, %v1034_v46  ;;  %v1111_v45 = vsel %vm842_vm4, %v1110_v52, %v1031_v5 }
 0x1c5   :  { %v1220_v35 = vrot.slane %v1047_v26, 4  ;;  %v3848_v14 = vpack.c.bf16 %v612_v42, %v612_v42  ;;  %v1261_v42 = vsel %vm1237_vm2, %v4876_v18, %v4844_v55 }
 0x1c6   :  { %v5130_v58 = vpop.permute.xlu0 %1144  ;;  %v5132_v10 = vpop.permute.xlu1 %1169 }
 0x1c7   :  { %v1274_v28 = vsel %vm1237_vm2, %v1022_v62, %v1220_v35  ;;  %v1134_v35 = vsel %vm842_vm4, %v1133_v6, %v5100_v31  ;;  %v1185_v41 = vsel %vm840_vm3, %v4938_v21, %v5132_v10  ;;  %v1158_v10 = vsel %vm840_vm3, %v4912_v59, %v5130_v58 }
 0x1c8   :  { %1535 = vmatprep.mubr.bf16.mxu1 %v1274_v28  ;;  %v1245_v58 = vsel %vm1237_vm2, %v4807_v22, %v4799_v15  ;;  %v1269_v6 = vsel %vm1237_vm2, %v4891_v30, %v4869_v12  ;;  %v1277_v15 = vsel %vm1237_vm2, %v4925_v4, %v4912_v59  ;;  %v1285_v22 = vsel %vm1237_vm2, %v4938_v21, %v4935_v19 }
 0x1c9   :  { %1536 = vmatmul.mubr.bf16.gmra.mrb[80].mxu1 %v1271_v43 }
 0x1ca   :  { %v1172_v46 = vpop.permute.xlu0 %1171  ;;  %v5141_v39 = vpop.permute.xlu1 %1082 }
 0x1cb   :  { %v1098_v8 = vsel %vm842_vm4, %v1096_v23, %v5141_v39  ;;  %v628_v23 = vadd.f32 %v4747_v44, %v4921_v0 }
 0x1cc   :  { %v1100_v36 = vsel %vm844_vm5, %v1098_v8, %v1086_v9  ;;  %v1112_v8 = vsel %vm844_vm5, %v1111_v45, 0  ;;  %v4289_v45 = vld [vmem:[%s5960_s5 + $0x68] sm:$0xff]  }
 0x1cd   :  { %v1225_v60 = vrot.slane %v1100_v36, 4  ;;  %v3850_v7 = vpack.c.bf16 %v628_v23, %v628_v23  ;;  %v1187_v36 = vsel %vm842_vm4, %v1185_v41, %v1172_v46  ;;  %v1159_v46 = vsel %vm842_vm4, %v1158_v10, %v5141_v39 }
 0x1ce   :  { %v1125_v20 = vpop.permute.xlu0 %1124  ;;  %v1105_v3 = vpop.permute.xlu1 %1104  ;;  %v1253_v39 = vsel %vm1237_vm2, %v4826_v33, %v4824_v32 }
 0x1cf   :  { %v1282_v40 = vsel %vm1237_vm2, %v1072_v29, %v1225_v60  ;;  %v1139_v62 = vsel %vm840_vm3, %v3849_v24, %v1125_v20  ;;  %v1115_v16 = vsel %vm840_vm3, %v3848_v14, %v1105_v3  ;;  %v4281_v24 = vld [vmem:[%s5960_s5 + $0x48] sm:$0xff]  }
 0x1d0   :  { %1543 = vmatprep.mubr.bf16.mxu1 %v1282_v40  ;;  %v1116_v43 = vsel %vm842_vm4, %v1115_v16, 0  ;;  %v4282_v14 = vld [vmem:[%s5960_s5 + $0x8] sm:$0xff]   ;;  %v4286_v16 = vld [vmem:[%s5960_s5 + $0x18] sm:$0xff]  }
 0x1d1   :  { %1544 = vmatmul.mubr.bf16.gmra.mrb[84].mxu1 %v1279_v25 }
 0x1d2   :  { %v1122_v17 = vpop.permute.xlu0 %1121  ;;  %v1150_v1 = vpop.permute.xlu1 %1149 }
 0x1d3   :  { %v1136_v38 = vsel %vm844_vm5, %v1134_v35, %v1122_v17  ;;  %v1164_v20 = vsel %vm840_vm3, %v3850_v7, %v1150_v1  ;;  %v4283_v35 = vld [vmem:[%s5960_s5 + $0x50] sm:$0xff]  }
 0x1d4   :  { %v1229_v54 = vrot.slane %v1136_v38, 4  ;;  %v4284_v38 = vld [vmem:[%s5960_s5 + $0x10] sm:$0xff]  }
 0x1d6   :  { %v1177_v9 = vpop.permute.xlu0 %1176  ;;  %v1108_v34 = vpop.permute.xlu1 %1107  ;;  %v1287_v5 = vsel %vm1237_vm2, %v1112_v8, %v1229_v54 }
 0x1d7   :  { %v1118_v2 = vsel %vm844_vm5, %v1116_v43, %v1108_v34  ;;  %v1192_v44 = vsel %vm840_vm3, %v3851_v61, %v1177_v9  ;;  %v4290_v43 = vld [vmem:[%s5960_s5 + $0x28] sm:$0xff]  }
 0x1da   :  { %v1130_v26 = vpop.permute.xlu0 %1129  ;;  %v1152_v47 = vpop.permute.xlu1 %1151 }
 0x1db   :  { %v1166_v40 = vsel %vm842_vm4, %v1164_v20, %v1152_v47 }
 0x1de   :  { %v1127_v50 = vpop.permute.xlu0 %1126  ;;  %v1182_v13 = vpop.permute.xlu1 %1181 }
 0x1df   :  { %v1141_v28 = vsel %vm842_vm4, %v1139_v62, %v1127_v50  ;;  %v4285_v62 = vld [vmem:[%s5960_s5 + $0x58] sm:$0xff]   ;;  %v4287_v50 = vld [vmem:[%s5960_s5 + $0x60] sm:$0xff]  }
 0x1e0   :  { %v1143_v31 = vsel %vm844_vm5, %v1141_v28, %v1130_v26  ;;  %v4288_v28 = vld [vmem:[%s5960_s5 + $0x20] sm:$0xff]  }
 0x1e1   :  { %v1230_v57 = vrot.slane %v1143_v31, 4 }
 0x1e2   :  { %v1174_v27 = vpop.permute.xlu0 %1173  ;;  %v1155_v60 = vpop.permute.xlu1 %1154 }
 0x1e3   :  { %v1290_v56 = vsel %vm1237_vm2, %v1118_v2, %v1230_v57  ;;  %v1189_v51 = vsel %vm844_vm5, %v1187_v36, %v1174_v27  ;;  %v1168_v17 = vsel %vm844_vm5, %v1166_v40, %v1155_v60  ;;  %v4292_v27 = vld [vmem:[%s5960_s5 + $0x30] sm:$0xff]  }
 0x1e4   :  { %1551 = vmatprep.mubr.bf16.mxu1 %v1290_v56  ;;  %v1234_v25 = vrot.slane %v1189_v51, 4  ;;  %v4293_v56 = vld [vmem:[%s5960_s5 + $0x78] sm:$0xff]  }
 0x1e5   :  { %1552 = vmatmul.mubr.bf16.gmra.mrb[88].mxu1 %v1287_v5 }
 0x1e6   :  { %v1179_v0 = vpop.permute.xlu0 %1178 }
 0x1e7   :  { %v1194_v29 = vsel %vm842_vm4, %v1192_v44, %v1179_v0 }
 0x1e8   :  { %v1196_v3 = vsel %vm844_vm5, %v1194_v29, %v1182_v13  ;;  %v4291_v13 = vld [vmem:[%s5960_s5 + $0x70] sm:$0xff]  }
 0x1e9   :  { %v1235_v49 = vrot.slane %v1196_v3, 4 }
 0x1ea   :  { %v1147_v9 = vpop.permute.xlu0 %1146 }
 0x1eb   :  { %v1161_v34 = vsel %vm844_vm5, %v1159_v46, %v1147_v9  ;;  %v1299_v1 = vsel %vm1237_vm2, %v1168_v17, %v1235_v49 }
 0x1ec   :  { %1559 = vmatprep.mubr.bf16.mxu1 %v1299_v1  ;;  %v1296_v53 = vsel %vm1237_vm2, %v1161_v34, %v1234_v25 }
 0x1ed   :  { %1560 = vmatmul.mubr.bf16.gmra.mrb[92].mxu1 %v1296_v53 }
 0x1ee   :  { %4153 = vmatprep.mubr.msk.bf16.mxu1 %vm840_vm3, %v1245_v58 }
 0x1f5   :  { %4154 = vmatmul.mubr.msk.bf16.vlgmr.msra.gmra.mrb[96].mxu1 %vm840_vm3, %v1253_v39 }
 0x1f6   :  { %4157 = vmatprep.mubr.msk.bf16.mxu1 %vm840_vm3, %v1261_v42  ;;  %v4294_v42 = vld [vmem:[%s5960_s5 + $0x38] sm:$0xff]  }
 0x1fd   :  { %4158 = vmatmul.mubr.msk.bf16.gmra.mrb[100].mxu1 %vm840_vm3, %v1269_v6 }
 0x1fe   :  { %4161 = vmatprep.mubr.msk.bf16.mxu1 %vm840_vm3, %v1277_v15 }
 0x205   :  { %4162 = vmatmul.mubr.msk.bf16.gmra.mrb[104].mxu1 %vm840_vm3, %v1285_v22 }
 0x206   :  { %4165 = vmatprep.mubr.msk.bf16.mxu1 %vm840_vm3, %v4948_v37  ;;  %v4279_v37 = vld [vmem:[%s5960_s5 + $0x40] sm:$0xff]  }
 0x207   :  { %4017 = vmatprep.subr.bf16.mxu1 %v4279_v37 }
 0x20d   :  { %4166 = vmatmul.mubr.msk.bf16.gmra.mrb[108].mxu1 %vm840_vm3, %v4965_v11  ;;  %v4280_v11 = vld [vmem:[%s5960_s5] sm:$0xff]  }
 0x20e   :  { %4018 = vmatpush3.bf16.msra.mxu1 %v4280_v11 }
 0x20f   :  { %4019 = vmatprep.subr.bf16.mxu1 %v4281_v24 }
 0x212   :  { %4020 = vmatpush3.bf16.msra.mxu1 %v4282_v14 }
 0x213   :  { %4021 = vmatprep.subr.bf16.mxu1 %v4283_v35 }
 0x216   :  { %4022 = vmatpush3.bf16.msra.mxu1 %v4284_v38 }
 0x217   :  { %4023 = vmatprep.subr.bf16.mxu1 %v4285_v62 }
 0x21a   :  { %4024 = vmatpush3.bf16.msra.mxu1 %v4286_v16 }
 0x21b   :  { %4025 = vmatprep.subr.bf16.mxu1 %v4287_v50 }
 0x21e   :  { %4026 = vmatpush3.bf16.msra.mxu1 %v4288_v28 }
 0x21f   :  { %4027 = vmatprep.subr.bf16.mxu1 %v4289_v45 }
 0x222   :  { %4028 = vmatpush3.bf16.msra.mxu1 %v4290_v43 }
 0x223   :  { %4029 = vmatprep.subr.bf16.mxu1 %v4291_v13 }
 0x226   :  { %4030 = vmatpush3.bf16.msra.mxu1 %v4292_v27 }
 0x227   :  { %4031 = vmatprep.subr.bf16.mxu1 %v4293_v56 }
 0x22a   :  { %4032 = vmatpush3.bf16.msra.mxu1 %v4294_v42 }
 0x24c   :  { %v3959_v32 = vpop.f32.mrb[64].mxu1 }
 0x24d   :  { %v3960_v33 = vpop.f32.mrb[65].mxu1 }
 0x24e   :  { %v5231_v55 = vadd.f32 %v3960_v33, %v3959_v32  ;;  %v3962_v12 = vpop.f32.mrb[66].mxu1  ;;  %v4295_v33 = vld [vmem:[%s5960_s5 + $0xc0] sm:$0xff]  }
 0x24f   :  { %v3963_v18 = vpop.f32.mrb[67].mxu1  ;;  %4045 = vmatprep.subr.bf16.mxu1 %v4295_v33 }
 0x250   :  { %v5233_v30 = vadd.f32 %v3963_v18, %v3962_v12  ;;  %v5305_v12 = vld [vmem:[%s5961_s4] ss:$0 sm:$0xff]  ;;  %v4534_v18 = vmov 0  }
 0x258   :  { %v3965_v59 = vpop.f32.mrb[68].mxu1 }
 0x259   :  { %v3966_v4 = vpop.f32.mrb[69].mxu1 }
 0x25a   :  { %v5235_v26 = vadd.f32 %v3966_v4, %v3965_v59  ;;  %v3968_v19 = vpop.f32.mrb[70].mxu1  ;;  %v5308_v59 = vrot.slane %v4534_v18, 4 }
 0x25b   :  { %v3969_v21 = vpop.f32.mrb[71].mxu1 }
 0x25c   :  { %v5237_v47 = vadd.f32 %v3969_v21, %v3968_v19  ;;  %v1514_v4 = vadd.f32 %v5235_v26, %v5305_v12  ;;  %3805 = vmatprep.mubr.msk.bf16.mxu0 %vm4999_vm6, %v5308_v59  ;;  %v1506_v21 = vadd.f32 %v5231_v55, %v5305_v12  ;;  %v1509_v26 = vadd.f32 %v5233_v30, %v5305_v12 }
 0x25e   :  { %v1517_v24 = vadd.f32 %v5237_v47, %v5305_v12 }
 0x27c   :  { %v3971_v52 = vpop.f32.mrb[72].mxu1 }
 0x27d   :  { %v3972_v48 = vpop.f32.mrb[73].mxu1 }
 0x27e   :  { %v5272_v54 = vadd.f32 %v3972_v48, %v3971_v52  ;;  %v3974_v31 = vpop.f32.mrb[74].mxu1 }
 0x27f   :  { %v3975_v57 = vpop.f32.mrb[75].mxu1 }
 0x280   :  { %v5280_v23 = vadd.f32 %v3975_v57, %v3974_v31  ;;  %v1522_v55 = vadd.f32 %v5272_v54, %v5305_v12 }
 0x282   :  { %v1525_v30 = vadd.f32 %v5280_v23, %v5305_v12 }
 0x284   :  { %v3977_v2 = vpop.f32.mrb[76].mxu1 }
 0x285   :  { %v3978_v8 = vpop.f32.mrb[77].mxu1 }
 0x286   :  { %v3979_v61 = vadd.f32 %v3978_v8, %v3977_v2  ;;  %v3980_v5 = vpop.f32.mrb[78].mxu1 }
 0x287   :  { %v3981_v41 = vpop.f32.mrb[79].mxu1 }
 0x288   :  { %v3982_v7 = vadd.f32 %v3981_v41, %v3980_v5  ;;  %v1530_v52 = vadd.f32 %v3979_v61, %v5305_v12 }
 0x28a   :  { %v1533_v45 = vadd.f32 %v3982_v7, %v5305_v12 }
 0x29c   :  { %v3983_v36 = vpop.f32.mrb[80].mxu1 }
 0x29d   :  { %v3984_v44 = vpop.f32.mrb[81].mxu1 }
 0x29e   :  { %v5288_v0 = vadd.f32 %v3984_v44, %v3983_v36  ;;  %v3986_v51 = vpop.f32.mrb[82].mxu1 }
 0x29f   :  { %v3987_v60 = vpop.f32.mrb[83].mxu1 }
 0x2a0   :  { %v5290_v29 = vadd.f32 %v3987_v60, %v3986_v51  ;;  %v1538_v41 = vadd.f32 %v5288_v0, %v5305_v12 }
 0x2a4   :  { %v3989_v20 = vpop.f32.mrb[84].mxu1 }
 0x2a5   :  { %v3990_v3 = vpop.f32.mrb[85].mxu1 }
 0x2a6   :  { %v3991_v10 = vadd.f32 %v3990_v3, %v3989_v20  ;;  %v3992_v40 = vpop.f32.mrb[86].mxu1  ;;  %v1541_v20 = vadd.f32 %v5290_v29, %v5305_v12 }
 0x2a7   :  { %v3993_v49 = vpop.f32.mrb[87].mxu1 }
 0x2a8   :  { %v3994_v46 = vadd.f32 %v3993_v49, %v3992_v40  ;;  %v1546_v61 = vadd.f32 %v3991_v10, %v5305_v12 }
 0x2aa   :  { %v1549_v44 = vadd.f32 %v3994_v46, %v5305_v12 }
 0x2b8   :  { %v3995_v25 = vpop.f32.mrb[88].mxu1 }
 0x2b9   :  { %v3996_v17 = vpop.f32.mrb[89].mxu1 }
 0x2ba   :  { %v5292_v9 = vadd.f32 %v3996_v17, %v3995_v25  ;;  %v3998_v34 = vpop.f32.mrb[90].mxu1 }
 0x2bb   :  { %v3999_v1 = vpop.f32.mrb[91].mxu1 }
 0x2bc   :  { %v5294_v53 = vadd.f32 %v3999_v1, %v3998_v34  ;;  %v1554_v46 = vadd.f32 %v5292_v9, %v5305_v12 }
 0x2c0   :  { %v4001_v58 = vpop.f32.mrb[92].mxu1 }
 0x2c1   :  { %v4002_v39 = vpop.f32.mrb[93].mxu1 }
 0x2c2   :  { %v4003_v6 = vadd.f32 %v4002_v39, %v4001_v58  ;;  %v4004_v15 = vpop.f32.mrb[94].mxu1 }
 0x2c3   :  { %v4005_v22 = vpop.f32.mrb[95].mxu1 }
 0x2c4   :  { %v4006_v32 = vadd.f32 %v4005_v22, %v4004_v15  ;;  %v1562_v25 = vadd.f32 %v4003_v6, %v5305_v12  ;;  %v1557_v15 = vadd.f32 %v5294_v53, %v5305_v12  ;;  %v4315_v53 = vld [vmem:[%s5962_s7 + $0x4] ss:$8 sps:$4 sm:$0xff]  }
 0x2c5   :  { %3159 = vmatprep.subr.bf16.mxu0 %v4315_v53 }
 0x2c6   :  { %v1565_v58 = vadd.f32 %v4006_v32, %v5305_v12  ;;  %v4317_v12 = vld [vmem:[%s5962_s7] ss:$8 sps:$4 sm:$0xff]  }
 0x2c7   :  { %3160 = vmatpush1.bf16.msra.mxu0 %v4317_v12 }
 0x2c8   :  { %v4155_v19 = vpop.f32.mrb[96].mxu1 }
 0x2c9   :  { %v5317_v37 = vadd.f32 %v4155_v19, %v1514_v4  ;;  %v1602_v11 = vpop.f32.mrb[97].mxu1 }
 0x2ca   :  { %v5321_v14 = vadd.f32 %v1602_v11, %v1506_v21  ;;  %v4156_v35 = vpop.f32.mrb[98].mxu1  ;;  %v4318_v11 = vld [vmem:[%s5962_s7 + $0x14] ss:$8 sps:$4 sm:$0xff]  }
 0x2cb   :  { %v1614_v38 = vadd.f32 %v4156_v35, %v1517_v24  ;;  %v1605_v62 = vpop.f32.mrb[99].mxu1  ;;  %v4320_v24 = vld [vmem:[%s5962_s7 + $0x10] ss:$8 sps:$4 sm:$0xff]   ;;  %3161 = vmatprep.subr.bf16.mxu0 %v4318_v11  ;;  %v4321_v35 = vld [vmem:[%s5962_s7 + $0x24] ss:$8 sps:$4 sm:$0xff]  }
 0x2cc   :  { %v1606_v16 = vadd.f32 %v1605_v62, %v1509_v26  ;;  %3162 = vmatpush1.bf16.msra.mxu0 %v4320_v24  ;;  %v4323_v26 = vld [vmem:[%s5962_s7 + $0x20] ss:$8 sps:$4 sm:$0xff]   ;;  %v4326_v62 = vld [vmem:[%s5962_s7 + $0x30] ss:$8 sps:$4 sm:$0xff]  }
 0x2cd   :  { %v3898_v54 = vpack.c.bf16 %v1614_v38, %v1614_v38  ;;  %3163 = vmatprep.subr.bf16.mxu0 %v4321_v35  ;;  %v4324_v38 = vld [vmem:[%s5962_s7 + $0x34] ss:$8 sps:$4 sm:$0xff]  }
 0x2ce   :  { %v3896_v50 = vpack.c.bf16 %v1606_v16, %v1606_v16  ;;  %v4327_v16 = vld [vmem:[%s5962_s7 + $0x44] ss:$8 sps:$4 sm:$0xff]  }
 0x2d0   :  { %v4159_v28 = vpop.f32.mrb[100].mxu1  ;;  %1706 = vrot.lane.b32.xlu1 %v3896_v50, %s4533_s23  ;;  %3164 = vmatpush1.bf16.msra.mxu0 %v4323_v26  ;;  %v4329_v50 = vld [vmem:[%s5962_s7 + $0x40] ss:$8 sps:$4 sm:$0xff]  }
 0x2d1   :  { %v1627_v48 = vadd.f32 %v4159_v28, %v1530_v52  ;;  %v1618_v47 = vpop.f32.mrb[101].mxu1  ;;  %3165 = vmatprep.subr.bf16.mxu0 %v4324_v38  ;;  %v4330_v52 = vld [vmem:[%s5962_s7 + $0x54] ss:$8 sps:$4 sm:$0xff]   ;;  %v4332_v28 = vld [vmem:[%s5962_s7 + $0x50] ss:$8 sps:$4 sm:$0xff]  }
 0x2d2   :  { %v1619_v31 = vadd.f32 %v1618_v47, %v1522_v55  ;;  %v4160_v43 = vpop.f32.mrb[102].mxu1  ;;  %v4333_v55 = vld [vmem:[%s5962_s7 + $0x64] ss:$8 sps:$4 sm:$0xff]   ;;  %v4336_v47 = vld [vmem:[%s5962_s7 + $0x74] ss:$8 sps:$4 sm:$0xff]  }
 0x2d3   :  { %v3899_v57 = vpack.c.bf16 %v1627_v48, %v1627_v48  ;;  %v1630_v13 = vadd.f32 %v4160_v43, %v1533_v45  ;;  %v1621_v2 = vpop.f32.mrb[103].mxu1  ;;  %v4335_v48 = vld [vmem:[%s5962_s7 + $0x60] ss:$8 sps:$4 sm:$0xff]   ;;  %v4338_v45 = vld [vmem:[%s5962_s7 + $0x70] ss:$8 sps:$4 sm:$0xff]  }
 0x2d4   :  { %v1622_v27 = vadd.f32 %v1621_v2, %v1525_v30  ;;  %v3897_v29 = vpack.c.bf16 %v1619_v31, %v1619_v31  ;;  %3166 = vmatpush1.bf16.msra.mxu0 %v4326_v62  ;;  %v4339_v31 = vld [vmem:[%s5962_s7 + $0x84] ss:$8 sps:$4 sm:$0xff]   ;;  %v4341_v43 = vld [vmem:[%s5962_s7 + $0x80] ss:$8 sps:$4 sm:$0xff]   ;;  %v4342_v30 = vld [vmem:[%s5962_s7 + $0x94] ss:$8 sps:$4 sm:$0xff]  }
 0x2d5   :  { %v5332_v8 = vpack.c.bf16 %v1630_v13, %v1630_v13  ;;  %1720 = vrot.lane.b32.xlu1 %v3899_v57, %s4533_s23  ;;  %3167 = vmatprep.subr.bf16.mxu0 %v4327_v16  ;;  %v4344_v57 = vld [vmem:[%s5962_s7 + $0x90] ss:$8 sps:$4 sm:$0xff]   ;;  %v4345_v13 = vld [vmem:[%s5962_s7 + $0xa4] ss:$8 sps:$4 sm:$0xff]   ;;  %v4347_v2 = vld [vmem:[%s5962_s7 + $0xa0] ss:$8 sps:$4 sm:$0xff]  }
 0x2d6   :  { %v5335_v56 = vpack.c.bf16 %v1622_v27, %v1622_v27  ;;  %v4348_v27 = vld [vmem:[%s5962_s7 + $0xb4] ss:$8 sps:$4 sm:$0xff]   ;;  %v4305_v62 = vld [vmem:[%s5960_s5 + $0xe8] sm:$0xff]  }
 0x2d8   :  { %v4163_v5 = vpop.f32.mrb[104].mxu1  ;;  %v5343_v23 = vsel %vm1237_vm2, %v5335_v56, %v5332_v8  ;;  %3168 = vmatpush1.bf16.msra.mxu0 %v4329_v50  ;;  %v1735_v38 = vsel %vm842_vm4, %v5335_v56, 0 }
 0x2d9   :  { %v5345_v7 = vadd.f32 %v4163_v5, %v1546_v61  ;;  %v1634_v36 = vpop.f32.mrb[105].mxu1  ;;  %1717 = vrot.lane.b32.xlu1 %v3898_v54, %s4533_s23  ;;  %3169 = vmatprep.subr.bf16.mxu0 %v4330_v52  ;;  %v4350_v54 = vld [vmem:[%s5962_s7 + $0xb0] ss:$8 sps:$4 sm:$0xff]   ;;  %v4351_v61 = vld [vmem:[%s5962_s7 + $0xc4] ss:$8 sps:$4 sm:$0xff]  }
 0x2da   :  { %v5349_v51 = vadd.f32 %v1634_v36, %v1538_v41  ;;  %v4164_v60 = vpop.f32.mrb[106].mxu1  ;;  %v4353_v5 = vld [vmem:[%s5962_s7 + $0xc0] ss:$8 sps:$4 sm:$0xff]   ;;  %v4354_v41 = vld [vmem:[%s5962_s7 + $0xd4] ss:$8 sps:$4 sm:$0xff]  }
 0x2db   :  { %v1646_v3 = vadd.f32 %v4164_v60, %v1549_v44  ;;  %v1637_v0 = vpop.f32.mrb[107].mxu1  ;;  %v4356_v36 = vld [vmem:[%s5962_s7 + $0xd0] ss:$8 sps:$4 sm:$0xff]   ;;  %v4357_v44 = vld [vmem:[%s5962_s7 + $0xe4] ss:$8 sps:$4 sm:$0xff]  }
 0x2dc   :  { %v1638_v10 = vadd.f32 %v1637_v0, %v1541_v20  ;;  %3170 = vmatpush1.bf16.msra.mxu0 %v4332_v28  ;;  %v4359_v60 = vld [vmem:[%s5962_s7 + $0xe0] ss:$8 sps:$4 sm:$0xff]   ;;  %v4360_v20 = vld [vmem:[%s5962_s7 + $0xf4] ss:$8 sps:$4 sm:$0xff]  }
 0x2dd   :  { %v3902_v40 = vpack.c.bf16 %v1646_v3, %v1646_v3  ;;  %3171 = vmatprep.subr.bf16.mxu0 %v4333_v55  ;;  %v4362_v3 = vld [vmem:[%s5962_s7 + $0xf0] ss:$8 sps:$4 sm:$0xff]  }
 0x2de   :  { %v3900_v49 = vpack.c.bf16 %v1638_v10, %v1638_v10 }
 0x2df   :  { %1742 = vrot.lane.b32.xlu1 %v3902_v40, %s4533_s23 }
 0x2e0   :  { %v4167_v17 = vpop.f32.mrb[108].mxu1  ;;  %1730 = vrot.lane.b32.xlu0 %v3900_v49, %s4533_s23  ;;  %3172 = vmatpush1.bf16.msra.mxu0 %v4335_v48  ;;  %v4296_v49 = vld [vmem:[%s5960_s5 + $0x80] sm:$0xff]   ;;  %v4307_v48 = vld [vmem:[%s5960_s5 + $0xf0] sm:$0xff]  }
 0x2e1   :  { %v1659_v34 = vadd.f32 %v4167_v17, %v1562_v25  ;;  %v1650_v1 = vpop.f32.mrb[109].mxu1  ;;  %3173 = vmatprep.subr.bf16.mxu0 %v4336_v47  ;;  %v4297_v25 = vld [vmem:[%s5960_s5 + $0xc8] sm:$0xff]  }
 0x2e2   :  { %v1651_v39 = vadd.f32 %v1650_v1, %v1554_v46  ;;  %v4168_v42 = vpop.f32.mrb[110].mxu1  ;;  %v4298_v46 = vld [vmem:[%s5960_s5 + $0x88] sm:$0xff]   ;;  %v3889_v1 = vpack.c.bf16 %v5317_v37, %v5317_v37 }
 0x2e3   :  { %v1662_v22 = vadd.f32 %v4168_v42, %v1565_v58  ;;  %v1653_v33 = vpop.f32.mrb[111].mxu1  ;;  %v3903_v19 = vpack.c.bf16 %v1659_v34, %v1659_v34  ;;  %v4299_v34 = vld [vmem:[%s5960_s5 + $0xd0] sm:$0xff]  }
 0x2e4   :  { %v1654_v4 = vadd.f32 %v1653_v33, %v1557_v15  ;;  %1709 = vrot.lane.b32.xlu0 %v3897_v29, %s4533_s23  ;;  %v3901_v32 = vpack.c.bf16 %v1651_v39, %v1651_v39  ;;  %3174 = vmatpush1.bf16.msra.mxu0 %v4338_v45  ;;  %v3888_v29 = vpack.c.bf16 %v5321_v14, %v5321_v14  ;;  %v4300_v42 = vld [vmem:[%s5960_s5 + $0x90] sm:$0xff]  }
 0x2e5   :  { %v3895_v6 = vpack.c.bf16 %v1662_v22, %v1662_v22  ;;  %3175 = vmatprep.subr.bf16.mxu0 %v4339_v31  ;;  %v4301_v22 = vld [vmem:[%s5960_s5 + $0xd8] sm:$0xff]   ;;  %v3893_v14 = vpack.c.bf16 %v5345_v7, %v5345_v7  ;;  %v4308_v45 = vld [vmem:[%s5960_s5 + $0xb0] sm:$0xff]  }
 0x2e6   :  { %v5362_v21 = vpack.c.bf16 %v1654_v4, %v1654_v4  ;;  %v4302_v4 = vld [vmem:[%s5960_s5 + $0x98] sm:$0xff]  }
 0x2e7   :  { %v4309_v31 = vld [vmem:[%s5960_s5 + $0xf8] sm:$0xff]  }
 0x2e8   :  { %v5366_v9 = vsel %vm1237_vm2, %v5362_v21, %v3895_v6  ;;  %1745 = vrot.lane.b32.xlu0 %v3903_v19, %s4533_s23  ;;  %3176 = vmatpush1.bf16.msra.mxu0 %v4341_v43  ;;  %v3892_v6 = vpack.c.bf16 %v5349_v51, %v5349_v51  ;;  %v4304_v51 = vld [vmem:[%s5960_s5 + $0xa0] sm:$0xff]   ;;  %v4310_v43 = vld [vmem:[%s5960_s5 + $0xb8] sm:$0xff]  }
 0x2e9   :  { %3177 = vmatprep.subr.bf16.mxu0 %v4342_v30 }
 0x2ec   :  { %1733 = vrot.lane.b32.xlu0 %v3901_v32, %s4533_s23  ;;  %3178 = vmatpush1.bf16.msra.mxu0 %v4344_v57  ;;  %v4303_v32 = vld [vmem:[%s5960_s5 + $0xe0] sm:$0xff]  }
 0x2ed   :  { %3179 = vmatprep.subr.bf16.mxu0 %v4345_v13  ;;  %v4311_v57 = vld [vmem:[%s5960_s5 + $0x100] sm:$0xff]  }
 0x2f0   :  { %3180 = vmatpush1.bf16.msra.mxu0 %v4347_v2 }
 0x2f1   :  { %3181 = vmatprep.subr.bf16.mxu0 %v4348_v27 }
 0x2f4   :  { %3182 = vmatpush1.bf16.msra.mxu0 %v4350_v54  ;;  %v4312_v54 = vld [vmem:[%s5960_s5 + $0x108] sm:$0xff]  }
 0x2f5   :  { %3183 = vmatprep.subr.bf16.mxu0 %v4351_v61 }
 0x2f8   :  { %3184 = vmatpush1.bf16.msra.mxu0 %v4353_v5  ;;  %v4313_v5 = vld [vmem:[%s5960_s5 + $0x110] sm:$0xff]  }
 0x2f9   :  { %3185 = vmatprep.subr.bf16.mxu0 %v4354_v41  ;;  %v4365_v41 = vld [vmem:[%s5962_s7 + $0x104] ss:$8 sps:$4 sm:$0xff]  }
 0x2fc   :  { %3186 = vmatpush1.bf16.msra.mxu0 %v4356_v36  ;;  %v4363_v36 = vld [vmem:[%s5962_s7 + $0x100] ss:$8 sps:$4 sm:$0xff]  }
 0x2fd   :  { %3187 = vmatprep.subr.bf16.mxu0 %v4357_v44  ;;  %v4368_v44 = vld [vmem:[%s5962_s7 + $0x114] ss:$8 sps:$4 sm:$0xff]  }
 0x300   :  { %3188 = vmatpush1.bf16.msra.mxu0 %v4359_v60  ;;  %v4371_v60 = vld [vmem:[%s5962_s7 + $0x124] ss:$8 sps:$4 sm:$0xff]  }
 0x301   :  { %3189 = vmatprep.subr.bf16.mxu0 %v4360_v20  ;;  %v4374_v20 = vld [vmem:[%s5962_s7 + $0x134] ss:$8 sps:$4 sm:$0xff]  }
 0x304   :  { %3190 = vmatpush1.bf16.msra.mxu0 %v4362_v3  ;;  %v4372_v3 = vld [vmem:[%s5962_s7 + $0x130] ss:$8 sps:$4 sm:$0xff]  }
 0x305   :  { %3212 = vmatprep.subr.bf16.mxu0 %v4365_v41 }
 0x307   :  { %3807 = vmatmul.mubr.msk.bf16.vlgmr.msra.gmra.mrb[0].mxu0 %vm4999_vm6, %v5308_v59 }
 0x308   :  { %3213 = vmatpush1.bf16.msra.mxu0 %v4363_v36 }
 0x309   :  { %3214 = vmatprep.subr.bf16.mxu0 %v4368_v44 }
 0x342   :  { %v1707_v0 = vpop.permute.xlu1 %1706 }
 0x343   :  { %v1722_v10 = vsel %vm842_vm4, 0, %v1707_v0  ;;  %v1713_v33 = vsel %vm842_vm4, %v3888_v29, %v1707_v0  ;;  %v4377_v0 = vld [vmem:[%s5962_s7 + $0x144] ss:$8 sps:$4 sm:$0xff]   ;;  %v4392_v29 = vld [vmem:[%s5962_s7 + $0x194] ss:$8 sps:$4 sm:$0xff]  }
 0x344   :  { %v1760_v40 = vrot.slane %v1722_v10, 4  ;;  %v4375_v10 = vld [vmem:[%s5962_s7 + $0x140] ss:$8 sps:$4 sm:$0xff]  }
 0x346   :  { %3651 = vmatprep.mubr.msk.bf16.mxu1 %vm4999_vm6, %v1760_v40  ;;  %v4380_v40 = vld [vmem:[%s5962_s7 + $0x154] ss:$8 sps:$4 sm:$0xff]  }
 0x347   :  { %3653 = vmatmul.mubr.msk.bf16.vlgmr.msra.gmra.mrb[112].mxu1 %vm4999_vm6, %v5308_v59  ;;  %v1721_v17 = vpop.permute.xlu1 %1720 }
 0x348   :  { %4046 = vmatpush3.bf16.msra.mxu1 %v4296_v49  ;;  %v1728_v7 = vsel %vm842_vm4, %v5335_v56, %v1721_v17  ;;  %v4306_v56 = vld [vmem:[%s5960_s5 + $0xa8] sm:$0xff]   ;;  %v4378_v49 = vld [vmem:[%s5962_s7 + $0x150] ss:$8 sps:$4 sm:$0xff]  }
 0x349   :  { %4047 = vmatprep.subr.bf16.mxu1 %v4297_v25  ;;  %v1762_v50 = vrot.slane %v1728_v7, 4  ;;  %v4383_v25 = vld [vmem:[%s5962_s7 + $0x164] ss:$8 sps:$4 sm:$0xff]   ;;  %v4381_v17 = vld [vmem:[%s5962_s7 + $0x160] ss:$8 sps:$4 sm:$0xff]  }
 0x34a   :  { %v4413_v7 = vld [vmem:[%s5962_s7 + $0x204] ss:$8 sps:$4 sm:$0xff]  }
 0x34b   :  { %v1718_v58 = vpop.permute.xlu1 %1717 }
 0x34c   :  { %4048 = vmatpush3.bf16.msra.mxu1 %v4298_v46  ;;  %v1725_v39 = vsel %vm842_vm4, %v3889_v1, %v1718_v58  ;;  %v4386_v46 = vld [vmem:[%s5962_s7 + $0x174] ss:$8 sps:$4 sm:$0xff]   ;;  %v4389_v1 = vld [vmem:[%s5962_s7 + $0x184] ss:$8 sps:$4 sm:$0xff]   ;;  %v4387_v58 = vld [vmem:[%s5962_s7 + $0x180] ss:$8 sps:$4 sm:$0xff]  }
 0x34d   :  { %v1761_v15 = vrot.slane %v1725_v39, 4  ;;  %4049 = vmatprep.subr.bf16.mxu1 %v4299_v34  ;;  %v4384_v34 = vld [vmem:[%s5962_s7 + $0x170] ss:$8 sps:$4 sm:$0xff]  }
 0x34e   :  { %v4390_v39 = vld [vmem:[%s5962_s7 + $0x190] ss:$8 sps:$4 sm:$0xff]  }
 0x34f   :  { %v1778_v37 = vsel %vm1237_vm2, %v1713_v33, %v1761_v15  ;;  %v4393_v15 = vld [vmem:[%s5962_s7 + $0x1a0] ss:$8 sps:$4 sm:$0xff]   ;;  %v4396_v33 = vld [vmem:[%s5962_s7 + $0x1b0] ss:$8 sps:$4 sm:$0xff]  }
 0x350   :  { %4050 = vmatpush3.bf16.msra.mxu1 %v4300_v42  ;;  %v4395_v42 = vld [vmem:[%s5962_s7 + $0x1a4] ss:$8 sps:$4 sm:$0xff]  }
 0x351   :  { %v1743_v19 = vpop.permute.xlu1 %1742  ;;  %4051 = vmatprep.subr.bf16.mxu1 %v4301_v22  ;;  %v4398_v22 = vld [vmem:[%s5962_s7 + $0x1b4] ss:$8 sps:$4 sm:$0xff]  }
 0x352   :  { %v1751_v53 = vsel %vm842_vm4, %v3893_v14, %v1743_v19  ;;  %v1731_v12 = vpop.permute.xlu0 %1730  ;;  %v4399_v14 = vld [vmem:[%s5962_s7 + $0x1c0] ss:$8 sps:$4 sm:$0xff]   ;;  %v4407_v19 = vld [vmem:[%s5962_s7 + $0x1e4] ss:$8 sps:$4 sm:$0xff]  }
 0x353   :  { %v1768_v11 = vrot.slane %v1751_v53, 4  ;;  %v1738_v24 = vsel %vm842_vm4, %v3892_v6, %v1731_v12  ;;  %v1748_v35 = vsel %vm842_vm4, %v5332_v8, %v1731_v12  ;;  %v4402_v6 = vld [vmem:[%s5962_s7 + $0x1d0] ss:$8 sps:$4 sm:$0xff]   ;;  %v4410_v12 = vld [vmem:[%s5962_s7 + $0x1f4] ss:$8 sps:$4 sm:$0xff]  }
 0x354   :  { %v1767_v26 = vrot.slane %v1748_v35, 4  ;;  %4052 = vmatpush3.bf16.msra.mxu1 %v4302_v4  ;;  %v4404_v4 = vld [vmem:[%s5962_s7 + $0x1d4] ss:$8 sps:$4 sm:$0xff]   ;;  %v4408_v53 = vld [vmem:[%s5962_s7 + $0x1f0] ss:$8 sps:$4 sm:$0xff]  }
 0x355   :  { %4053 = vmatprep.subr.bf16.mxu1 %v4303_v32  ;;  %v1789_v16 = vsel %vm1237_vm2, %v1738_v24, %v1768_v11  ;;  %v4405_v32 = vld [vmem:[%s5962_s7 + $0x1e0] ss:$8 sps:$4 sm:$0xff]  }
 0x356   :  { %v1710_v52 = vpop.permute.xlu0 %1709  ;;  %v1786_v8 = vsel %vm1237_vm2, %v1735_v38, %v1767_v26 }
 0x357   :  { %v1715_v28 = vsel %vm842_vm4, 0, %v1710_v52  ;;  %2135 = vmatprep.mubr.bf16.mxu1 %v1786_v8 }
 0x358   :  { %4054 = vmatpush3.bf16.msra.mxu1 %v4304_v51  ;;  %v1781_v55 = vsel %vm1237_vm2, %v1715_v28, %v1762_v50 }
 0x359   :  { %2136 = vmatmul.mubr.bf16.gmra.mrb[116].mxu1 %v1781_v55  ;;  %4055 = vmatprep.subr.bf16.mxu1 %v4305_v62 }
 0x35a   :  { %2176 = vmatprep.mubr.bf16.mxu1 %v1781_v55  ;;  %v1746_v47 = vpop.permute.xlu0 %1745  ;;  %v3613_v55 = vld [vmem:[%s5963_s6] ss:$0 sm:$0xff] }
 0x35b   :  { %v1754_v13 = vsel %vm842_vm4, %v5362_v21, %v1746_v47  ;;  %v4314_v21 = vld [vmem:[%s5960_s5 + $0x118] sm:$0xff]  }
 0x35c   :  { %4056 = vmatpush3.bf16.msra.mxu1 %v4306_v56  ;;  %v1769_v27 = vrot.slane %v1754_v13, 4 }
 0x35d   :  { %4057 = vmatprep.subr.bf16.mxu1 %v4307_v48 }
 0x35e   :  { %v1734_v30 = vpop.permute.xlu0 %1733 }
 0x35f   :  { %v1740_v2 = vsel %vm842_vm4, 0, %v1734_v30 }
 0x360   :  { %4058 = vmatpush3.bf16.msra.mxu1 %v4308_v45  ;;  %v1792_v61 = vsel %vm1237_vm2, %v1740_v2, %v1769_v27 }
 0x361   :  { %4059 = vmatprep.subr.bf16.mxu1 %v4309_v31 }
 0x364   :  { %4060 = vmatpush3.bf16.msra.mxu1 %v4310_v43 }
 0x365   :  { %4169 = vmatprep.subr.bf16.mxu1 %v4311_v57 }
 0x367   :  { %2177 = vmatmul.mubr.bf16.vlgmr.msra.gmra.mrb[120].mxu1 %v1778_v37  ;;  %v4401_v37 = vld [vmem:[%s5962_s7 + $0x1c4] ss:$8 sps:$4 sm:$0xff]  }
 0x368   :  { %2184 = vmatprep.mubr.bf16.mxu1 %v1792_v61  ;;  %4170 = vmatpush3.bf16.msra.mxu1 %v4311_v57 }
 0x369   :  { %4171 = vmatprep.subr.bf16.mxu1 %v4312_v54 }
 0x36c   :  { %4172 = vmatpush3.bf16.msra.mxu1 %v4312_v54 }
 0x36d   :  { %4173 = vmatprep.subr.bf16.mxu1 %v4313_v5 }
 0x36f   :  { %2185 = vmatmul.mubr.bf16.gmra.mrb[124].mxu1 %v1789_v16 }
 0x370   :  { %4174 = vmatpush3.bf16.msra.mxu1 %v4313_v5  ;;  %4177 = vmatprep.mubr.msk.bf16.mxu1 %vm842_vm4, %v5343_v23  ;;  %v4366_v23 = vld [vmem:[%s5962_s7 + $0x110] ss:$8 sps:$4 sm:$0xff]  }
 0x371   :  { %4175 = vmatprep.subr.bf16.mxu1 %v4314_v21  ;;  %3215 = vmatpush1.bf16.msra.mxu0 %v4366_v23 }
 0x372   :  { %3216 = vmatprep.subr.bf16.mxu0 %v4371_v60 }
 0x374   :  { %4176 = vmatpush3.bf16.msra.mxu1 %v4314_v21 }
 0x377   :  { %4178 = vmatmul.mubr.msk.bf16.vlgmr.msra.gmra.mrb[128].mxu1 %vm842_vm4, %v5366_v9  ;;  %v4369_v9 = vld [vmem:[%s5962_s7 + $0x120] ss:$8 sps:$4 sm:$0xff]  }
 0x378   :  { %3217 = vmatpush1.bf16.msra.mxu0 %v4369_v9 }
 0x379   :  { %3218 = vmatprep.subr.bf16.mxu0 %v4374_v20 }
 0x37c   :  { %3219 = vmatpush1.bf16.msra.mxu0 %v4372_v3 }
 0x37d   :  { %3220 = vmatprep.subr.bf16.mxu0 %v4377_v0 }
 0x380   :  { %3221 = vmatpush1.bf16.msra.mxu0 %v4375_v10 }
 0x381   :  { %3222 = vmatprep.subr.bf16.mxu0 %v4380_v40 }
 0x384   :  { %3223 = vmatpush1.bf16.msra.mxu0 %v4378_v49 }
 0x385   :  { %3224 = vmatprep.subr.bf16.mxu0 %v4383_v25 }
 0x388   :  { %3225 = vmatpush1.bf16.msra.mxu0 %v4381_v17 }
 0x389   :  { %3226 = vmatprep.subr.bf16.mxu0 %v4386_v46 }
 0x38c   :  { %3227 = vmatpush1.bf16.msra.mxu0 %v4384_v34 }
 0x38d   :  { %3228 = vmatprep.subr.bf16.mxu0 %v4389_v1  ;;  %v4411_v1 = vld [vmem:[%s5962_s7 + $0x200] ss:$8 sps:$4 sm:$0xff]  }
 0x390   :  { %3229 = vmatpush1.bf16.msra.mxu0 %v4387_v58  ;;  %v4416_v58 = vld [vmem:[%s5962_s7 + $0x214] ss:$8 sps:$4 sm:$0xff]  }
 0x391   :  { %3230 = vmatprep.subr.bf16.mxu0 %v4392_v29 }
 0x394   :  { %3231 = vmatpush1.bf16.msra.mxu0 %v4390_v39  ;;  %v4414_v39 = vld [vmem:[%s5962_s7 + $0x210] ss:$8 sps:$4 sm:$0xff]  }
 0x395   :  { %3232 = vmatprep.subr.bf16.mxu0 %v4395_v42  ;;  %v4419_v42 = vld [vmem:[%s5962_s7 + $0x224] ss:$8 sps:$4 sm:$0xff]  }
 0x398   :  { %3233 = vmatpush1.bf16.msra.mxu0 %v4393_v15  ;;  %v4417_v15 = vld [vmem:[%s5962_s7 + $0x220] ss:$8 sps:$4 sm:$0xff]  }
 0x399   :  { %3234 = vmatprep.subr.bf16.mxu0 %v4398_v22  ;;  %v4422_v22 = vld [vmem:[%s5962_s7 + $0x234] ss:$8 sps:$4 sm:$0xff]  }
 0x39c   :  { %3235 = vmatpush1.bf16.msra.mxu0 %v4396_v33 }
 0x39d   :  { %3236 = vmatprep.subr.bf16.mxu0 %v4401_v37  ;;  %v4420_v37 = vld [vmem:[%s5962_s7 + $0x230] ss:$8 sps:$4 sm:$0xff]  }
 0x3a0   :  { %3237 = vmatpush1.bf16.msra.mxu0 %v4399_v14  ;;  %v4425_v14 = vld [vmem:[%s5962_s7 + $0x244] ss:$8 sps:$4 sm:$0xff]  }
 0x3a1   :  { %3238 = vmatprep.subr.bf16.mxu0 %v4404_v4  ;;  %v4423_v4 = vld [vmem:[%s5962_s7 + $0x240] ss:$8 sps:$4 sm:$0xff]  }
 0x3a4   :  { %3239 = vmatpush1.bf16.msra.mxu0 %v4402_v6  ;;  %v4428_v6 = vld [vmem:[%s5962_s7 + $0x254] ss:$8 sps:$4 sm:$0xff]  }
 0x3a5   :  { %3240 = vmatprep.subr.bf16.mxu0 %v4407_v19  ;;  %v4426_v19 = vld [vmem:[%s5962_s7 + $0x250] ss:$8 sps:$4 sm:$0xff]  }
 0x3a8   :  { %3241 = vmatpush1.bf16.msra.mxu0 %v4405_v32  ;;  %v4431_v32 = vld [vmem:[%s5962_s7 + $0x264] ss:$8 sps:$4 sm:$0xff]  }
 0x3a9   :  { %3242 = vmatprep.subr.bf16.mxu0 %v4410_v12  ;;  %v4434_v12 = vld [vmem:[%s5962_s7 + $0x274] ss:$8 sps:$4 sm:$0xff]  }
 0x3ac   :  { %3243 = vmatpush1.bf16.msra.mxu0 %v4408_v53  ;;  %v4429_v53 = vld [vmem:[%s5962_s7 + $0x260] ss:$8 sps:$4 sm:$0xff]  }
 0x3ad   :  { %3265 = vmatprep.subr.bf16.mxu0 %v4413_v7  ;;  %v4432_v7 = vld [vmem:[%s5962_s7 + $0x270] ss:$8 sps:$4 sm:$0xff]  }
 0x41a   :  { %v4033_v11 = vpop.f32.mrb[112].mxu1 }
 0x41b   :  { %v4034_v24 = vpop.f32.mrb[113].mxu1 }
 0x41c   :  { %v4035_v35 = vadd.f32 %v4034_v24, %v4033_v11  ;;  %v4036_v26 = vpop.f32.mrb[114].mxu1  ;;  %v4437_v11 = vld [vmem:[%s5962_s7 + $0x284] ss:$8 sps:$4 sm:$0xff]   ;;  %v4435_v24 = vld [vmem:[%s5962_s7 + $0x280] ss:$8 sps:$4 sm:$0xff]  }
 0x41d   :  { %v4037_v51 = vpop.f32.mrb[115].mxu1 }
 0x41e   :  { %v4038_v38 = vadd.f32 %v4037_v51, %v4036_v26  ;;  %v2130_v45 = vadd.f32 %v4035_v35, %v3613_v55  ;;  %v4440_v35 = vld [vmem:[%s5962_s7 + $0x294] ss:$8 sps:$4 sm:$0xff]   ;;  %v4438_v26 = vld [vmem:[%s5962_s7 + $0x290] ss:$8 sps:$4 sm:$0xff]   ;;  %v4443_v51 = vld [vmem:[%s5962_s7 + $0x2a4] ss:$8 sps:$4 sm:$0xff]  }
 0x420   :  { %v2133_v57 = vadd.f32 %v4038_v38, %v3613_v55  ;;  %v4441_v38 = vld [vmem:[%s5962_s7 + $0x2a0] ss:$8 sps:$4 sm:$0xff]  }
 0x42c   :  { %v4039_v62 = vpop.f32.mrb[116].mxu1 }
 0x42d   :  { %v4040_v16 = vpop.f32.mrb[117].mxu1 }
 0x42e   :  { %v4041_v50 = vadd.f32 %v4040_v16, %v4039_v62  ;;  %v4042_v52 = vpop.f32.mrb[118].mxu1  ;;  %v4446_v62 = vld [vmem:[%s5962_s7 + $0x2b4] ss:$8 sps:$4 sm:$0xff]   ;;  %v4444_v16 = vld [vmem:[%s5962_s7 + $0x2b0] ss:$8 sps:$4 sm:$0xff]  }
 0x42f   :  { %v4043_v8 = vpop.f32.mrb[119].mxu1 }
 0x430   :  { %v4044_v28 = vadd.f32 %v4043_v8, %v4042_v52  ;;  %v2138_v5 = vadd.f32 %v4041_v50, %v3613_v55  ;;  %v4449_v50 = vld [vmem:[%s5962_s7 + $0x2c4] ss:$8 sps:$4 sm:$0xff]   ;;  %v4447_v52 = vld [vmem:[%s5962_s7 + $0x2c0] ss:$8 sps:$4 sm:$0xff]   ;;  %v4452_v8 = vld [vmem:[%s5962_s7 + $0x2d4] ss:$8 sps:$4 sm:$0xff]  }
 0x432   :  { %v2141_v56 = vadd.f32 %v4044_v28, %v3613_v55  ;;  %v4450_v28 = vld [vmem:[%s5962_s7 + $0x2d0] ss:$8 sps:$4 sm:$0xff]   ;;  %v4455_v55 = vld [vmem:[%s5962_s7 + $0x2e4] ss:$8 sps:$4 sm:$0xff]  }
 0x43a   :  { %v4061_v48 = vpop.f32.mrb[120].mxu1 }
 0x43b   :  { %v4062_v47 = vpop.f32.mrb[121].mxu1 }
 0x43c   :  { %v4063_v31 = vadd.f32 %v4062_v47, %v4061_v48  ;;  %v4064_v43 = vpop.f32.mrb[122].mxu1  ;;  %v4458_v48 = vld [vmem:[%s5962_s7 + $0x2f4] ss:$8 sps:$4 sm:$0xff]   ;;  %v4456_v47 = vld [vmem:[%s5962_s7 + $0x2f0] ss:$8 sps:$4 sm:$0xff]  }
 0x43d   :  { %v4065_v30 = vpop.f32.mrb[123].mxu1 }
 0x43e   :  { %v4066_v13 = vadd.f32 %v4065_v30, %v4064_v43  ;;  %v2179_v2 = vadd.f32 %v4063_v31, %v2130_v45  ;;  %v4461_v45 = vld [vmem:[%s5962_s7 + $0x304] ss:$8 sps:$4 sm:$0xff]   ;;  %v4459_v43 = vld [vmem:[%s5962_s7 + $0x300] ss:$8 sps:$4 sm:$0xff]   ;;  %v4464_v30 = vld [vmem:[%s5962_s7 + $0x314] ss:$8 sps:$4 sm:$0xff]  }
 0x440   :  { %v2182_v27 = vadd.f32 %v4066_v13, %v2133_v57  ;;  %v4462_v13 = vld [vmem:[%s5962_s7 + $0x310] ss:$8 sps:$4 sm:$0xff]  }
 0x442   :  { %v4067_v54 = vpop.f32.mrb[124].mxu1 }
 0x443   :  { %v4068_v61 = vpop.f32.mrb[125].mxu1 }
 0x444   :  { %v4069_v21 = vadd.f32 %v4068_v61, %v4067_v54  ;;  %v4070_v41 = vpop.f32.mrb[126].mxu1  ;;  %v4470_v54 = vld [vmem:[%s5962_s7 + $0x334] ss:$8 sps:$4 sm:$0xff]  }
 0x445   :  { %v4071_v36 = vpop.f32.mrb[127].mxu1 }
 0x446   :  { %v4072_v44 = vadd.f32 %v4071_v36, %v4070_v41  ;;  %v2187_v23 = vadd.f32 %v4069_v21, %v2138_v5  ;;  %v4468_v5 = vld [vmem:[%s5962_s7 + $0x330] ss:$8 sps:$4 sm:$0xff]   ;;  %v4473_v21 = vld [vmem:[%s5962_s7 + $0x344] ss:$8 sps:$4 sm:$0xff]   ;;  %v4471_v41 = vld [vmem:[%s5962_s7 + $0x340] ss:$8 sps:$4 sm:$0xff]  }
 0x447   :  { %v4476_v36 = vld [vmem:[%s5962_s7 + $0x354] ss:$8 sps:$4 sm:$0xff]  }
 0x448   :  { %v2190_v9 = vadd.f32 %v4072_v44, %v2141_v56  ;;  %v4453_v56 = vld [vmem:[%s5962_s7 + $0x2e0] ss:$8 sps:$4 sm:$0xff]   ;;  %v4474_v44 = vld [vmem:[%s5962_s7 + $0x350] ss:$8 sps:$4 sm:$0xff]  }
 0x44a   :  { %v4179_v60 = vpop.f32.mrb[128].mxu1 }
 0x44b   :  { %v2236_v20 = vadd.f32 %v4179_v60, %v2187_v23  ;;  %v2227_v3 = vpop.f32.mrb[129].mxu1  ;;  %v4479_v23 = vld [vmem:[%s5962_s7 + $0x364] ss:$8 sps:$4 sm:$0xff]   ;;  %v4482_v60 = vld [vmem:[%s5962_s7 + $0x374] ss:$8 sps:$4 sm:$0xff]  }
 0x44c   :  { %v2228_v0 = vadd.f32 %v2227_v3, %v2179_v2  ;;  %v4180_v10 = vpop.f32.mrb[130].mxu1  ;;  %v4467_v2 = vld [vmem:[%s5962_s7 + $0x324] ss:$8 sps:$4 sm:$0xff]  }
 0x44d   :  { %v5665_v40 = vadd.f32 %v4180_v10, %v2190_v9  ;;  %v2230_v49 = vpop.f32.mrb[131].mxu1  ;;  %v5681_v29 = vpack.c.bf16 %v2236_v20, %v2236_v20  ;;  %v4477_v9 = vld [vmem:[%s5962_s7 + $0x360] ss:$8 sps:$4 sm:$0xff]   ;;  %v4480_v20 = vld [vmem:[%s5962_s7 + $0x370] ss:$8 sps:$4 sm:$0xff]  }
 0x44e   :  { %v2231_v25 = vadd.f32 %v2230_v49, %v2182_v27  ;;  %v3904_v17 = vpack.c.bf16 %v2228_v0, %v2228_v0  ;;  %v4465_v27 = vld [vmem:[%s5962_s7 + $0x320] ss:$8 sps:$4 sm:$0xff]   ;;  %v4485_v3 = vld [vmem:[%s5962_s7 + $0x384] ss:$8 sps:$4 sm:$0xff]   ;;  %v4488_v10 = vld [vmem:[%s5962_s7 + $0x394] ss:$8 sps:$4 sm:$0xff]  }
 0x44f   :  { %v3907_v31 = vpack.c.bf16 %v5665_v40, %v5665_v40  ;;  %v4483_v0 = vld [vmem:[%s5962_s7 + $0x380] ss:$8 sps:$4 sm:$0xff]   ;;  %v4486_v40 = vld [vmem:[%s5962_s7 + $0x390] ss:$8 sps:$4 sm:$0xff]   ;;  %v4491_v49 = vld [vmem:[%s5962_s7 + $0x3a4] ss:$8 sps:$4 sm:$0xff]  }
 0x450   :  { %v3905_v46 = vpack.c.bf16 %v2231_v25, %v2231_v25  ;;  %v4489_v25 = vld [vmem:[%s5962_s7 + $0x3a0] ss:$8 sps:$4 sm:$0xff]  }
 0x451   :  { %v5792_v57 = vsel %vm1237_vm2, %v3907_v31, %v5308_v59  ;;  %v2278_v61 = vsel %vm1237_vm2, %v5681_v29, %v3907_v31 }
 0x452   :  { %v5668_v34 = vsel %vm1237_vm2, %v3904_v17, %v3905_v46  ;;  %v2271_v33 = vsel %vm1237_vm2, %v3905_v46, %v5308_v59  ;;  %v4492_v46 = vld [vmem:[%s5962_s7 + $0x3b0] ss:$8 sps:$4 sm:$0xff]  }
 0x453   :  { %3201 = vmatprep.mubr.bf16.mxu0 %v5668_v34 }
 0x454   :  { %3809 = vmatmul.mubr.msk.bf16.gmra.mrb[4].mxu0 %vm4999_vm6, %v3904_v17 }
 0x455   :  { %3811 = vmatprep.mubr.msk.bf16.mxu0 %vm4999_vm6, %v3904_v17  ;;  %v4494_v17 = vld [vmem:[%s5962_s7 + $0x3b4] ss:$8 sps:$4 sm:$0xff]  }
 0x45c   :  { %3813 = vmatmul.mubr.msk.bf16.vlgmr.msra.gmra.mrb[0].mxu0 %vm4999_vm6, %v5308_v59 }
 0x45d   :  { %3266 = vmatpush1.bf16.msra.mxu0 %v4411_v1  ;;  %3815 = vmatprep.mubr.msk.bf16.mxu0 %vm4999_vm6, %v5681_v29  ;;  %v4495_v1 = vld [vmem:[%s5962_s7 + $0x3c0] ss:$8 sps:$4 sm:$0xff]  }
 0x45e   :  { %3267 = vmatprep.subr.bf16.mxu0 %v4416_v58  ;;  %v4500_v58 = vld [vmem:[%s5962_s7 + $0x3d4] ss:$8 sps:$4 sm:$0xff]  }
 0x461   :  { %3268 = vmatpush1.bf16.msra.mxu0 %v4414_v39  ;;  %v4498_v39 = vld [vmem:[%s5962_s7 + $0x3d0] ss:$8 sps:$4 sm:$0xff]  }
 0x462   :  { %3269 = vmatprep.subr.bf16.mxu0 %v4419_v42  ;;  %v4503_v42 = vld [vmem:[%s5962_s7 + $0x3e4] ss:$8 sps:$4 sm:$0xff]  }
 0x464   :  { %3255 = vmatmul.mubr.bf16.gmra.mrb[4].mxu0 %v2271_v33 }
 0x465   :  { %3270 = vmatpush1.bf16.msra.mxu0 %v4417_v15  ;;  %3297 = vmatprep.mubr.bf16.mxu0 %v2271_v33  ;;  %v4501_v15 = vld [vmem:[%s5962_s7 + $0x3e0] ss:$8 sps:$4 sm:$0xff]   ;;  %v4504_v33 = vld [vmem:[%s5962_s7 + $0x3f0] ss:$8 sps:$4 sm:$0xff]  }
 0x466   :  { %3271 = vmatprep.subr.bf16.mxu0 %v4422_v22  ;;  %v4506_v22 = vld [vmem:[%s5962_s7 + $0x3f4] ss:$8 sps:$4 sm:$0xff]  }
 0x469   :  { %3272 = vmatpush1.bf16.msra.mxu0 %v4420_v37  ;;  %v4509_v37 = vld [vmem:[%s5962_s7 + $0x404] ss:$8 sps:$4 sm:$0xff]  }
 0x46a   :  { %3273 = vmatprep.subr.bf16.mxu0 %v4425_v14  ;;  %v4507_v14 = vld [vmem:[%s5962_s7 + $0x400] ss:$8 sps:$4 sm:$0xff]  }
 0x46d   :  { %3274 = vmatpush1.bf16.msra.mxu0 %v4423_v4  ;;  %v4512_v4 = vld [vmem:[%s5962_s7 + $0x414] ss:$8 sps:$4 sm:$0xff]  }
 0x46e   :  { %3275 = vmatprep.subr.bf16.mxu0 %v4428_v6  ;;  %v4510_v6 = vld [vmem:[%s5962_s7 + $0x410] ss:$8 sps:$4 sm:$0xff]  }
 0x471   :  { %3276 = vmatpush1.bf16.msra.mxu0 %v4426_v19  ;;  %v4515_v19 = vld [vmem:[%s5962_s7 + $0x424] ss:$8 sps:$4 sm:$0xff]  }
 0x472   :  { %3277 = vmatprep.subr.bf16.mxu0 %v4431_v32  ;;  %v4513_v32 = vld [vmem:[%s5962_s7 + $0x420] ss:$8 sps:$4 sm:$0xff]  }
 0x475   :  { %3278 = vmatpush1.bf16.msra.mxu0 %v4429_v53  ;;  %v4516_v53 = vld [vmem:[%s5962_s7 + $0x430] ss:$8 sps:$4 sm:$0xff]  }
 0x476   :  { %3279 = vmatprep.subr.bf16.mxu0 %v4434_v12  ;;  %v4521_v12 = vld [vmem:[%s5962_s7 + $0x444] ss:$8 sps:$4 sm:$0xff]  }
 0x479   :  { %3280 = vmatpush1.bf16.msra.mxu0 %v4432_v7  ;;  %v4519_v7 = vld [vmem:[%s5962_s7 + $0x440] ss:$8 sps:$4 sm:$0xff]  }
 0x47a   :  { %3281 = vmatprep.subr.bf16.mxu0 %v4437_v11  ;;  %v4524_v11 = vld [vmem:[%s5962_s7 + $0x454] ss:$8 sps:$4 sm:$0xff]  }
 0x47d   :  { %3282 = vmatpush1.bf16.msra.mxu0 %v4435_v24  ;;  %v4522_v24 = vld [vmem:[%s5962_s7 + $0x450] ss:$8 sps:$4 sm:$0xff]  }
 0x47e   :  { %3283 = vmatprep.subr.bf16.mxu0 %v4440_v35  ;;  %v4527_v35 = vld [vmem:[%s5962_s7 + $0x464] ss:$8 sps:$4 sm:$0xff]  }
 0x481   :  { %3284 = vmatpush1.bf16.msra.mxu0 %v4438_v26  ;;  %v4525_v26 = vld [vmem:[%s5962_s7 + $0x460] ss:$8 sps:$4 sm:$0xff]  }
 0x482   :  { %3285 = vmatprep.subr.bf16.mxu0 %v4443_v51  ;;  %v4530_v51 = vld [vmem:[%s5962_s7 + $0x474] ss:$8 sps:$4 sm:$0xff]  }
 0x485   :  { %3286 = vmatpush1.bf16.msra.mxu0 %v4441_v38  ;;  %v4528_v38 = vld [vmem:[%s5962_s7 + $0x470] ss:$8 sps:$4 sm:$0xff]  }
 0x486   :  { %3287 = vmatprep.subr.bf16.mxu0 %v4446_v62  ;;  %v2429_v62 = vlaneseq }
 0x489   :  { %3288 = vmatpush1.bf16.msra.mxu0 %v4444_v16  ;;  %v2430_v16 = vshrl.u32 %v2429_v62, 7 }
 0x48a   :  { %3289 = vmatprep.subr.bf16.mxu0 %v4449_v50 }
 0x48d   :  { %3290 = vmatpush1.bf16.msra.mxu0 %v4447_v52  ;;  %v2431_v52 = vsub.s32 0, %v2430_v16 }
 0x48e   :  { %3291 = vmatprep.subr.bf16.mxu0 %v4452_v8 }
 0x491   :  { %3292 = vmatpush1.bf16.msra.mxu0 %v4450_v28  ;;  %v2427_v28 = vld [vmem:[%s5964_s8] sm:$0x3] }
 0x492   :  { %3293 = vmatprep.subr.bf16.mxu0 %v4455_v55  ;;  %v2435_v55 = vsub.s32 1, %v2430_v16 }
 0x495   :  { %3294 = vmatpush1.bf16.msra.mxu0 %v4453_v56 }
 0x496   :  { %3295 = vmatprep.subr.bf16.mxu0 %v4458_v48 }
 0x499   :  { %3296 = vmatpush1.bf16.msra.mxu0 %v4456_v47  ;;  %v2432_v47 = vrot.slane %v2427_v28, %v2431_v52 }
 0x49a   :  { %3318 = vmatprep.subr.bf16.mxu0 %v4461_v45  ;;  %v2436_v45 = vrot.slane %v2427_v28, %v2435_v55 }
 0x49c   :  { %3298 = vmatmul.mubr.bf16.vlgmr.msra.gmra.mrb[0].mxu0 %v5668_v34  ;;  %v4497_v34 = vld [vmem:[%s5962_s7 + $0x3c4] ss:$8 sps:$4 sm:$0xff]  }
 0x49d   :  { %3307 = vmatprep.mubr.bf16.mxu0 %v5792_v57  ;;  %3319 = vmatpush1.bf16.msra.mxu0 %v4459_v43 }
 0x49e   :  { %3320 = vmatprep.subr.bf16.mxu0 %v4464_v30 }
 0x4a1   :  { %3321 = vmatpush1.bf16.msra.mxu0 %v4462_v13 }
 0x4a2   :  { %3322 = vmatprep.subr.bf16.mxu0 %v4467_v2 }
 0x4a4   :  { %3308 = vmatmul.mubr.bf16.gmra.mrb[4].mxu0 %v2278_v61 }
 0x4a5   :  { %3323 = vmatpush1.bf16.msra.mxu0 %v4465_v27  ;;  %3350 = vmatprep.mubr.bf16.mxu0 %v2278_v61 }
 0x4a6   :  { %3324 = vmatprep.subr.bf16.mxu0 %v4470_v54 }
 0x4a9   :  { %3325 = vmatpush1.bf16.msra.mxu0 %v4468_v5 }
 0x4aa   :  { %3326 = vmatprep.subr.bf16.mxu0 %v4473_v21 }
 0x4ad   :  { %3327 = vmatpush1.bf16.msra.mxu0 %v4471_v41 }
 0x4ae   :  { %3328 = vmatprep.subr.bf16.mxu0 %v4476_v36 }
 0x4b1   :  { %3329 = vmatpush1.bf16.msra.mxu0 %v4474_v44 }
 0x4b2   :  { %3330 = vmatprep.subr.bf16.mxu0 %v4479_v23 }
 0x4b5   :  { %3331 = vmatpush1.bf16.msra.mxu0 %v4477_v9 }
 0x4b6   :  { %3332 = vmatprep.subr.bf16.mxu0 %v4482_v60 }
 0x4b9   :  { %3333 = vmatpush1.bf16.msra.mxu0 %v4480_v20 }
 0x4ba   :  { %3334 = vmatprep.subr.bf16.mxu0 %v4485_v3 }
 0x4bd   :  { %3335 = vmatpush1.bf16.msra.mxu0 %v4483_v0 }
 0x4be   :  { %3336 = vmatprep.subr.bf16.mxu0 %v4488_v10 }
 0x4c1   :  { %3337 = vmatpush1.bf16.msra.mxu0 %v4486_v40 }
 0x4c2   :  { %3338 = vmatprep.subr.bf16.mxu0 %v4491_v49 }
 0x4c5   :  { %3339 = vmatpush1.bf16.msra.mxu0 %v4489_v25 }
 0x4c6   :  { %3340 = vmatprep.subr.bf16.mxu0 %v4494_v17 }
 0x4c9   :  { %3341 = vmatpush1.bf16.msra.mxu0 %v4492_v46 }
 0x4ca   :  { %3342 = vmatprep.subr.bf16.mxu0 %v4497_v34 }
 0x4cd   :  { %3343 = vmatpush1.bf16.msra.mxu0 %v4495_v1 }
 0x4ce   :  { %3344 = vmatprep.subr.bf16.mxu0 %v4500_v58 }
 0x4d1   :  { %3345 = vmatpush1.bf16.msra.mxu0 %v4498_v39 }
 0x4d2   :  { %3346 = vmatprep.subr.bf16.mxu0 %v4503_v42 }
 0x4d5   :  { %3347 = vmatpush1.bf16.msra.mxu0 %v4501_v15 }
 0x4d6   :  { %3348 = vmatprep.subr.bf16.mxu0 %v4506_v22 }
 0x4d9   :  { %3349 = vmatpush1.bf16.msra.mxu0 %v4504_v33 }
 0x4da   :  { %3371 = vmatprep.subr.bf16.mxu0 %v4509_v37 }
 0x4dc   :  { %3817 = vmatmul.mubr.msk.bf16.vlgmr.msra.gmra.mrb[0].mxu0 %vm4999_vm6, %v5681_v29  ;;  %v4518_v29 = vld [vmem:[%s5962_s7 + $0x434] ss:$8 sps:$4 sm:$0xff]  }
 0x4dd   :  { %3372 = vmatpush1.bf16.msra.mxu0 %v4507_v14  ;;  %3819 = vmatprep.mubr.msk.bf16.mxu0 %vm4999_vm6, %v5308_v59 }
 0x4de   :  { %3373 = vmatprep.subr.bf16.mxu0 %v4512_v4 }
 0x4e1   :  { %3374 = vmatpush1.bf16.msra.mxu0 %v4510_v6 }
 0x4e2   :  { %3375 = vmatprep.subr.bf16.mxu0 %v4515_v19 }
 0x4e4   :  { %3821 = vmatmul.mubr.msk.bf16.gmra.mrb[4].mxu0 %vm4999_vm6, %v5308_v59 }
 0x4e5   :  { %3376 = vmatpush1.bf16.msra.mxu0 %v4513_v32  ;;  %3403 = vmatprep.mubr.bf16.mxu0 %v4534_v18 }
 0x4e6   :  { %3377 = vmatprep.subr.bf16.mxu0 %v4518_v29 }
 0x4e9   :  { %3378 = vmatpush1.bf16.msra.mxu0 %v4516_v53 }
 0x4ea   :  { %3379 = vmatprep.subr.bf16.mxu0 %v4521_v12 }
 0x4ed   :  { %3380 = vmatpush1.bf16.msra.mxu0 %v4519_v7 }
 0x4ee   :  { %3381 = vmatprep.subr.bf16.mxu0 %v4524_v11 }
 0x4f1   :  { %3382 = vmatpush1.bf16.msra.mxu0 %v4522_v24 }
 0x4f2   :  { %3383 = vmatprep.subr.bf16.mxu0 %v4527_v35 }
 0x4f5   :  { %3384 = vmatpush1.bf16.msra.mxu0 %v4525_v26 }
 0x4f6   :  { %3385 = vmatprep.subr.bf16.mxu0 %v4530_v51 }
 0x4f9   :  { %3386 = vmatpush1.bf16.msra.mxu0 %v4528_v38 }
 0x4fc   :  { %3404 = vmatmul.mubr.bf16.vlgmr.msra.gmra.mrb[0].mxu0 %v5792_v57 }
 0x4fd   :  { %3413 = vmatprep.mubr.bf16.mxu0 %v4534_v18 }
 0x504   :  { %3823 = vmatmul.mubr.msk.bf16.gmra.mrb[4].mxu0 %vm4999_vm6, %v5308_v59 }
 0x5cf   :  { %v3405_v50 = vpop.f32.mrb[0].mxu0 }
 0x5d0   :  { %v3407_v8 = vpop.f32.mrb[1].mxu0  ;;  %v4181_v18 = vadd.f32 %v3405_v50, %v2432_v47 }
 0x5d1   :  { %v3409_v56 = vpop.f32.mrb[2].mxu0  ;;  %v4182_v63 = vadd.f32 %v3407_v8, %v2436_v45 }
 0x5d2   :  { %v3411_v48 = vpop.f32.mrb[3].mxu0  ;;  %v4183_v13 = vadd.f32 %v3409_v56, %v2432_v47 }
 0x5d3   :  { %v4184_v61 = vadd.f32 %v3411_v48, %v2436_v45 }
 0x5d7   :  { %v3415_v31 = vpop.f32.mrb[4].mxu0 }
 0x5d8   :  { %v4185_v43 = vadd.f32 %v3415_v31, %v2432_v47  ;;  %v3417_v30 = vpop.f32.mrb[5].mxu0 }
 0x5d9   :  { %v4186_v59 = vadd.f32 %v3417_v30, %v2436_v45  ;;  %v3419_v57 = vpop.f32.mrb[6].mxu0 }
 0x5da   :  { %v3424_v2 = vmax.f32 %v4181_v18, %v4185_v43  ;;  %v4187_v27 = vadd.f32 %v3419_v57, %v2432_v47  ;;  %v3421_v54 = vpop.f32.mrb[7].mxu0 }
 0x5db   :  { %v3427_v5 = vmax.f32 %v4182_v63, %v4186_v59  ;;  %v4188_v21 = vadd.f32 %v3421_v54, %v2436_v45 }
 0x5dc   :  { %v3425_v41 = vmax.f32 %v4183_v13, %v4187_v27 }
 0x5dd   :  { %v3428_v36 = vmax.f32 %v4184_v61, %v4188_v21 }
 0x5de   :  { %v3426_v44 = vmax.f32 %v3424_v2, %v3425_v41 }
 0x5df   :  { %v3429_v23 = vmax.f32 %v3427_v5, %v3428_v36 }
 0x5e0   :  { %3430 = vst [vmem:[%s5965_s9] sm:$0xff] %v3426_v44 }
 0x5e1   :  { %3431 = vst [vmem:[%s5965_s9 + $0x8] sm:$0xff] %v3429_v23 }

</bundles_post_ra>
